<compile_context>
chip_gen: v6e
topology: v6e:2x2x1
jax: 0.10.0
libtpu: 0.0.40
codegen_flags: <defaults>
</compile_context>

<pallas_src>
import jax
import jax.numpy as jnp
from jax import lax
from jax.experimental import pallas as pl
from jax.experimental.pallas import tpu as pltpu

_MiB = 1 << 20


def mf_kernel(u_ref, it_ref, ub_ref, ib_ref, o_ref):
    """One (tm, tn) output tile: full-F MXU contraction + fused bias adds."""
    # u_ref: (tm, F), it_ref: (tn, F) -> contract both on their last dim
    # (no wrapper-side HBM transpose of item_factors).
    prod = lax.dot_general(
        u_ref[...],
        it_ref[...],
        dimension_numbers=(((1,), (1,)), ((), ())),
        precision=lax.Precision.HIGHEST,
        preferred_element_type=jnp.float32,
    )
    # user_bias (tm, 1) broadcasts along columns; item_bias row (1, tn)
    # broadcasts along rows.  Fused into the store path.
    o_ref[...] = (prod + ub_ref[...] + ib_ref[...]).astype(o_ref.dtype)


def _round_up(x, m):
    return ((x + m - 1) // m) * m


def _pick_block(dim, want, align):
    """Largest legal block <= min(dim, want): multiple of `align`, or full dim."""
    if dim <= align or want >= dim:
        return dim
    b = (min(want, dim) // align) * align
    return max(b, align)


def _split_for_megacore(dim, blk, align):
    """If the grid along this axis would be 1, split it in two (v7x megacore)."""
    if pl.cdiv(dim, blk) > 1 or dim < 2 * align:
        return blk
    half = _round_up((dim + 1) // 2, align)
    return half if half < dim else blk


def mf_implicit_forward(user_factors, item_factors, user_bias, item_bias):
    U, F = user_factors.shape
    I, F2 = item_factors.shape
    assert F == F2
    assert user_bias.shape == (U, 1)
    assert item_bias.shape == (I, 1)

    # (I, 1) -> (1, I) is a pure reshape of a vector (no HBM transpose).
    item_bias_row = item_bias.reshape(1, I)

    item_resident_bytes = (I * F + I) * 4  # item_factors + item_bias (f32)

    def vmem_est(tm, tn):
        # Conservative: assume everything is double-buffered.
        return 2 * 4 * (tm * tn + tm * F + tn * F + tm + tn)

    if 2 * item_resident_bytes <= 12 * _MiB:
        # ---- Path A: 1-D grid over U; item blocks loop-invariant (fetched once).
        budget = 24 * _MiB - 2 * item_resident_bytes
        per_row_bytes = 2 * (I + F + 1) * 4  # double-buffered per user row
        tm_cap = max(8, budget // per_row_bytes)
        tm = _pick_block(U, min(tm_cap, 4096), 8)
        tn = I
        if pl.cdiv(U, tm) == 1:
            tm = _split_for_megacore(U, tm, 8)
        grid = (pl.cdiv(U, tm),)
        in_specs = [
            pl.BlockSpec((tm, F), lambda i: (i, 0)),   # user_factors
            pl.BlockSpec((I, F), lambda i: (0, 0)),    # item_factors (resident)
            pl.BlockSpec((tm, 1), lambda i: (i, 0)),   # user_bias
            pl.BlockSpec((1, I), lambda i: (0, 0)),    # item_bias row (resident)
        ]
        out_specs = pl.BlockSpec((tm, I), lambda i: (i, 0))
        dim_semantics = ("parallel",)
        item_reads = 1
    else:
        # ---- Path B: 2-D grid over (U, I) with large lane-dense tiles.
        tm = _pick_block(U, 512, 8)
        tn = _pick_block(I, 2048, 128)
        # Shrink tiles if a large F pushes the VMEM estimate over budget.
        while vmem_est(tm, tn) > 24 * _MiB and tn > 128:
            tn = _pick_block(I, tn // 2, 128)
        while vmem_est(tm, tn) > 24 * _MiB and tm > 8:
            tm = _pick_block(U, tm // 2, 8)
        if pl.cdiv(U, tm) * pl.cdiv(I, tn) == 1:
            tm = _split_for_megacore(U, tm, 8)
        grid = (pl.cdiv(U, tm), pl.cdiv(I, tn))
        in_specs = [
            pl.BlockSpec((tm, F), lambda i, j: (i, 0)),   # user_factors
            pl.BlockSpec((tn, F), lambda i, j: (j, 0)),   # item_factors
            pl.BlockSpec((tm, 1), lambda i, j: (i, 0)),   # user_bias
            pl.BlockSpec((1, tn), lambda i, j: (0, j)),   # item_bias row
        ]
        out_specs = pl.BlockSpec((tm, tn), lambda i, j: (i, j))
        dim_semantics = ("parallel", "parallel")
        item_reads = pl.cdiv(U, tm)  # item_factors is re-streamed once per i

    # VMEM limit derived from the chosen tiles (+ headroom), never the full
    # physical VMEM (64 MiB on v7x).
    vmem_limit = int(min(max(vmem_est(tm, tn) + 4 * _MiB, 16 * _MiB), 32 * _MiB))

    cost = pl.CostEstimate(
        flops=2 * U * I * F,
        transcendentals=0,
        bytes_accessed=(U * I * 4            # output writeback (dominant)
                        + U * F * 4 + U * 4  # user factors / bias
                        + item_reads * (I * F * 4 + I * 4)),  # item re-reads
    )

    return pl.pallas_call(
        mf_kernel,
        out_shape=jax.ShapeDtypeStruct((U, I), jnp.float32),
        grid_spec=pltpu.PrefetchScalarGridSpec(
            num_scalar_prefetch=0,
            grid=grid,
            in_specs=in_specs,
            out_specs=out_specs,
        ),
        compiler_params=pltpu.CompilerParams(
            dimension_semantics=dim_semantics,
            vmem_limit_bytes=vmem_limit,
        ),
        cost_estimate=cost,
    )(user_factors, item_factors, user_bias, item_bias_row)


if __name__ == "__main__":
    # Deterministic parameter init (matching torch.nn.init.normal_(std=0.01)).
    num_users, num_items, n_features = 256, 512, 64
    key = jax.random.PRNGKey(0)
    k1, k2, k3, k4 = jax.random.split(key, 4)

    user_factors = 0.01 * jax.random.normal(k1, (num_users, n_features), jnp.float32)
    item_factors = 0.01 * jax.random.normal(k2, (num_items, n_features), jnp.float32)
    user_bias = 0.01 * jax.random.normal(k3, (num_users, 1), jnp.float32)
    item_bias = 0.01 * jax.random.normal(k4, (num_items, 1), jnp.float32)

    out = mf_implicit_forward(user_factors, item_factors, user_bias, item_bias)
    out = jax.block_until_ready(out)

    # Reference check in plain JAX.
    ref = user_factors @ item_factors.T + user_bias + item_bias.T
    assert out.shape == (num_users, num_items)
    assert jnp.allclose(out, ref, atol=1e-5, rtol=1e-5)

    print("KERNEL_OK")
</pallas_src>

<mosaic_0001>
module attributes {stable_mosaic.version = 11 : i64} {
  func.func @mf_kernel(%arg0: i32, %arg1: memref<128x64xf32, #tpu.memory_space<vmem>>, %arg2: memref<512x64xf32, #tpu.memory_space<vmem>>, %arg3: memref<128x1xf32, #tpu.memory_space<vmem>>, %arg4: memref<1x512xf32, #tpu.memory_space<vmem>>, %arg5: memref<128x512xf32, #tpu.memory_space<vmem>>) attributes {dimension_semantics = [#tpu.dimension_semantics<parallel>], iteration_bounds = array<i64: 2>, scalar_prefetch = 0 : i64, scratch_operands = 0 : i64, tpu.core_type = #tpu.core_type<tc>, window_params = [{transform_indices = @transform_0, window_bounds = array<i64: 128, 64>}, {pipeline_mode = #tpu.pipeline_mode<synchronous>, transform_indices = @transform_1, window_bounds = array<i64: 512, 64>}, {transform_indices = @transform_2, window_bounds = array<i64: 128, 1>}, {pipeline_mode = #tpu.pipeline_mode<synchronous>, transform_indices = @transform_3, window_bounds = array<i64: 1, 512>}, {transform_indices = @transform_4, window_bounds = array<i64: 128, 512>}]} {
    %c0 = arith.constant 0 : index
    %c0_0 = arith.constant 0 : index
    %0 = vector.load %arg1[%c0, %c0_0] : memref<128x64xf32, #tpu.memory_space<vmem>>, vector<128x64xf32>
    %c0_1 = arith.constant 0 : index
    %c0_2 = arith.constant 0 : index
    %1 = vector.load %arg2[%c0_1, %c0_2] : memref<512x64xf32, #tpu.memory_space<vmem>>, vector<512x64xf32>
    %cst = arith.constant dense<0.000000e+00> : vector<128x512xf32>
    %2 = tpu.matmul %0, %1, %cst {dimension_numbers = #tpu.dot_dimension_numbers<[1], [1], [0], [0], [0, 0, 1, 0], [], []>, precision = #tpu.contract_precision<fp32>} : vector<128x64xf32>, vector<512x64xf32>, vector<128x512xf32> -> vector<128x512xf32>
    %c0_3 = arith.constant 0 : index
    %c0_4 = arith.constant 0 : index
    %3 = vector.load %arg3[%c0_3, %c0_4] : memref<128x1xf32, #tpu.memory_space<vmem>>, vector<128x1xf32>
    %4 = vector.broadcast %3 : vector<128x1xf32> to vector<128x512xf32>
    %5 = arith.addf %2, %4 : vector<128x512xf32>
    %c0_5 = arith.constant 0 : index
    %c0_6 = arith.constant 0 : index
    %6 = vector.load %arg4[%c0_5, %c0_6] : memref<1x512xf32, #tpu.memory_space<vmem>>, vector<1x512xf32>
    %7 = vector.broadcast %6 : vector<1x512xf32> to vector<128x512xf32>
    %8 = arith.addf %5, %7 : vector<128x512xf32>
    %c0_7 = arith.constant 0 : index
    %c0_8 = arith.constant 0 : index
    %9 = vector.load %arg5[%c0_7, %c0_8] : memref<128x512xf32, #tpu.memory_space<vmem>>, vector<128x512xf32>
    tpu.vector_store %arg5[%c0_7, %c0_8], %8 {strides = array<i32>} : memref<128x512xf32, #tpu.memory_space<vmem>>, vector<128x512xf32>,
    return
  }
  func.func @transform_0(%arg0: i32) -> (i32, i32) {
    %c0_i32 = arith.constant 0 : i32
    %c0_i32_0 = arith.constant 0 : i32
    return %arg0, %c0_i32 : i32, i32
  }
  func.func @transform_1(%arg0: i32) -> (i32, i32) {
    %c0_i32 = arith.constant 0 : i32
    %c0_i32_0 = arith.constant 0 : i32
    %c0_i32_1 = arith.constant 0 : i32
    return %c0_i32, %c0_i32_0 : i32, i32
  }
  func.func @transform_2(%arg0: i32) -> (i32, i32) {
    %c0_i32 = arith.constant 0 : i32
    %c0_i32_0 = arith.constant 0 : i32
    return %arg0, %c0_i32 : i32, i32
  }
  func.func @transform_3(%arg0: i32) -> (i32, i32) {
    %c0_i32 = arith.constant 0 : i32
    %c0_i32_0 = arith.constant 0 : i32
    %c0_i32_1 = arith.constant 0 : i32
    return %c0_i32, %c0_i32_0 : i32, i32
  }
  func.func @transform_4(%arg0: i32) -> (i32, i32) {
    %c0_i32 = arith.constant 0 : i32
    %c0_i32_0 = arith.constant 0 : i32
    return %arg0, %c0_i32 : i32, i32
  }
}

</mosaic_0001>

<bundles_post_ra>
// kernel: tpu_custom_call.1
= control target key start
LH: loop header
LB: loop body
LE: loop exit
PB: predicated region body
PF: predicated region fallthrough
CT: control target
= control target key end

     0   :  { %9 = vsyncpa [#allocation3], 0  ;;  %s7770_s0 = inlined_call_operand.vmem [shape: f32[256,64], index: 0, kind: input, shape index: {}]   ;;  %s7771_s1 = inlined_call_operand.vmem [shape: f32[512,64], index: 1, kind: input, shape index: {}]   ;;  %s7772_s2 = inlined_call_operand.vmem [shape: f32[256,1], index: 2, kind: input, shape index: {}]   ;;  %s7773_s3 = inlined_call_operand.vmem [shape: f32[1,512], index: 3, kind: input, shape index: {}]   ;;  %s7774_s4 = inlined_call_operand.hbm [shape: f32[256,512], index: 4, kind: output, shape index: {}]  }
   0x1   :  { %11 = vsyncpa [#allocation3 + $0x1], 0  ;;  %s4978_s15 = smov 0   ;;  %s4980_s16 = smov 0  }
   0x2   :  { %s4982_s17 = smov 0   ;;  %s4984_s18 = smov 0  }
   0x3 LB: > { %s4999_s19 = sadd.s32 4294967295, %s4947_s18   ;;  %s4057_s20 = sadd.s32 4294967294, %s4947_s18   ;;  %s4947_s18 = sphi %s4984_s18, %s8788_s18   ;;  %s4943_s17 = sphi %s4982_s17, %s8787_s17   ;;  %s4939_s16 = sphi %s4980_s16, %s8786_s16   ;;  %s4935_s15 = sphi %s4978_s15, %s8785_s15  }
   0x4   : > { %s5003_s21 = sadd.s32 1, %s4947_s18   ;;  %s118_s22 = sadd.s32 1, %s4943_s17 }
   0x5   : > { %s115_s23 = ssub.s32 %s4947_s18, %s5003_s21  ;;  %p128_p0 = scmp.ne.s32.totalorder %s4943_s17, %s4939_s16 }
   0x6   : > { %p116_p1 = scmp.eq.s32.totalorder %s115_s23, 0  ;;  %p129_p2 = scmp.eq.s32.totalorder %s4999_s19, 1 }
   0x7   : > { %p134_p3 = scmp.ne.s32.totalorder %s4939_s16, %s4935_s15  ;;  %p135_p4 = scmp.eq.s32.totalorder %s4057_s20, 1 }
   0x8   : > { %s5014_s24 = scalar_select %p116_p1, %s4943_s17, %s118_s22  }
   0x9   : > { %p5016_p5 = por %p129_p2, %p128_p0  ;;  %p5020_p6 = por %p135_p4, %p134_p3 }
   0xa   : > { %p4060_p7 = scmp.ge.s32.totalorder %s4947_s18, 1  ;;  %p177_p8 = scmp.lt.s32.totalorder %s4947_s18, 3 }
   0xc   : > { %p178_p9 = pnand %p4060_p7, %p177_p8 }
   0xe   : > { %181 = sbr.rel (%p178_p9) target bundleno = 696 (0x2b8), region = 36 }
  0x13   : > { %v268_v0 = vld [vmem:[%s7771_s1 + $0xf8] sm:$0xff]  ;;  %vm397_vm0 = vcmask 523264   ;;  %v267_v2 = vld [vmem:[%s7771_s1 + $0xf0] sm:$0xff]  ;;  %v266_v7 = vld [vmem:[%s7771_s1 + $0xe8] sm:$0xff]  ;;  %s4062_s9 = sshll.u32 %s4999_s19, 4  ;;  %s205_s29 = sand.u32 1, %s4939_s16  }
  0x14   : > { %v252_v1 = vld [vmem:[%s7771_s1 + $0x78] sm:$0xff]  ;;  %v540_v3 = vsel %vm397_vm0, %v268_v0, 0  ;;  %v537_v5 = vsel %vm397_vm0, %v267_v2, 0  ;;  %v251_v6 = vld [vmem:[%s7771_s1 + $0x70] sm:$0xff]  ;;  %v250_v8 = vld [vmem:[%s7771_s1 + $0x68] sm:$0xff]  ;;  %v534_v16 = vsel %vm397_vm0, %v266_v7, 0 }
  0x15   : > { %v492_v4 = vsel %vm397_vm0, %v252_v1, 0  ;;  %v5047_v9 = vand.u32 4294901760, %v540_v3  ;;  %v5051_v11 = vand.u32 4294901760, %v537_v5  ;;  %v489_v12 = vsel %vm397_vm0, %v251_v6, 0  ;;  %v265_v13 = vld [vmem:[%s7771_s1 + $0xe0] sm:$0xff]  ;;  %v264_v19 = vld [vmem:[%s7771_s1 + $0xd8] sm:$0xff] }
  0x16   : > { %v5049_v10 = vand.u32 4294901760, %v492_v4  ;;  %v249_v14 = vld [vmem:[%s7771_s1 + $0x60] sm:$0xff]  ;;  %v5060_v15 = vand.u32 4294901760, %v489_v12  ;;  %v486_v17 = vsel %vm397_vm0, %v250_v8, 0  ;;  %v531_v18 = vsel %vm397_vm0, %v265_v13, 0  ;;  %v248_v27 = vld [vmem:[%s7771_s1 + $0x58] sm:$0xff] }
  0x17   : > { %4074 = vmatprep.subr.mxu0 %v5047_v9  ;;  %v5069_v20 = vand.u32 4294901760, %v534_v16  ;;  %v5072_v21 = vsub.f32 %v540_v3, %v5047_v9  ;;  %v5074_v22 = vand.u32 4294901760, %v486_v17  ;;  %v5081_v24 = vsub.f32 %v537_v5, %v5051_v11  ;;  %v263_v36 = vld [vmem:[%s7771_s1 + $0xd0] sm:$0xff]  ;;  %v262_v50 = vld [vmem:[%s7771_s1 + $0xc8] sm:$0xff]  ;;  %v261_v59 = vld [vmem:[%s7771_s1 + $0xc0] sm:$0xff]  ;;  %p5272_p10 = scmp.lt.s32.totalorder %s4062_s9, 31 }
  0x18   : > { %v5077_v23 = vsub.f32 %v492_v4, %v5049_v10  ;;  %4075 = vmatpush3.xpose.msra.mxu0 %v5049_v10  ;;  %v483_v25 = vsel %vm397_vm0, %v249_v14, 0  ;;  %v5085_v26 = vsub.f32 %v489_v12, %v5060_v15  ;;  %v5093_v30 = vand.u32 4294901760, %v531_v18  ;;  %v247_v45 = vld [vmem:[%s7771_s1 + $0x50] sm:$0xff]  ;;  %v246_v58 = vld [vmem:[%s7771_s1 + $0x48] sm:$0xff]  ;;  %v245_v8 = vld [vmem:[%s7771_s1 + $0x40] sm:$0xff]  ;;  %s4073_s11 = sshll.u32 %s4999_s19, 13 }
  0x19   : > { %4076 = vmatprep.subr.mxu0 %v5051_v11  ;;  %v7791_v28 = vand.u32 4294901760, %v5072_v21  ;;  %v528_v31 = vsel %vm397_vm0, %v264_v19, 0  ;;  %v7789_v32 = vand.u32 4294901760, %v5081_v24  ;;  %v5097_v33 = vand.u32 4294901760, %v483_v25  ;;  %s8790_s9 = smov (!%p5272_p10, %s4062_s9), 31  ;;  %s7730_s19 = scalar_lea.sflag [#allocation3], %s205_s29 }
  0x1a   : > { %v7790_v29 = vand.u32 4294901760, %v5077_v23  ;;  %v7787_v34 = vand.u32 4294901760, %v5085_v26  ;;  %v5101_v35 = vsub.f32 %v534_v16, %v5069_v20  ;;  %v480_v39 = vsel %vm397_vm0, %v248_v27, 0  ;;  %s4063_s30 = sshll.u32 %s8790_s9, 3  ;;  %s4061_s9 = sshll.u32 %s205_s29, 9 }
  0x1b   : > { %v1027_v37 = vsub.f32 %v5072_v21, %v7791_v28  ;;  %v5114_v40 = vsub.f32 %v486_v17, %v5074_v22  ;;  %v1034_v41 = vsub.f32 %v5081_v24, %v7789_v32  ;;  %v5123_v43 = vand.u32 4294901760, %v528_v31  ;;  %v260_v17 = vld [vmem:[%s7771_s1 + $0xb8] sm:$0xff]  ;;  %v255_v32 = vld [vmem:[%s7771_s1 + $0x90] sm:$0xff]  ;;  %s5364_s10 = scalar_lea.vmem %s7770_s0, %s4063_s30  ;;  %s5566_s7 = scalar_lea.vmem %s7772_s2, %s4063_s30 }
  0x1c   : > { %v915_v38 = vsub.f32 %v5077_v23, %v7790_v29  ;;  %4077 = vmatpush3.xpose.msra.mxu0 %v5060_v15  ;;  %v922_v42 = vsub.f32 %v5085_v26, %v7787_v34  ;;  %v7785_v44 = vand.u32 4294901760, %v5101_v35  ;;  %v525_v49 = vsel %vm397_vm0, %v263_v36, 0  ;;  %s7128_s30 = scalar_lea.vmem [#allocation2], %s4061_s9  ;;  %s4950_s22 = smov [#allocation2]  }
  0x1d   : > { %4078 = vmatprep.subr.mxu0 %v5069_v20  ;;  %v1028_v46 = vand.u32 4294901760, %v1027_v37  ;;  %v7784_v48 = vand.u32 4294901760, %v5114_v40  ;;  %v1035_v51 = vand.u32 4294901760, %v1034_v41  ;;  %v5138_v53 = vand.u32 4294901760, %v480_v39  ;;  %s3983_s12 = sshll.u32 %s7128_s30, 4  ;;  %s4891_s23 = sshll.u32 %s4950_s22, 4  ;;  %s7723_s12 = int_to_ptr.vmem [resolvable:$true] %s3983_s12  ;;  %s4892_s23 = int_to_ptr.vmem [resolvable:$false] %s4891_s23 }
  0x1e   : > { %v916_v47 = vand.u32 4294901760, %v915_v38  ;;  %v1041_v52 = vsub.f32 %v5101_v35, %v7785_v44  ;;  %v5144_v55 = vsub.f32 %v531_v18, %v5093_v30  ;;  %v477_v56 = vsel %vm397_vm0, %v247_v45, 0  ;;  %s4887_s20 = scalar_lea.vmem %s7723_s12, 8192  ;;  %s4893_s27 = scalar_lea.vmem %s4892_s23, 16384 }
  0x1f   : > { %4138 = vmatprep.subr.mxu1 %v1028_v46  ;;  %v929_v54 = vsub.f32 %v5114_v40, %v7784_v48  ;;  %v5148_v57 = vsub.f32 %v483_v25, %v5097_v33  ;;  %v923_v60 = vand.u32 4294901760, %v922_v42  ;;  %v5157_v61 = vand.u32 4294901760, %v525_v49  ;;  %p4888_p11 = scmp.ne.s32.totalorder %s7723_s12, %s4887_s20  ;;  %p4894_p0 = scmp.lt.s32.totalorder %s7723_s12, %s4892_s23 }
  0x20   : > { %4079 = vmatpush3.xpose.msra.mxu0 %v5074_v22  ;;  %4139 = vmatpush3.xpose.msra.mxu1 %v916_v47  ;;  %v522_v62 = vsel %vm397_vm0, %v262_v50, 0  ;;  %v5161_v63 = vsub.f32 %v528_v31, %v5123_v43  ;;  %v1042_v0 = vand.u32 4294901760, %v1041_v52  ;;  %v7783_v1 = vand.u32 4294901760, %v5144_v55  ;;  %v259_v50 = vld [vmem:[%s7771_s1 + $0xb0] sm:$0xff]  ;;  %p4895_p1 = scmp.lt.s32.totalorder %s4893_s27, %s4887_s20 }
  0x21   : > { %4080 = vmatprep.subr.mxu0 %v5093_v30  ;;  %4140 = vmatprep.subr.mxu1 %v1035_v51  ;;  %v5165_v2 = vand.u32 4294901760, %v477_v56  ;;  %v7780_v3 = vand.u32 4294901760, %v5148_v57  ;;  %v474_v5 = vsel %vm397_vm0, %v246_v58, 0  ;;  %v5171_v6 = vsub.f32 %v480_v39, %v5138_v53  ;;  %v244_v39 = vld [vmem:[%s7771_s1 + $0x38] sm:$0xff]  ;;  %v243_v58 = vld [vmem:[%s7771_s1 + $0x30] sm:$0xff]  ;;  %p4889_p12 = pnand %p4888_p11, %p5016_p5 }
  0x22   : > { %v7779_v4 = vand.u32 4294901760, %v5161_v63  ;;  %v519_v7 = vsel %vm397_vm0, %v261_v59, 0  ;;  %v930_v12 = vand.u32 4294901760, %v929_v54  ;;  %v1048_v13 = vsub.f32 %v5144_v55, %v7783_v1  ;;  %p4896_p2 = por %p4895_p1, %p4894_p0 }
  0x23   : > { %8128 = vst [vmem:[#allocation5_spill] sm:$0xff] %v5165_v2  ;;  %v936_v14 = vsub.f32 %v5148_v57, %v7780_v3  ;;  %v5183_v16 = vand.u32 4294901760, %v522_v62  ;;  %v5192_v19 = vand.u32 4294901760, %v474_v5  ;;  %v7778_v25 = vand.u32 4294901760, %v5171_v6  ;;  %v241_v3 = vld [vmem:[%s7771_s1 + $0x20] sm:$0xff]  ;;  %p4890_p13 = pneg %p4889_p12 }
  0x24   : > { %4081 = vmatpush3.xpose.msra.mxu0 %v5097_v33  ;;  %4141 = vmatpush3.xpose.msra.mxu1 %v923_v60  ;;  %v1055_v18 = vsub.f32 %v5161_v63, %v7779_v4  ;;  %v5196_v27 = vsub.f32 %v525_v49, %v5157_v61  ;;  %v1049_v31 = vand.u32 4294901760, %v1048_v13  ;;  %v5199_v36 = vand.u32 4294901760, %v519_v7 }
  0x25   : > { %8129 = vst [vmem:[#allocation6_spill] sm:$0xff] %v5183_v16  ;;  %8130 = vst [vmem:[#allocation7_spill] sm:$0xff] %v5192_v19  ;;  %4082 = vmatprep.subr.mxu0 %v5123_v43  ;;  %4142 = vmatprep.subr.mxu1 %v1042_v0  ;;  %v471_v37 = vsel %vm397_vm0, %v245_v8, 0  ;;  %v5203_v38 = vsub.f32 %v477_v56, %v5165_v2  ;;  %v516_v42 = vsel %vm397_vm0, %v260_v17, 0  ;;  %v937_v45 = vand.u32 4294901760, %v936_v14  ;;  %p4897_p3 = pnand %p4896_p2, %p4890_p13 }
  0x26   : > { %8131 = vst [vmem:[#allocation8_spill] sm:$0xff] %v5199_v36  ;;  %v7777_v41 = vand.u32 4294901760, %v5196_v27  ;;  %v943_v46 = vsub.f32 %v5171_v6, %v7778_v25  ;;  %v5215_v49 = vsub.f32 %v522_v62, %v5183_v16  ;;  %v1056_v51 = vand.u32 4294901760, %v1055_v18 }
  0x27   : > { %v7776_v47 = vand.u32 4294901760, %v5203_v38  ;;  %v5221_v52 = vand.u32 4294901760, %v471_v37  ;;  %v468_v54 = vsel %vm397_vm0, %v244_v39, 0  ;;  %v5225_v56 = vsub.f32 %v474_v5, %v5192_v19  ;;  %v258_v5 = vld [vmem:[%s7771_s1 + $0xa8] sm:$0xff] }
  0x28   : > { %4083 = vmatpush3.xpose.msra.mxu0 %v5138_v53  ;;  %4143 = vmatpush3.xpose.msra.mxu1 %v930_v12  ;;  %v1062_v59 = vsub.f32 %v5196_v27, %v7777_v41  ;;  %v5234_v60 = vand.u32 4294901760, %v516_v42  ;;  %v7775_v62 = vand.u32 4294901760, %v5215_v49  ;;  %v5238_v0 = vsub.f32 %v519_v7, %v5199_v36 }
  0x29   : > { %8132 = vst [vmem:[#allocation9_spill] sm:$0xff] %v5221_v52  ;;  %4084 = vmatprep.subr.mxu0 %v5157_v61  ;;  %4144 = vmatprep.subr.mxu1 %v1049_v31  ;;  %v513_v8 = vsel %vm397_vm0, %v259_v50, 0  ;;  %v944_v12 = vand.u32 4294901760, %v943_v46  ;;  %v950_v13 = vsub.f32 %v5203_v38, %v7776_v47  ;;  %v5248_v14 = vand.u32 4294901760, %v468_v54  ;;  %v242_v46 = vld [vmem:[%s7771_s1 + $0x28] sm:$0xff] }
  0x2a   : > { %8133 = vst [vmem:[#allocation10_spill] sm:$0xff] %v5234_v60  ;;  %v465_v17 = vsel %vm397_vm0, %v243_v58, 0  ;;  %v1069_v7 = vsub.f32 %v5215_v49, %v7775_v62  ;;  %v7781_v18 = vand.u32 4294901760, %v5225_v56  ;;  %v5257_v31 = vsub.f32 %v471_v37, %v5221_v52 }
  0x2b   : > { %8134 = vst [vmem:[#allocation11_spill] sm:$0xff] %v5248_v14  ;;  %v510_v39 = vsel %vm397_vm0, %v258_v5, 0  ;;  %v1063_v50 = vand.u32 4294901760, %v1062_v59  ;;  %v7782_v58 = vand.u32 4294901760, %v5238_v0  ;;  %v5268_v62 = vsub.f32 %v516_v42, %v5234_v60  ;;  %v257_v5 = vld [vmem:[%s7771_s1 + $0xa0] sm:$0xff] }
  0x2c   : > { %4085 = vmatpush3.xpose.msra.mxu0 %v5165_v2  ;;  %4145 = vmatpush3.xpose.msra.mxu1 %v937_v45  ;;  %v5264_v45 = vand.u32 4294901760, %v513_v8  ;;  %v5276_v37 = vand.u32 4294901760, %v465_v17  ;;  %v5282_v59 = vand.u32 4294901760, %v510_v39  ;;  %v462_v42 = vsel %vm397_vm0, %v242_v46, 0 }
  0x2d   : > { %4086 = vmatprep.subr.mxu0 %v5183_v16  ;;  %4146 = vmatprep.subr.mxu1 %v1056_v51  ;;  %8136 = vst [vmem:[#allocation13_spill] sm:$0xff] %v5268_v62  ;;  %v7786_v51 = vand.u32 4294901760, %v5257_v31  ;;  %v951_v47 = vand.u32 4294901760, %v950_v13  ;;  %v1070_v41 = vand.u32 4294901760, %v1069_v7  ;;  %v957_v25 = vsub.f32 %v5225_v56, %v7781_v18 }
  0x2e   : > { %8135 = vst [vmem:[#allocation12_spill] sm:$0xff] %v5264_v45  ;;  %8138 = vst [vmem:[#allocation14_spill] sm:$0xff] %v5276_v37  ;;  %v5290_v4 = vsub.f32 %v468_v54, %v5248_v14  ;;  %v7788_v13 = vand.u32 4294901760, %v5268_v62  ;;  %v507_v7 = vsel %vm397_vm0, %v257_v5, 0  ;;  %v5302_v46 = vsub.f32 %v513_v8, %v5264_v45 }
  0x2f   : > { %8139 = vst [vmem:[#allocation15_spill] sm:$0xff] %v5282_v59  ;;  %v5310_v54 = vand.u32 4294901760, %v462_v42  ;;  %v5313_v18 = vsub.f32 %v465_v17, %v5276_v37  ;;  %v964_v5 = vsub.f32 %v5257_v31, %v7786_v51  ;;  %v459_v8 = vsel %vm397_vm0, %v241_v3, 0 }
  0x30   : > { %4087 = vmatpush3.xpose.msra.mxu0 %v5192_v19  ;;  %4147 = vmatpush3.xpose.msra.mxu1 %v944_v12  ;;  %8140 = vst [vmem:[#allocation16_spill] sm:$0xff] %v5290_v4  ;;  %v1076_v12 = vsub.f32 %v5238_v0, %v7782_v58  ;;  %8141 = vst [vmem:[#allocation17_spill] sm:$0xff] %v5302_v46  ;;  %v5323_v58 = vsub.f32 %v510_v39, %v5282_v59  ;;  %v958_v1 = vand.u32 4294901760, %v957_v25  ;;  %v240_v25 = vld [vmem:[%s7771_s1 + $0x18] sm:$0xff] }
  0x31   : > { %4088 = vmatprep.subr.mxu0 %v5199_v36  ;;  %4148 = vmatprep.subr.mxu1 %v1063_v50  ;;  %8142 = vst [vmem:[#allocation18_spill] sm:$0xff] %v5310_v54  ;;  %8143 = vst [vmem:[#allocation19_spill] sm:$0xff] %v5313_v18  ;;  %v256_v50 = vld [vmem:[%s7771_s1 + $0x98] sm:$0xff]  ;;  %v7792_v17 = vand.u32 4294901760, %v5290_v4  ;;  %v5327_v48 = vand.u32 4294901760, %v507_v7  ;;  %v1083_v51 = vsub.f32 %v5268_v62, %v7788_v13  ;;  %v7795_v3 = vand.u32 4294901760, %v5302_v46 }
  0x32   : > { %8144 = vst [vmem:[#allocation20_spill] sm:$0xff] %v5323_v58  ;;  %v1077_v44 = vand.u32 4294901760, %v1076_v12  ;;  %v504_v39 = vsel %vm397_vm0, %v256_v50, 0  ;;  %v7800_v34 = vand.u32 4294901760, %v5313_v18  ;;  %v965_v12 = vand.u32 4294901760, %v964_v5 }
  0x33   : > { %8145 = vst [vmem:[#allocation21_spill] sm:$0xff] %v5327_v48  ;;  %v971_v50 = vsub.f32 %v5290_v4, %v7792_v17  ;;  %v5353_v29 = vand.u32 4294901760, %v504_v39  ;;  %v456_v28 = vsel %vm397_vm0, %v240_v25, 0  ;;  %v1090_v5 = vsub.f32 %v5302_v46, %v7795_v3  ;;  %v224_v46 = vld [vmem:[%s5364_s10 + $0x18] sm:$0xff] }
  0x34   : > { %4089 = vmatpush3.xpose.msra.mxu0 %v5221_v52  ;;  %4149 = vmatpush3.xpose.msra.mxu1 %v951_v47  ;;  %v5339_v47 = vand.u32 4294901760, %v459_v8  ;;  %v978_v25 = vsub.f32 %v5313_v18, %v7800_v34  ;;  %v501_v13 = vsel %vm397_vm0, %v255_v32, 0 }
  0x35   : > { %4090 = vmatprep.subr.mxu0 %v5234_v60  ;;  %4150 = vmatprep.subr.mxu1 %v1070_v41  ;;  %v5343_v41 = vsub.f32 %v462_v42, %v5310_v54  ;;  %8148 = vst [vmem:[#allocation24_spill] sm:$0xff] %v5353_v29  ;;  %v5357_v42 = vsub.f32 %v507_v7, %v5327_v48  ;;  %v239_v7 = vld [vmem:[%s7771_s1 + $0x10] sm:$0xff]  ;;  %v221_v60 = vld [vmem:[%s5364_s10] sm:$0xff]  ;;  %v972_v34 = vand.u32 4294901760, %v971_v50  ;;  %v1091_v52 = vand.u32 4294901760, %v1090_v5 }
  0x36   : > { %8146 = vst [vmem:[#allocation22_spill] sm:$0xff] %v5339_v47  ;;  %v5394_v17 = vsub.f32 %v504_v39, %v5353_v29  ;;  %v979_v50 = vand.u32 4294901760, %v978_v25  ;;  %v399_v5 = vsel %vm397_vm0, %v221_v60, 0 }
  0x37   : > { %8147 = vst [vmem:[#allocation23_spill] sm:$0xff] %v5343_v41  ;;  %8149 = vst [vmem:[#allocation25_spill] sm:$0xff] %v5357_v42  ;;  %v8154_v32 = vand.u32 4294901760, %v5343_v41  ;;  %v5417_v25 = vand.u32 4294901760, %v399_v5 }
  0x38   : > { %4091 = vmatpush3.xpose.msra.mxu0 %v5248_v14  ;;  %4151 = vmatpush3.xpose.msra.mxu1 %v958_v1  ;;  %v1084_v1 = vand.u32 4294901760, %v1083_v51  ;;  %v8151_v51 = vand.u32 4294901760, %v5323_v58  ;;  %v5387_v14 = vand.u32 4294901760, %v456_v28 }
  0x39   : > { %4092 = vmatprep.subr.mxu0 %v5264_v45  ;;  %4152 = vmatprep.subr.mxu1 %v1077_v44  ;;  %v5379_v45 = vsub.f32 %v459_v8, %v5339_v47  ;;  %v254_v44 = vld [vmem:[%s7771_s1 + $0x88] sm:$0xff]  ;;  %v453_v8 = vsel %vm397_vm0, %v239_v7, 0  ;;  %v985_v7 = vsub.f32 %v5343_v41, %v8154_v32  ;;  %8156 = vst [vmem:[#allocation30_spill] sm:$0xff] %v5417_v25  ;;  %v8157_v32 = vand.u32 4294901760, %v5357_v42 }
  0x3a   : > { %v1097_v3 = vsub.f32 %v5323_v58, %v8151_v51  ;;  %8152 = vst [vmem:[#allocation27_spill] sm:$0xff] %v5387_v14  ;;  %v5397_v51 = vand.u32 4294901760, %v501_v13  ;;  %v498_v58 = vsel %vm397_vm0, %v254_v44, 0  ;;  %v5412_v44 = vand.u32 4294901760, %v453_v8  ;;  %4170 = vmatprep.mubr.f32.mxu1 %v5417_v25 }
  0x3b   : > { %8150 = vst [vmem:[#allocation26_spill] sm:$0xff] %v5379_v45  ;;  %v5415_v18 = vsub.f32 %v456_v28, %v5387_v14  ;;  %v1104_v39 = vsub.f32 %v5357_v42, %v8157_v32  ;;  %v5423_v41 = vand.u32 4294901760, %v498_v58  ;;  %v8160_v42 = vand.u32 4294901760, %v5379_v45 }
  0x3c   : > { %4093 = vmatpush3.xpose.msra.mxu0 %v5276_v37  ;;  %4153 = vmatpush3.xpose.msra.mxu1 %v965_v12  ;;  %8153 = vst [vmem:[#allocation28_spill] sm:$0xff] %v5397_v51  ;;  %v238_v12 = vld [vmem:[%s7771_s1 + $0x8] sm:$0xff]  ;;  %v1098_v37 = vand.u32 4294901760, %v1097_v3  ;;  %8155 = vst [vmem:[#allocation29_spill] sm:$0xff] %v5412_v44  ;;  %v5430_v36 = vsub.f32 %v501_v13, %v5397_v51 }
  0x3d   : > { %4094 = vmatprep.subr.mxu0 %v5282_v59  ;;  %4154 = vmatprep.subr.mxu1 %v1084_v1  ;;  %v253_v1 = vld [vmem:[%s7771_s1 + $0x80] sm:$0xff]  ;;  %v222_v59 = vld [vmem:[%s5364_s10 + $0x8] sm:$0xff]  ;;  %8158 = vst [vmem:[#allocation31_spill] sm:$0xff] %v5423_v41  ;;  %v450_v3 = vsel %vm397_vm0, %v238_v12, 0  ;;  %v992_v60 = vsub.f32 %v5379_v45, %v8160_v42  ;;  %v1105_v42 = vand.u32 4294901760, %v1104_v39  ;;  %v8167_v19 = vand.u32 4294901760, %v5415_v18 }
  0x3e   : > { %v495_v28 = vsel %vm397_vm0, %v253_v1, 0  ;;  %v402_v32 = vsel %vm397_vm0, %v222_v59, 0  ;;  %v237_v12 = vld [vmem:[%s7771_s1] sm:$0xff]  ;;  %v5447_v1 = vsub.f32 %v453_v8, %v5412_v44  ;;  %v8166_v8 = vand.u32 4294901760, %v5394_v17 }
  0x3f   : > { %v5459_v45 = vand.u32 4294901760, %v402_v32  ;;  %v999_v4 = vsub.f32 %v5415_v18, %v8167_v19 }
  0x40   : > { %4095 = vmatpush3.xpose.msra.mxu0 %v5310_v54  ;;  %4155 = vmatpush3.xpose.msra.mxu1 %v972_v34  ;;  %v5433_v34 = vsub.f32 %v399_v5, %v5417_v25  ;;  %v986_v54 = vand.u32 4294901760, %v985_v7  ;;  %v223_v7 = vld [vmem:[%s5364_s10 + $0x10] sm:$0xff]  ;;  %v5454_v5 = vand.u32 4294901760, %v495_v28  ;;  %v1111_v13 = vsub.f32 %v5394_v17, %v8166_v8 }
  0x41   : > { %4096 = vmatprep.subr.mxu0 %v5327_v48  ;;  %4156 = vmatprep.subr.mxu1 %v1091_v52  ;;  %v5443_v52 = vand.u32 4294901760, %v450_v3  ;;  %v5457_v48 = vsub.f32 %v498_v58, %v5423_v41  ;;  %8165 = vst [vmem:[#allocation37_spill] sm:$0xff] %v5459_v45  ;;  %v405_v58 = vsel %vm397_vm0, %v223_v7, 0  ;;  %v5485_v7 = vsub.f32 %v402_v32, %v5459_v45 }
  0x42   : > { %8159 = vst [vmem:[#allocation32_spill] sm:$0xff] %v5433_v34  ;;  %v5450_v59 = vand.u32 4294901760, %v5433_v34  ;;  %8163 = vst [vmem:[#allocation35_spill] sm:$0xff] %v5454_v5  ;;  %v5488_v19 = vsub.f32 %v495_v28, %v5454_v5  ;;  %v8172_v32 = vand.u32 4294901760, %v5447_v1 }
  0x43   : > { %8161 = vst [vmem:[#allocation33_spill] sm:$0xff] %v5443_v52  ;;  %8164 = vst [vmem:[#allocation36_spill] sm:$0xff] %v5457_v48  ;;  %v5477_v8 = vsub.f32 %v450_v3, %v5443_v52  ;;  %v1112_v3 = vand.u32 4294901760, %v1111_v13  ;;  %v8173_v13 = vand.u32 4294901760, %v5457_v48 }
  0x44   : > { %8162 = vst [vmem:[#allocation34_spill] sm:$0xff] %v5450_v59  ;;  %4097 = vmatpush3.xpose.msra.mxu0 %v5339_v47  ;;  %4157 = vmatpush3.xpose.msra.mxu1 %v979_v50  ;;  %v447_v50 = vsel %vm397_vm0, %v237_v12, 0  ;;  %v738_v39 = vsub.f32 %v5433_v34, %v5450_v59  ;;  %v993_v47 = vand.u32 4294901760, %v992_v60  ;;  %8169 = vst [vmem:[#allocation39_spill] sm:$0xff] %v5485_v7  ;;  %v5494_v59 = vand.u32 4294901760, %v405_v58 }
  0x45   : > { %4098 = vmatprep.subr.mxu0 %v5353_v29  ;;  %4158 = vmatprep.subr.mxu1 %v1098_v37  ;;  %v5481_v12 = vand.u32 4294901760, %v447_v50  ;;  %v1000_v60 = vand.u32 4294901760, %v999_v4  ;;  %v1006_v28 = vsub.f32 %v5447_v1, %v8172_v32 }
  0x46   : > { %v5474_v29 = vand.u32 4294901760, %v738_v39  ;;  %v8170_v39 = vand.u32 4294901760, %v5430_v36  ;;  %8171 = vst [vmem:[#allocation40_spill] sm:$0xff] %v5494_v59  ;;  %v5516_v34 = vsub.f32 %v405_v58, %v5494_v59  ;;  %v8179_v58 = vand.u32 4294901760, %v5488_v19 }
  0x48   : > { %8168 = vst [vmem:[#allocation38_spill] sm:$0xff] %v5474_v29  ;;  %4099 = vmatpush3.xpose.msra.mxu0 %v5387_v14  ;;  %4159 = vmatpush3.xpose.msra.mxu1 %v986_v54  ;;  %v1118_v37 = vsub.f32 %v5430_v36, %v8170_v39  ;;  %v408_v54 = vsel %vm397_vm0, %v224_v46, 0  ;;  %v1125_v39 = vsub.f32 %v5457_v48, %v8173_v13  ;;  %8176 = vst [vmem:[#allocation43_spill] sm:$0xff] %v5516_v34  ;;  %v226_v13 = vld [vmem:[%s5364_s10 + $0x28] sm:$0xff] }
  0x49   : > { %4100 = vmatprep.subr.mxu0 %v5397_v51  ;;  %4160 = vmatprep.subr.mxu1 %v1105_v42  ;;  %v225_v42 = vld [vmem:[%s5364_s10 + $0x20] sm:$0xff]  ;;  %v5508_v51 = vand.u32 4294901760, %v5485_v7  ;;  %v5512_v46 = vsub.f32 %v447_v50, %v5481_v12  ;;  %v1007_v14 = vand.u32 4294901760, %v1006_v28  ;;  %v8178_v48 = vand.u32 4294901760, %v5477_v8 }
  0x4a   : > { %4106 = vmatprep.mubr.f32.mxu0 %v5474_v29  ;;  %v1119_v32 = vand.u32 4294901760, %v1118_v37  ;;  %v1126_v50 = vand.u32 4294901760, %v1125_v39  ;;  %v5534_v28 = vand.u32 4294901760, %v5516_v34  ;;  %v414_v39 = vsel %vm397_vm0, %v226_v13, 0 }
  0x4b   : > { %8174 = vst [vmem:[#allocation41_spill] sm:$0xff] %v5508_v51  ;;  %8175 = vst [vmem:[#allocation42_spill] sm:$0xff] %v5512_v46  ;;  %v1013_v4 = vsub.f32 %v5477_v8, %v8178_v48  ;;  %v749_v37 = vsub.f32 %v5485_v7, %v5508_v51  ;;  %v227_v51 = vld [vmem:[%s5364_s10 + $0x30] sm:$0xff]  ;;  %v5547_v7 = vand.u32 4294901760, %v414_v39 }
  0x4c   : > { %4101 = vmatpush3.xpose.msra.mxu0 %v5412_v44  ;;  %4161 = vmatpush3.xpose.msra.mxu1 %v993_v47  ;;  %v5518_v47 = vand.u32 4294901760, %v408_v54  ;;  %v411_v44 = vsel %vm397_vm0, %v225_v42, 0  ;;  %8180 = vst [vmem:[#allocation45_spill] sm:$0xff] %v5534_v28  ;;  %v760_v13 = vsub.f32 %v5516_v34, %v5534_v28 }
  0x4d   : > { %4102 = vmatprep.subr.mxu0 %v5423_v41  ;;  %4162 = vmatprep.subr.mxu1 %v1112_v3  ;;  %v1132_v3 = vsub.f32 %v5488_v19, %v8179_v58  ;;  %v1014_v58 = vand.u32 4294901760, %v1013_v4  ;;  %8184 = vst [vmem:[#allocation48_spill] sm:$0xff] %v5547_v7  ;;  %v228_v4 = vld [vmem:[%s5364_s10 + $0x38] sm:$0xff] }
  0x4e   : > { %8177 = vst [vmem:[#allocation44_spill] sm:$0xff] %v5518_v47  ;;  %v5537_v48 = vsub.f32 %v408_v54, %v5518_v47  ;;  %v5550_v54 = vand.u32 4294901760, %v749_v37  ;;  %v5577_v28 = vand.u32 4294901760, %v760_v13 }
  0x4f   : > { %v1133_v42 = vand.u32 4294901760, %v1132_v3  ;;  %v420_v3 = vsel %vm397_vm0, %v228_v4, 0 }
  0x50   : > { %4103 = vmatpush3.xpose.msra.mxu0 %v5443_v52  ;;  %4163 = vmatpush3.xpose.msra.mxu1 %v1000_v60  ;;  %8181 = vst [vmem:[#allocation46_spill] sm:$0xff] %v5537_v48  ;;  %v5539_v60 = vand.u32 4294901760, %v411_v44  ;;  %8185 = vst [vmem:[#allocation49_spill] sm:$0xff] %v5550_v54  ;;  %v5555_v52 = vand.u32 4294901760, %v5537_v48 }
  0x51   : > { %4104 = vmatprep.subr.mxu0 %v5454_v5  ;;  %4164 = vmatprep.subr.mxu1 %v1119_v32  ;;  %v8183_v32 = vand.u32 4294901760, %v5512_v46  ;;  %8189 = vst [vmem:[#allocation53_spill] sm:$0xff] %v5577_v28 }
  0x52   : > { %8182 = vst [vmem:[#allocation47_spill] sm:$0xff] %v5539_v60  ;;  %8186 = vst [vmem:[#allocation50_spill] sm:$0xff] %v5555_v52 }
  0x53   : > { %v1020_v5 = vsub.f32 %v5512_v46, %v8183_v32  ;;  %v301_v32 = vld [vmem:[%s5566_s7] sm:$0xff] }
  0x54   : > { %4105 = vmatpush3.xpose.msra.mxu0 %v5481_v12  ;;  %4165 = vmatpush3.xpose.msra.mxu1 %v1007_v14  ;;  %v5558_v14 = vsub.f32 %v411_v44, %v5539_v60  ;;  %v5572_v44 = vsub.f32 %v414_v39, %v5547_v7  ;;  %v4949_v39 = vmov 0  }
  0x55   : > { %4166 = vmatprep.subr.mxu1 %v1126_v50  ;;  %4202 = vmatprep.subr.mxu0 %v5072_v21  ;;  %v417_v50 = vsel %vm397_vm0, %v227_v51, 0  ;;  %v1021_v37 = vand.u32 4294901760, %v1020_v5  ;;  %v771_v51 = vsub.f32 %v5537_v48, %v5555_v52  ;;  %v229_v5 = vld [vmem:[%s5364_s10 + $0x40] sm:$0xff] }
  0x56   : > { %8187 = vst [vmem:[#allocation51_spill] sm:$0xff] %v5558_v14  ;;  %8188 = vst [vmem:[#allocation52_spill] sm:$0xff] %v5572_v44  ;;  %4884 = vset.pattern.permute.xlu0 %v4949_v39  ;;  %v423_v13 = vsel %vm397_vm0, %v229_v5, 0  ;;  %4885 = vset.pattern.permute.xlu1 %v4949_v39 }
  0x57   : > { %4107 = vmatmul.mubr.f32.vlgmr.msra.gmra.mxu0 %v5474_v29  ;;  %v5582_v29 = vand.u32 4294901760, %v5558_v14  ;;  %319 = vperm.xlu0 %4884, %v301_v32   ;;  %v5595_v4 = vand.u32 4294901760, %v771_v51  ;;  %v230_v32 = vld [vmem:[%s5364_s10 + $0x48] sm:$0xff]  ;;  %v5611_v51 = vand.u32 4294901760, %v423_v13 }
  0x58   : > { %4167 = vmatpush3.xpose.msra.mxu1 %v1014_v58  ;;  %4203 = vmatpush3.xpose.msra.mxu0 %v5077_v23  ;;  %v5584_v58 = vand.u32 4294901760, %v417_v50 }
  0x59   : > { %4108 = vmatprep.mubr.f32.mxu0 %v5550_v54  ;;  %4168 = vmatprep.subr.mxu1 %v1133_v42  ;;  %8190 = vst [vmem:[#allocation54_spill] sm:$0xff] %v5582_v29  ;;  %v5590_v42 = vand.u32 4294901760, %v420_v3  ;;  %8193 = vst [vmem:[#allocation57_spill] sm:$0xff] %v5595_v4  ;;  %v782_v52 = vsub.f32 %v5558_v14, %v5582_v29 }
  0x5a   : > { %8191 = vst [vmem:[#allocation55_spill] sm:$0xff] %v5584_v58  ;;  %4204 = vmatprep.subr.mxu0 %v5081_v24  ;;  %8196 = vst [vmem:[#allocation60_spill] sm:$0xff] %v5611_v51 }
  0x5b   : > { %4109 = vmatmul.mubr.f32.gmra.mxu0 %v5550_v54  ;;  %8192 = vst [vmem:[#allocation56_spill] sm:$0xff] %v5590_v42  ;;  %v5600_v54 = vand.u32 4294901760, %v5572_v44 }
  0x5c   : > { %4169 = vmatpush3.xpose.msra.mxu1 %v1021_v37  ;;  %4205 = vmatpush3.xpose.msra.mxu0 %v5085_v26  ;;  %v5603_v37 = vsub.f32 %v417_v50, %v5584_v58  ;;  %v5615_v50 = vand.u32 4294901760, %v782_v52  ;;  %v231_v52 = vld [vmem:[%s5364_s10 + $0x50] sm:$0xff] }
  0x5d   : > { %4110 = vmatprep.mubr.f32.mxu0 %v5577_v28  ;;  %4206 = vmatprep.subr.mxu0 %v5101_v35  ;;  %8194 = vst [vmem:[#allocation58_spill] sm:$0xff] %v5600_v54  ;;  %v793_v5 = vsub.f32 %v5572_v44, %v5600_v54  ;;  %v5634_v54 = vsub.f32 %v423_v13, %v5611_v51  ;;  %v429_v13 = vsel %vm397_vm0, %v231_v52, 0 }
  0x5e   : > { %8195 = vst [vmem:[#allocation59_spill] sm:$0xff] %v5603_v37  ;;  %4266 = vmatprep.subr.mxu1 %v5047_v9  ;;  %8197 = vst [vmem:[#allocation61_spill] sm:$0xff] %v5615_v50  ;;  %v5620_v39 = vand.u32 4294901760, %v5603_v37 }
  0x5f   : > { %4111 = vmatmul.mubr.f32.gmra.mxu0 %v5577_v28  ;;  %4171 = vmatmul.mubr.f32.vlgmr.msra.gmra.mxu1 %v5417_v25  ;;  %v5623_v28 = vsub.f32 %v420_v3, %v5590_v42  ;;  %v426_v25 = vsel %vm397_vm0, %v230_v32, 0  ;;  %8200 = vst [vmem:[#allocation64_spill] sm:$0xff] %v5634_v54  ;;  %v5638_v3 = vand.u32 4294901760, %v793_v5  ;;  %v232_v5 = vld [vmem:[%s5364_s10 + $0x58] sm:$0xff] }
  0x60   : > { %4207 = vmatpush3.xpose.msra.mxu0 %v5114_v40  ;;  %4267 = vmatpush3.xpose.msra.mxu1 %v5049_v10  ;;  %8198 = vst [vmem:[#allocation62_spill] sm:$0xff] %v5620_v39  ;;  %v804_v32 = vsub.f32 %v5603_v37, %v5620_v39  ;;  %v5656_v39 = vand.u32 4294901760, %v5634_v54  ;;  %v432_v37 = vsel %vm397_vm0, %v232_v5, 0 }
  0x61   : > { %4112 = vmatprep.mubr.f32.mxu0 %v5595_v4  ;;  %4172 = vmatprep.mubr.f32.mxu1 %v5459_v45  ;;  %8199 = vst [vmem:[#allocation63_spill] sm:$0xff] %v5623_v28  ;;  %8201 = vst [vmem:[#allocation65_spill] sm:$0xff] %v5638_v3 }
  0x62   : > { %4208 = vmatprep.subr.mxu0 %v5144_v55  ;;  %4268 = vmatprep.subr.mxu1 %v5051_v11  ;;  %8204 = vst [vmem:[#allocation68_spill] sm:$0xff] %v5656_v39  ;;  %v5660_v29 = vand.u32 4294901760, %v804_v32  ;;  %v233_v32 = vld [vmem:[%s5364_s10 + $0x60] sm:$0xff] }
  0x63   : > { %4113 = vmatmul.mubr.f32.gmra.mxu0 %v5595_v4  ;;  %4173 = vmatmul.mubr.f32.gmra.mxu1 %v5459_v45  ;;  %v5643_v4 = vand.u32 4294901760, %v5623_v28  ;;  %v5645_v45 = vand.u32 4294901760, %v426_v25 }
  0x64   : > { %4209 = vmatpush3.xpose.msra.mxu0 %v5148_v57  ;;  %4269 = vmatpush3.xpose.msra.mxu1 %v5060_v15  ;;  %8205 = vst [vmem:[#allocation69_spill] sm:$0xff] %v5660_v29 }
  0x65   : > { %4114 = vmatprep.mubr.f32.mxu0 %v5615_v50  ;;  %4174 = vmatprep.mubr.f32.mxu1 %v5494_v59  ;;  %8202 = vst [vmem:[#allocation66_spill] sm:$0xff] %v5643_v4  ;;  %8203 = vst [vmem:[#allocation67_spill] sm:$0xff] %v5645_v45  ;;  %v815_v52 = vsub.f32 %v5623_v28, %v5643_v4  ;;  %v234_v28 = vld [vmem:[%s5364_s10 + $0x68] sm:$0xff] }
  0x66   : > { %4210 = vmatprep.subr.mxu0 %v5161_v63  ;;  %4270 = vmatprep.subr.mxu1 %v5069_v20 }
  0x67   : > { %4115 = vmatmul.mubr.f32.gmra.mxu0 %v5615_v50  ;;  %4175 = vmatmul.mubr.f32.gmra.mxu1 %v5494_v59  ;;  %v5665_v50 = vsub.f32 %v426_v25, %v5645_v45  ;;  %v5667_v59 = vand.u32 4294901760, %v429_v13  ;;  %v826_v25 = vsub.f32 %v5634_v54, %v5656_v39  ;;  %v5681_v4 = vand.u32 4294901760, %v815_v52 }
  0x68   : > { %4211 = vmatpush3.xpose.msra.mxu0 %v5171_v6  ;;  %4271 = vmatpush3.xpose.msra.mxu1 %v5074_v22  ;;  %v435_v39 = vsel %vm397_vm0, %v233_v32, 0  ;;  %v438_v52 = vsel %vm397_vm0, %v234_v28, 0 }
  0x69   : > { %4116 = vmatprep.mubr.f32.mxu0 %v5638_v3  ;;  %4176 = vmatprep.mubr.f32.mxu1 %v5518_v47  ;;  %8206 = vst [vmem:[#allocation70_spill] sm:$0xff] %v5665_v50  ;;  %8207 = vst [vmem:[#allocation71_spill] sm:$0xff] %v5667_v59  ;;  %v5684_v5 = vand.u32 4294901760, %v5665_v50  ;;  %v5721_v28 = vand.u32 4294901760, %v438_v52 }
  0x6a   : > { %4212 = vmatprep.subr.mxu0 %v5196_v27  ;;  %4272 = vmatprep.subr.mxu1 %v5093_v30  ;;  %8208 = vst [vmem:[#allocation72_spill] sm:$0xff] %v5681_v4 }
  0x6b   : > { %4117 = vmatmul.mubr.f32.gmra.mxu0 %v5638_v3  ;;  %4177 = vmatmul.mubr.f32.gmra.mxu1 %v5518_v47  ;;  %8209 = vst [vmem:[#allocation73_spill] sm:$0xff] %v5684_v5  ;;  %v5687_v3 = vsub.f32 %v429_v13, %v5667_v59  ;;  %v5689_v47 = vand.u32 4294901760, %v432_v37  ;;  %v5699_v13 = vand.u32 4294901760, %v826_v25  ;;  %v837_v54 = vsub.f32 %v5665_v50, %v5684_v5  ;;  %v235_v25 = vld [vmem:[%s5364_s10 + $0x70] sm:$0xff] }
  0x6c   : > { %4213 = vmatpush3.xpose.msra.mxu0 %v5203_v38  ;;  %4273 = vmatpush3.xpose.msra.mxu1 %v5097_v33  ;;  %8216 = vst [vmem:[#allocation80_spill] sm:$0xff] %v5721_v28 }
  0x6d   : > { %4118 = vmatprep.mubr.f32.mxu0 %v5660_v29  ;;  %4178 = vmatprep.mubr.f32.mxu1 %v5539_v60  ;;  %8210 = vst [vmem:[#allocation74_spill] sm:$0xff] %v5687_v3  ;;  %8211 = vst [vmem:[#allocation75_spill] sm:$0xff] %v5689_v47  ;;  %v5707_v32 = vand.u32 4294901760, %v5687_v3  ;;  %v5726_v5 = vand.u32 4294901760, %v837_v54  ;;  %v8220_v54 = vld [vmem:[#allocation16_spill] sm:$0xff] }
  0x6e   : > { %4214 = vmatprep.subr.mxu0 %v5215_v49  ;;  %4274 = vmatprep.subr.mxu1 %v5123_v43  ;;  %8212 = vst [vmem:[#allocation76_spill] sm:$0xff] %v5699_v13 }
  0x6f   : > { %4119 = vmatmul.mubr.f32.gmra.mxu0 %v5660_v29  ;;  %4179 = vmatmul.mubr.f32.gmra.mxu1 %v5539_v60  ;;  %8213 = vst [vmem:[#allocation77_spill] sm:$0xff] %v5707_v32  ;;  %v5710_v29 = vsub.f32 %v432_v37, %v5689_v47  ;;  %v5712_v60 = vand.u32 4294901760, %v435_v39  ;;  %v441_v37 = vsel %vm397_vm0, %v235_v25, 0  ;;  %8217 = vst [vmem:[#allocation81_spill] sm:$0xff] %v5726_v5  ;;  %v8221_v25 = vld [vmem:[#allocation7_spill] sm:$0xff] }
  0x70   : > { %4215 = vmatpush3.xpose.msra.mxu0 %v5225_v56  ;;  %4275 = vmatpush3.xpose.msra.mxu1 %v5138_v53  ;;  %v848_v50 = vsub.f32 %v5687_v3, %v5707_v32  ;;  %v5743_v32 = vand.u32 4294901760, %v441_v37 }
  0x71   : > { %4120 = vmatprep.mubr.f32.mxu0 %v5681_v4  ;;  %4180 = vmatprep.mubr.f32.mxu1 %v5547_v7  ;;  %8214 = vst [vmem:[#allocation78_spill] sm:$0xff] %v5710_v29  ;;  %8215 = vst [vmem:[#allocation79_spill] sm:$0xff] %v5712_v60 }
  0x72   : > { %4216 = vmatprep.subr.mxu0 %v5238_v0  ;;  %4276 = vmatprep.subr.mxu1 %v5157_v61  ;;  %8222 = vst [vmem:[#allocation84_spill] sm:$0xff] %v5743_v32 }
  0x73   : > { %4121 = vmatmul.mubr.f32.gmra.mxu0 %v5681_v4  ;;  %4181 = vmatmul.mubr.f32.gmra.mxu1 %v5547_v7  ;;  %v5731_v4 = vand.u32 4294901760, %v5710_v29  ;;  %v5734_v7 = vsub.f32 %v435_v39, %v5712_v60  ;;  %v5748_v39 = vand.u32 4294901760, %v848_v50  ;;  %v8229_v50 = vld [vmem:[#allocation9_spill] sm:$0xff] }
  0x74   : > { %4217 = vmatpush3.xpose.msra.mxu0 %v5257_v31  ;;  %4277 = vmatpush3.xpose.msra.mxu1 %v5165_v2  ;;  %v236_v2 = vld [vmem:[%s5364_s10 + $0x78] sm:$0xff] }
  0x75   : > { %4122 = vmatprep.mubr.f32.mxu0 %v5699_v13  ;;  %4182 = vmatprep.mubr.f32.mxu1 %v5584_v58  ;;  %8218 = vst [vmem:[#allocation82_spill] sm:$0xff] %v5731_v4  ;;  %8219 = vst [vmem:[#allocation83_spill] sm:$0xff] %v5734_v7  ;;  %v444_v3 = vsel %vm397_vm0, %v236_v2, 0  ;;  %v8228_v2 = vld [vmem:[#allocation19_spill] sm:$0xff] }
  0x76   : > { %4218 = vmatprep.subr.mxu0 %v5268_v62  ;;  %4278 = vmatprep.subr.mxu1 %v5183_v16  ;;  %8223 = vst [vmem:[#allocation85_spill] sm:$0xff] %v5748_v39  ;;  %v859_v16 = vsub.f32 %v5710_v29, %v5731_v4  ;;  %v5764_v62 = vand.u32 4294901760, %v444_v3 }
  0x77   : > { %4123 = vmatmul.mubr.f32.gmra.mxu0 %v5699_v13  ;;  %4183 = vmatmul.mubr.f32.gmra.mxu1 %v5584_v58  ;;  %v5753_v13 = vand.u32 4294901760, %v5734_v7  ;;  %v5756_v58 = vsub.f32 %v438_v52, %v5721_v28 }
  0x78   : > { %4219 = vmatpush3.xpose.msra.mxu0 %v8220_v54  ;;  %4279 = vmatpush3.xpose.msra.mxu1 %v8221_v25  ;;  %v8226_v25 = vld [vmem:[#allocation17_spill] sm:$0xff]  ;;  %v8227_v54 = vld [vmem:[#allocation8_spill] sm:$0xff]  ;;  %v5768_v52 = vand.u32 4294901760, %v859_v16  ;;  %v8237_v16 = vld [vmem:[#allocation11_spill] sm:$0xff] }
  0x79   : > { %4124 = vmatprep.mubr.f32.mxu0 %v5726_v5  ;;  %4184 = vmatprep.mubr.f32.mxu1 %v5590_v42  ;;  %8224 = vst [vmem:[#allocation86_spill] sm:$0xff] %v5753_v13  ;;  %8225 = vst [vmem:[#allocation87_spill] sm:$0xff] %v5756_v58  ;;  %v870_v4 = vsub.f32 %v5734_v7, %v5753_v13  ;;  %v5773_v29 = vand.u32 4294901760, %v5756_v58 }
  0x7a   : > { %4220 = vmatprep.subr.mxu0 %v8226_v25  ;;  %4280 = vmatprep.subr.mxu1 %v8227_v54  ;;  %8230 = vst [vmem:[#allocation17_spill] sm:$0xff] %v5764_v62  ;;  %8231 = vst [vmem:[#allocation8_spill] sm:$0xff] %v5768_v52 }
  0x7b   : > { %4125 = vmatmul.mubr.f32.gmra.mxu0 %v5726_v5  ;;  %4185 = vmatmul.mubr.f32.gmra.mxu1 %v5590_v42  ;;  %8232 = vst [vmem:[#allocation88_spill] sm:$0xff] %v5773_v29  ;;  %v5776_v5 = vsub.f32 %v441_v37, %v5743_v32  ;;  %v8234_v42 = vld [vmem:[#allocation20_spill] sm:$0xff]  ;;  %v5786_v13 = vand.u32 4294901760, %v870_v4  ;;  %v881_v37 = vsub.f32 %v5756_v58, %v5773_v29  ;;  %v8244_v4 = vld [vmem:[#allocation14_spill] sm:$0xff] }
  0x7c   : > { %4221 = vmatpush3.xpose.msra.mxu0 %v8228_v2  ;;  %4281 = vmatpush3.xpose.msra.mxu1 %v8229_v50  ;;  %v8235_v50 = vld [vmem:[#allocation10_spill] sm:$0xff]  ;;  %v8236_v2 = vld [vmem:[#allocation23_spill] sm:$0xff] }
  0x7d   : > { %4126 = vmatprep.mubr.f32.mxu0 %v5748_v39  ;;  %4186 = vmatprep.mubr.f32.mxu1 %v5611_v51  ;;  %8233 = vst [vmem:[#allocation89_spill] sm:$0xff] %v5776_v5  ;;  %8238 = vst [vmem:[#allocation20_spill] sm:$0xff] %v5786_v13  ;;  %v5791_v7 = vand.u32 4294901760, %v5776_v5  ;;  %v5804_v29 = vand.u32 4294901760, %v881_v37 }
  0x7e   : > { %4222 = vmatprep.subr.mxu0 %v8234_v42  ;;  %4282 = vmatprep.subr.mxu1 %v8235_v50 }
  0x7f   : > { %4127 = vmatmul.mubr.f32.gmra.mxu0 %v5748_v39  ;;  %4187 = vmatmul.mubr.f32.gmra.mxu1 %v5611_v51  ;;  %8239 = vst [vmem:[#allocation10_spill] sm:$0xff] %v5791_v7  ;;  %v5794_v39 = vsub.f32 %v444_v3, %v5764_v62  ;;  %v8241_v51 = vld [vmem:[#allocation25_spill] sm:$0xff]  ;;  %v892_v3 = vsub.f32 %v5776_v5, %v5791_v7 }
  0x80   : > { %4223 = vmatpush3.xpose.msra.mxu0 %v8236_v2  ;;  %4283 = vmatpush3.xpose.msra.mxu1 %v8237_v16  ;;  %v8242_v2 = vld [vmem:[#allocation12_spill] sm:$0xff]  ;;  %v8243_v16 = vld [vmem:[#allocation26_spill] sm:$0xff]  ;;  %8245 = vst [vmem:[#allocation25_spill] sm:$0xff] %v5804_v29  ;;  %v8250_v5 = vld [vmem:[#allocation21_spill] sm:$0xff] }
  0x81   : > { %4128 = vmatprep.mubr.f32.mxu0 %v5768_v52  ;;  %4188 = vmatprep.mubr.f32.mxu1 %v5645_v45  ;;  %8240 = vst [vmem:[#allocation90_spill] sm:$0xff] %v5794_v39  ;;  %v5809_v58 = vand.u32 4294901760, %v5794_v39  ;;  %v5819_v37 = vand.u32 4294901760, %v892_v3 }
  0x82   : > { %4224 = vmatprep.subr.mxu0 %v8241_v51  ;;  %4284 = vmatprep.subr.mxu1 %v8242_v2 }
  0x83   : > { %4129 = vmatmul.mubr.f32.gmra.mxu0 %v5768_v52  ;;  %4189 = vmatmul.mubr.f32.gmra.mxu1 %v5645_v45  ;;  %8246 = vst [vmem:[#allocation12_spill] sm:$0xff] %v5809_v58  ;;  %v8247_v52 = vld [vmem:[#allocation15_spill] sm:$0xff]  ;;  %v8248_v45 = vld [vmem:[#allocation18_spill] sm:$0xff]  ;;  %8249 = vst [vmem:[#allocation26_spill] sm:$0xff] %v5819_v37  ;;  %v903_v7 = vsub.f32 %v5794_v39, %v5809_v58 }
  0x84   : > { %4225 = vmatpush3.xpose.msra.mxu0 %v8243_v16  ;;  %4285 = vmatpush3.xpose.msra.mxu1 %v8244_v4  ;;  %v8254_v58 = vld [vmem:[#allocation24_spill] sm:$0xff] }
  0x85   : > { %4130 = vmatprep.mubr.f32.mxu0 %v5786_v13  ;;  %4190 = vmatprep.mubr.f32.mxu1 %v5667_v59  ;;  %v5831_v3 = vand.u32 4294901760, %v903_v7  ;;  %v8256_v7 = vld [vmem:[#allocation28_spill] sm:$0xff] }
  0x86   : > { %4226 = vmatprep.subr.mxu0 %v5394_v17  ;;  %4286 = vmatprep.subr.mxu1 %v8247_v52 }
  0x87   : > { %4131 = vmatmul.mubr.f32.gmra.mxu0 %v5786_v13  ;;  %4191 = vmatmul.mubr.f32.gmra.mxu1 %v5667_v59  ;;  %v8251_v13 = vld [vmem:[#allocation22_spill] sm:$0xff]  ;;  %8252 = vst [vmem:[#allocation14_spill] sm:$0xff] %v5831_v3  ;;  %v8253_v59 = vld [vmem:[#allocation36_spill] sm:$0xff] }
  0x88   : > { %4227 = vmatpush3.xpose.msra.mxu0 %v5415_v18  ;;  %4287 = vmatpush3.xpose.msra.mxu1 %v8248_v45 }
  0x89   : > { %4132 = vmatprep.mubr.f32.mxu0 %v5804_v29  ;;  %4192 = vmatprep.mubr.f32.mxu1 %v5689_v47 }
  0x8a   : > { %4228 = vmatprep.subr.mxu0 %v5430_v36  ;;  %4288 = vmatprep.subr.mxu1 %v8250_v5 }
  0x8b   : > { %4133 = vmatmul.mubr.f32.gmra.mxu0 %v5804_v29  ;;  %4193 = vmatmul.mubr.f32.gmra.mxu1 %v5689_v47  ;;  %v8255_v29 = vld [vmem:[#allocation27_spill] sm:$0xff]  ;;  %v8259_v47 = vand.u32 4294901760, %v5072_v21  ;;  %v8265_v21 = vand.u32 4294901760, %v5085_v26  ;;  %v8269_v26 = vld [vmem:[#allocation41_spill] sm:$0xff] }
  0x8c   : > { %4229 = vmatpush3.xpose.msra.mxu0 %v5447_v1  ;;  %4289 = vmatpush3.xpose.msra.mxu1 %v8251_v13 }
  0x8d   : > { %4134 = vmatprep.mubr.f32.mxu0 %v5819_v37  ;;  %4194 = vmatprep.mubr.f32.mxu1 %v5712_v60 }
  0x8e   : > { %4230 = vmatprep.subr.mxu0 %v8253_v59  ;;  %4290 = vmatprep.subr.mxu1 %v8254_v58 }
  0x8f   : > { %4135 = vmatmul.mubr.f32.gmra.mxu0 %v5819_v37  ;;  %4195 = vmatmul.mubr.f32.gmra.mxu1 %v5712_v60  ;;  %v8257_v37 = vld [vmem:[#allocation29_spill] sm:$0xff]  ;;  %v8258_v60 = vld [vmem:[#allocation32_spill] sm:$0xff] }
  0x90   : > { %4231 = vmatpush3.xpose.msra.mxu0 %v5477_v8  ;;  %4291 = vmatpush3.xpose.msra.mxu1 %v8255_v29 }
  0x91   : > { %4136 = vmatprep.mubr.f32.mxu0 %v5831_v3  ;;  %4196 = vmatprep.mubr.f32.mxu1 %v5721_v28 }
  0x92   : > { %4232 = vmatprep.subr.mxu0 %v5488_v19  ;;  %4292 = vmatprep.subr.mxu1 %v8256_v7 }
  0x93   : > { %4137 = vmatmul.mubr.f32.gmra.mxu0 %v5831_v3  ;;  %4197 = vmatmul.mubr.f32.gmra.mxu1 %v5721_v28  ;;  %v8260_v3 = vld [vmem:[#allocation33_spill] sm:$0xff]  ;;  %v8261_v28 = vand.u32 4294901760, %v5077_v23  ;;  %v8266_v23 = vld [vmem:[#allocation34_spill] sm:$0xff] }
  0x94   : > { %4233 = vmatpush3.xpose.msra.mxu0 %v5512_v46  ;;  %4293 = vmatpush3.xpose.msra.mxu1 %v8257_v37  ;;  %v8262_v37 = vld [vmem:[#allocation39_spill] sm:$0xff] }
  0x95   : > { %4198 = vmatprep.mubr.f32.mxu1 %v5743_v32  ;;  %4234 = vmatprep.mubr.f32.mxu0 %v8258_v60  ;;  %v8263_v46 = vld [vmem:[#allocation35_spill] sm:$0xff] }
  0x96   : > { %4294 = vmatprep.subr.mxu1 %v5423_v41  ;;  %4330 = vmatprep.subr.mxu0 %v8259_v47  ;;  %v8264_v41 = vand.u32 4294901760, %v5081_v24  ;;  %v8267_v47 = vand.u32 4294901760, %v5101_v35  ;;  %v8268_v24 = vand.u32 4294901760, %v5114_v40  ;;  %v8271_v35 = vand.u32 4294901760, %v5148_v57 }
  0x97   : > { %4199 = vmatmul.mubr.f32.gmra.mxu1 %v5743_v32  ;;  %4235 = vmatmul.mubr.f32.vlgmr.msra.gmra.mxu0 %v8258_v60  ;;  %v8273_v40 = vand.u32 4294901760, %v5161_v63  ;;  %v8276_v57 = vand.u32 4294901760, %v5196_v27  ;;  %v8277_v63 = vand.u32 4294901760, %v5203_v38  ;;  %v8280_v27 = vand.u32 4294901760, %v5215_v49 }
  0x98   : > { %4295 = vmatpush3.xpose.msra.mxu1 %v8260_v3  ;;  %4331 = vmatpush3.xpose.msra.mxu0 %v8261_v28  ;;  %v8281_v38 = vand.u32 4294901760, %v5225_v56  ;;  %v8283_v28 = vld [vmem:[#allocation58_spill] sm:$0xff]  ;;  %v8284_v49 = vand.u32 4294901760, %v5238_v0  ;;  %v8285_v56 = vand.u32 4294901760, %v5257_v31  ;;  %v8289_v0 = vld [vmem:[#allocation13_spill] sm:$0xff]  ;;  %v8292_v31 = vld [vmem:[#allocation16_spill] sm:$0xff] }
  0x99   : > { %4200 = vmatprep.mubr.f32.mxu1 %v5764_v62  ;;  %4236 = vmatprep.mubr.f32.mxu0 %v8262_v37 }
  0x9a   : > { %4296 = vmatprep.subr.mxu1 %v8263_v46  ;;  %4332 = vmatprep.subr.mxu0 %v8264_v41  ;;  %v8270_v41 = vand.u32 4294901760, %v5144_v55  ;;  %v8274_v55 = vand.u32 4294901760, %v5171_v6  ;;  %v8279_v6 = vld [vmem:[#allocation54_spill] sm:$0xff] }
  0x9b   : > { %4201 = vmatmul.mubr.f32.gmra.mxu1 %v5764_v62  ;;  %4237 = vmatmul.mubr.f32.gmra.mxu0 %v8262_v37 }
  0x9c   : > { %4297 = vmatpush3.xpose.msra.mxu1 %v5481_v12  ;;  %4333 = vmatpush3.xpose.msra.mxu0 %v8265_v21  ;;  %v8287_v21 = vld [vmem:[#allocation64_spill] sm:$0xff] }
  0x9d   : > { %4238 = vmatprep.mubr.f32.mxu0 %v5516_v34  ;;  %4298 = vmatprep.mubr.f32.mxu1 %v8266_v23 }
  0x9e   : > { %4334 = vmatprep.subr.mxu0 %v8267_v47  ;;  %4394 = vmatprep.subr.mxu1 %v5047_v9  ;;  %v302_v9 = vld [vmem:[%s5566_s7 + $0x8] sm:$0xff] }
  0x9f   : > { %4239 = vmatmul.mubr.f32.gmra.mxu0 %v5516_v34  ;;  %4299 = vmatmul.mubr.f32.vlgmr.msra.gmra.mxu1 %v8266_v23  ;;  %v8288_v47 = vld [vmem:[#allocation62_spill] sm:$0xff]  ;;  %v8360_v34 = vld [vmem:[#allocation56_spill] sm:$0xff] }
  0xa0   : > { %4335 = vmatpush3.xpose.msra.mxu0 %v8268_v24  ;;  %4395 = vmatpush3.xpose.msra.mxu1 %v5049_v10  ;;  %v8272_v10 = vld [vmem:[#allocation45_spill] sm:$0xff]  ;;  %v8290_v24 = vand.u32 4294901760, %v8289_v0 }
  0xa1   : > { %4240 = vmatprep.mubr.f32.mxu0 %v5537_v48  ;;  %4300 = vmatprep.mubr.f32.mxu1 %v8269_v26  ;;  %v8308_v0 = vld [vmem:[#allocation73_spill] sm:$0xff] }
  0xa2   : > { %4336 = vmatprep.subr.mxu0 %v8270_v41  ;;  %4396 = vmatprep.subr.mxu1 %v5051_v11  ;;  %v303_v11 = vld [vmem:[%s5566_s7 + $0x10] sm:$0xff]  ;;  %v8291_v41 = vld [vmem:[#allocation6_spill] sm:$0xff] }
  0xa3   : > { %4241 = vmatmul.mubr.f32.gmra.mxu0 %v5537_v48  ;;  %4301 = vmatmul.mubr.f32.gmra.mxu1 %v8269_v26 }
  0xa4   : > { %4337 = vmatpush3.xpose.msra.mxu0 %v8271_v35  ;;  %4397 = vmatpush3.xpose.msra.mxu1 %v5060_v15  ;;  %v8275_v15 = vld [vmem:[#allocation50_spill] sm:$0xff]  ;;  %v8294_v35 = vld [vmem:[#allocation7_spill] sm:$0xff] }
  0xa5   : > { %4242 = vmatprep.mubr.f32.mxu0 %v5558_v14  ;;  %4302 = vmatprep.mubr.f32.mxu1 %v8272_v10 }
  0xa6   : > { %324 = vperm.xlu0 %4884, %v302_v9   ;;  %4338 = vmatprep.subr.mxu0 %v8273_v40  ;;  %v8293_v9 = vand.u32 4294901760, %v8292_v31  ;;  %v8295_v40 = vld [vmem:[#allocation70_spill] sm:$0xff]  ;;  %v300_v31 = vld [vmem:[%s7771_s1 + $0x1f8] sm:$0xff] }
  0xa7   : > { %4243 = vmatmul.mubr.f32.gmra.mxu0 %v5558_v14  ;;  %4303 = vmatmul.mubr.f32.gmra.mxu1 %v8272_v10 }
  0xa8   : > { %4398 = vmatprep.subr.mxu1 %v5069_v20  ;;  %4339 = vmatpush3.xpose.msra.mxu0 %v8274_v55  ;;  %v304_v20 = vld [vmem:[%s5566_s7 + $0x18] sm:$0xff]  ;;  %v8297_v55 = vand.u32 4294901760, %v8226_v25  ;;  %v8303_v25 = vand.u32 4294901760, %v8234_v42  ;;  %v8309_v42 = vand.u32 4294901760, %v8241_v51  ;;  %v8313_v51 = vand.u32 4294901760, %v5394_v17 }
  0xa9   : > { %4399 = vmatpush3.xpose.msra.mxu1 %v5074_v22  ;;  %4244 = vmatprep.mubr.f32.mxu0 %v5572_v44  ;;  %v8278_v22 = vld [vmem:[#allocation59_spill] sm:$0xff]  ;;  %v284_v17 = vld [vmem:[%s7771_s1 + $0x178] sm:$0xff] }
  0xaa   : > { %4304 = vmatprep.mubr.f32.mxu1 %v8275_v15  ;;  %329 = vperm.xlu1 %4885, %v303_v11   ;;  %v8296_v11 = vld [vmem:[#allocation66_spill] sm:$0xff] }
  0xab   : > { %4245 = vmatmul.mubr.f32.gmra.mxu0 %v5572_v44  ;;  %4305 = vmatmul.mubr.f32.gmra.mxu1 %v8275_v15 }
  0xac   : > { %4340 = vmatprep.subr.mxu0 %v8276_v57  ;;  %4400 = vmatprep.subr.mxu1 %v5093_v30  ;;  %v305_v30 = vld [vmem:[%s5566_s7 + $0x20] sm:$0xff]  ;;  %v308_v57 = vld [vmem:[%s5566_s7 + $0x38] sm:$0xff] }
  0xad   : > { %4341 = vmatpush3.xpose.msra.mxu0 %v8277_v63  ;;  %4401 = vmatpush3.xpose.msra.mxu1 %v5097_v33  ;;  %v8282_v33 = vld [vmem:[#allocation63_spill] sm:$0xff] }
  0xae   : > { %4246 = vmatprep.mubr.f32.mxu0 %v8278_v22  ;;  %4306 = vmatprep.mubr.f32.mxu1 %v8279_v6 }
  0xaf   : > { %334 = vperm.xlu1 %4885, %v304_v20   ;;  %4247 = vmatmul.mubr.f32.gmra.mxu0 %v8278_v22  ;;  %v8298_v20 = vld [vmem:[#allocation19_spill] sm:$0xff] }
  0xb0   : > { %4307 = vmatmul.mubr.f32.gmra.mxu1 %v8279_v6  ;;  %4342 = vmatprep.subr.mxu0 %v8280_v27  ;;  %v8299_v63 = vand.u32 4294901760, %v8298_v20  ;;  %v8300_v27 = vld [vmem:[#allocation9_spill] sm:$0xff]  ;;  %v275_v22 = vld [vmem:[%s7771_s1 + $0x130] sm:$0xff] }
  0xb1   : > { %4402 = vmatprep.subr.mxu1 %v5123_v43  ;;  %4343 = vmatpush3.xpose.msra.mxu0 %v8281_v38  ;;  %v306_v43 = vld [vmem:[%s5566_s7 + $0x28] sm:$0xff]  ;;  %v8302_v38 = vld [vmem:[#allocation68_spill] sm:$0xff]  ;;  %v8319_v20 = vld [vmem:[#allocation89_spill] sm:$0xff] }
  0xb2   : > { %4403 = vmatpush3.xpose.msra.mxu1 %v5138_v53  ;;  %4248 = vmatprep.mubr.f32.mxu0 %v8282_v33  ;;  %v8286_v53 = vld [vmem:[#allocation5_spill] sm:$0xff] }
  0xb3   : > { %4308 = vmatprep.mubr.f32.mxu1 %v8283_v28  ;;  %339 = vperm.xlu0 %4884, %v305_v30   ;;  %v8301_v30 = vld [vmem:[#allocation74_spill] sm:$0xff] }
  0xb4   : > { %4249 = vmatmul.mubr.f32.gmra.mxu0 %v8282_v33  ;;  %4309 = vmatmul.mubr.f32.gmra.mxu1 %v8283_v28  ;;  %v8347_v33 = vld [vmem:[#allocation48_spill] sm:$0xff] }
  0xb5   : > { %4344 = vmatprep.subr.mxu0 %v8284_v49  ;;  %4404 = vmatprep.subr.mxu1 %v5157_v61  ;;  %v307_v61 = vld [vmem:[%s5566_s7 + $0x30] sm:$0xff] }
  0xb6   : > { %4345 = vmatpush3.xpose.msra.mxu0 %v8285_v56  ;;  %4405 = vmatpush3.xpose.msra.mxu1 %v8286_v53  ;;  %v8304_v49 = vld [vmem:[#allocation23_spill] sm:$0xff]  ;;  %v8307_v53 = vld [vmem:[#allocation78_spill] sm:$0xff] }
  0xb7   : > { %4250 = vmatprep.mubr.f32.mxu0 %v8287_v21  ;;  %4310 = vmatprep.mubr.f32.mxu1 %v8288_v47  ;;  %v8306_v56 = vld [vmem:[#allocation11_spill] sm:$0xff] }
  0xb8   : > { %344 = vperm.xlu1 %4885, %v306_v43   ;;  %4251 = vmatmul.mubr.f32.gmra.mxu0 %v8287_v21  ;;  %v8305_v43 = vand.u32 4294901760, %v8304_v49  ;;  %v282_v49 = vld [vmem:[%s7771_s1 + $0x168] sm:$0xff] }
  0xb9   : > { %4311 = vmatmul.mubr.f32.gmra.mxu1 %v8288_v47  ;;  %4346 = vmatprep.subr.mxu0 %v8290_v24  ;;  %v8310_v24 = vand.u32 4294901760, %v8243_v16  ;;  %v8314_v16 = vand.u32 4294901760, %v5415_v18  ;;  %v299_v18 = vld [vmem:[%s7771_s1 + $0x1f0] sm:$0xff] }
  0xba   : > { %4406 = vmatprep.subr.mxu1 %v8291_v41  ;;  %4347 = vmatpush3.xpose.msra.mxu0 %v8293_v9  ;;  %v8312_v41 = vld [vmem:[#allocation77_spill] sm:$0xff]  ;;  %v8316_v9 = vld [vmem:[#allocation82_spill] sm:$0xff] }
  0xbb   : > { %4407 = vmatpush3.xpose.msra.mxu1 %v8294_v35  ;;  %4252 = vmatprep.mubr.f32.mxu0 %v8295_v40  ;;  %v636_v35 = vsel %vm397_vm0, %v300_v31, 0 }
  0xbc   : > { %4312 = vmatprep.mubr.f32.mxu1 %v8296_v11  ;;  %349 = vperm.xlu0 %4884, %v307_v61   ;;  %v8311_v61 = vld [vmem:[#allocation83_spill] sm:$0xff] }
  0xbd   : > { %4253 = vmatmul.mubr.f32.gmra.mxu0 %v8295_v40  ;;  %4313 = vmatmul.mubr.f32.gmra.mxu1 %v8296_v11  ;;  %v8343_v40 = vld [vmem:[#allocation47_spill] sm:$0xff] }
  0xbe   : > { %4348 = vmatprep.subr.mxu0 %v8297_v55  ;;  %4408 = vmatprep.subr.mxu1 %v8227_v54  ;;  %v309_v54 = vld [vmem:[%s5566_s7 + $0x40] sm:$0xff]  ;;  %v8318_v55 = vand.u32 4294901760, %v5447_v1  ;;  %v8321_v1 = vand.u32 4294901760, %v8253_v59 }
  0xbf   : > { %4349 = vmatpush3.xpose.msra.mxu0 %v8299_v63  ;;  %4409 = vmatpush3.xpose.msra.mxu1 %v8300_v27  ;;  %v8320_v63 = vld [vmem:[#allocation86_spill] sm:$0xff]  ;;  %v6016_v27 = vand.u32 4294901760, %v636_v35 }
  0xc0   : > { %4254 = vmatprep.mubr.f32.mxu0 %v8301_v30  ;;  %4314 = vmatprep.mubr.f32.mxu1 %v8302_v38 }
  0xc1   : > { %354 = vperm.xlu1 %4885, %v308_v57   ;;  %4255 = vmatmul.mubr.f32.gmra.mxu0 %v8301_v30  ;;  %v588_v57 = vsel %vm397_vm0, %v284_v17, 0  ;;  %v281_v17 = vld [vmem:[%s7771_s1 + $0x160] sm:$0xff] }
  0xc2   : > { %4315 = vmatmul.mubr.f32.gmra.mxu1 %v8302_v38  ;;  %4350 = vmatprep.subr.mxu0 %v8303_v25  ;;  %v6022_v25 = vand.u32 4294901760, %v588_v57 }
  0xc3   : > { %4410 = vmatprep.subr.mxu1 %v8235_v50  ;;  %4351 = vmatpush3.xpose.msra.mxu0 %v8305_v43  ;;  %v310_v50 = vld [vmem:[%s5566_s7 + $0x48] sm:$0xff]  ;;  %v8322_v43 = vand.u32 4294901760, %v5477_v8  ;;  %v582_v8 = vsel %vm397_vm0, %v282_v49, 0  ;;  %v8330_v49 = vld [vmem:[#allocation31_spill] sm:$0xff] }
  0xc4   : > { %4411 = vmatpush3.xpose.msra.mxu1 %v8306_v56  ;;  %4256 = vmatprep.mubr.f32.mxu0 %v8307_v53 }
  0xc5   : > { %4316 = vmatprep.mubr.f32.mxu1 %v8308_v0  ;;  %359 = vperm.xlu0 %4884, %v309_v54   ;;  %v298_v54 = vld [vmem:[%s7771_s1 + $0x1e8] sm:$0xff] }
  0xc6   : > { %4257 = vmatmul.mubr.f32.gmra.mxu0 %v8307_v53  ;;  %4317 = vmatmul.mubr.f32.gmra.mxu1 %v8308_v0 }
  0xc7   : > { %4352 = vmatprep.subr.mxu0 %v8309_v42  ;;  %4412 = vmatprep.subr.mxu1 %v8242_v2  ;;  %v311_v2 = vld [vmem:[%s5566_s7 + $0x50] sm:$0xff]  ;;  %v8323_v42 = vld [vmem:[#allocation88_spill] sm:$0xff] }
  0xc8   : > { %4353 = vmatpush3.xpose.msra.mxu0 %v8310_v24  ;;  %4413 = vmatpush3.xpose.msra.mxu1 %v8244_v4  ;;  %v8315_v4 = vld [vmem:[#allocation87_spill] sm:$0xff]  ;;  %v6041_v24 = vsub.f32 %v636_v35, %v6016_v27  ;;  %v8328_v35 = vld [vmem:[#allocation10_spill] sm:$0xff] }
  0xc9   : > { %4258 = vmatprep.mubr.f32.mxu0 %v8311_v61  ;;  %4318 = vmatprep.mubr.f32.mxu1 %v8312_v41 }
  0xca   : > { %364 = vperm.xlu1 %4885, %v310_v50   ;;  %4259 = vmatmul.mubr.f32.gmra.mxu0 %v8311_v61  ;;  %v630_v50 = vsel %vm397_vm0, %v298_v54, 0  ;;  %v296_v54 = vld [vmem:[%s7771_s1 + $0x1d8] sm:$0xff] }
  0xcb   : > { %4319 = vmatmul.mubr.f32.gmra.mxu1 %v8312_v41  ;;  %4354 = vmatprep.subr.mxu0 %v8313_v51  ;;  %v8324_v51 = vand.u32 4294901760, %v5488_v19  ;;  %v6067_v19 = vand.u32 4294901760, %v630_v50 }
  0xcc   : > { %4414 = vmatprep.subr.mxu1 %v8247_v52  ;;  %4355 = vmatpush3.xpose.msra.mxu0 %v8314_v16  ;;  %v312_v52 = vld [vmem:[%s5566_s7 + $0x58] sm:$0xff]  ;;  %v297_v16 = vld [vmem:[%s7771_s1 + $0x1e0] sm:$0xff] }
  0xcd   : > { %4415 = vmatpush3.xpose.msra.mxu1 %v8248_v45  ;;  %4260 = vmatprep.mubr.f32.mxu0 %v8315_v4  ;;  %v8317_v45 = vand.u32 4294901760, %v5430_v36  ;;  %v633_v36 = vsel %vm397_vm0, %v299_v18, 0  ;;  %v8325_v18 = vld [vmem:[#allocation42_spill] sm:$0xff] }
  0xce   : > { %4320 = vmatprep.mubr.f32.mxu1 %v8316_v9  ;;  %369 = vperm.xlu0 %4884, %v311_v2   ;;  %v6033_v56 = vand.u32 4294901760, %v633_v36  ;;  %v314_v2 = vld [vmem:[%s5566_s7 + $0x68] sm:$0xff] }
  0xcf   : > { %4261 = vmatmul.mubr.f32.gmra.mxu0 %v8315_v4  ;;  %4321 = vmatmul.mubr.f32.gmra.mxu1 %v8316_v9 }
  0xd0   : > { %4356 = vmatprep.subr.mxu0 %v8317_v45  ;;  %4416 = vmatprep.subr.mxu1 %v8250_v5  ;;  %v283_v5 = vld [vmem:[%s7771_s1 + $0x170] sm:$0xff]  ;;  %v6059_v31 = vsub.f32 %v633_v36, %v6033_v56  ;;  %v8326_v45 = vand.u32 4294901760, %v8325_v18 }
  0xd1   : > { %4357 = vmatpush3.xpose.msra.mxu0 %v8318_v55  ;;  %4417 = vmatpush3.xpose.msra.mxu1 %v8251_v13  ;;  %v313_v13 = vld [vmem:[%s5566_s7 + $0x60] sm:$0xff]  ;;  %v585_v59 = vsel %vm397_vm0, %v283_v5, 0  ;;  %v8329_v55 = vld [vmem:[#allocation30_spill] sm:$0xff] }
  0xd2   : > { %4262 = vmatprep.mubr.f32.mxu0 %v8319_v20  ;;  %4322 = vmatprep.mubr.f32.mxu1 %v8320_v63 }
  0xd3   : > { %374 = vperm.xlu1 %4885, %v312_v52   ;;  %4263 = vmatmul.mubr.f32.gmra.mxu0 %v8319_v20  ;;  %v8327_v52 = vld [vmem:[#allocation29_spill] sm:$0xff] }
  0xd4   : > { %4323 = vmatmul.mubr.f32.gmra.mxu1 %v8320_v63  ;;  %4358 = vmatprep.subr.mxu0 %v8321_v1  ;;  %v627_v1 = vsel %vm397_vm0, %v297_v16, 0  ;;  %v280_v16 = vld [vmem:[%s7771_s1 + $0x158] sm:$0xff] }
  0xd5   : > { %4418 = vmatprep.subr.mxu1 %v8254_v58  ;;  %4359 = vmatpush3.xpose.msra.mxu0 %v8322_v43  ;;  %v6047_v58 = vsub.f32 %v588_v57, %v6022_v25  ;;  %v7964_v57 = vand.u32 4294901760, %v6041_v24  ;;  %v315_v43 = vld [vmem:[%s5566_s7 + $0x70] sm:$0xff] }
  0xd6   : > { %4419 = vmatpush3.xpose.msra.mxu1 %v8255_v29  ;;  %4264 = vmatprep.mubr.f32.mxu0 %v5794_v39  ;;  %v6049_v29 = vand.u32 4294901760, %v585_v59 }
  0xd7   : > { %4324 = vmatprep.mubr.f32.mxu1 %v8323_v42  ;;  %379 = vperm.xlu0 %4884, %v313_v13   ;;  %v7967_v5 = vand.u32 4294901760, %v6047_v58  ;;  %v579_v13 = vsel %vm397_vm0, %v281_v17, 0  ;;  %v8331_v17 = vld [vmem:[#allocation12_spill] sm:$0xff]  ;;  %v2617_v18 = vsub.f32 %v6041_v24, %v7964_v57  ;;  %v8333_v57 = vand.u32 4294901760, %v6059_v31 }
  0xd8   : > { %4265 = vmatmul.mubr.f32.gmra.mxu0 %v5794_v39  ;;  %4325 = vmatmul.mubr.f32.gmra.mxu1 %v8323_v42  ;;  %v6076_v36 = vsub.f32 %v585_v59, %v6049_v29  ;;  %v279_v39 = vld [vmem:[%s7771_s1 + $0x150] sm:$0xff] }
  0xd9   : > { %4360 = vmatprep.subr.mxu0 %v8324_v51  ;;  %4420 = vmatprep.subr.mxu1 %v8256_v7  ;;  %v6069_v7 = vand.u32 4294901760, %v582_v8 }
  0xda   : > { %4361 = vmatpush3.xpose.msra.mxu0 %v8326_v45  ;;  %4421 = vmatpush3.xpose.msra.mxu1 %v8327_v52  ;;  %v295_v45 = vld [vmem:[%s7771_s1 + $0x1d0] sm:$0xff]  ;;  %v8332_v52 = vld [vmem:[#allocation37_spill] sm:$0xff]  ;;  %v8335_v51 = vand.u32 4294901760, %v6076_v36 }
  0xdb   : > { %4326 = vmatprep.mubr.f32.mxu1 %v8328_v35  ;;  %4362 = vmatprep.mubr.f32.mxu0 %v8329_v55  ;;  %v6091_v59 = vsub.f32 %v582_v8, %v6069_v7  ;;  %v6106_v8 = vand.u32 4294901760, %v579_v13 }
  0xdc   : > { %384 = vperm.xlu1 %4885, %v314_v2   ;;  %4327 = vmatmul.mubr.f32.gmra.mxu1 %v8328_v35  ;;  %v6094_v2 = vsub.f32 %v630_v50, %v6067_v19  ;;  %v624_v50 = vsel %vm397_vm0, %v296_v54, 0  ;;  %v2624_v54 = vsub.f32 %v6059_v31, %v8333_v57  ;;  %v576_v35 = vsel %vm397_vm0, %v280_v16, 0 }
  0xdd   : > { %4363 = vmatmul.mubr.f32.vlgmr.msra.gmra.mxu0 %v8329_v55  ;;  %4422 = vmatprep.subr.mxu1 %v8330_v49  ;;  %v2505_v49 = vsub.f32 %v6047_v58, %v7967_v5  ;;  %v6126_v42 = vand.u32 4294901760, %v624_v50  ;;  %v6137_v57 = vsub.f32 %v579_v13, %v6106_v8  ;;  %v8334_v5 = vld [vmem:[#allocation40_spill] sm:$0xff]  ;;  %v2512_v63 = vsub.f32 %v6076_v36, %v8335_v51 }
  0xde   : > { %4458 = vmatprep.subr.mxu0 %v6016_v27  ;;  %4423 = vmatpush3.xpose.msra.mxu1 %v8260_v3  ;;  %v6104_v3 = vand.u32 4294901760, %v627_v1  ;;  %v6147_v20 = vand.u32 4294901760, %v576_v35  ;;  %v2625_v51 = vand.u32 4294901760, %v2624_v54  ;;  %v8337_v4 = vand.u32 4294901760, %v6091_v59 }
  0xdf   : > { %4459 = vmatpush3.xpose.msra.mxu0 %v6022_v25  ;;  %4328 = vmatprep.mubr.f32.mxu1 %v8331_v17  ;;  %v2513_v53 = vand.u32 4294901760, %v2512_v63  ;;  %v277_v63 = vld [vmem:[%s7771_s1 + $0x140] sm:$0xff]  ;;  %v8342_v30 = vand.u32 4294901760, %v6137_v57 }
  0xe0   : > { %4364 = vmatprep.mubr.f32.mxu0 %v8332_v52  ;;  %389 = vperm.xlu0 %4884, %v315_v43   ;;  %v316_v43 = vld [vmem:[%s5566_s7 + $0x78] sm:$0xff]  ;;  %v6140_v16 = vsub.f32 %v627_v1, %v6104_v3  ;;  %v278_v1 = vld [vmem:[%s7771_s1 + $0x148] sm:$0xff]  ;;  %v2519_v41 = vsub.f32 %v6091_v59, %v8337_v4  ;;  %v6177_v4 = vsub.f32 %v576_v35, %v6147_v20  ;;  %s7721_s7 = scalar_lea.hbm %s7774_s4, %s4073_s11 }
  0xe1   : > { %4329 = vmatmul.mubr.f32.gmra.mxu1 %v8331_v17  ;;  %4365 = vmatmul.mubr.f32.gmra.mxu0 %v8332_v52  ;;  %v621_v17 = vsel %vm397_vm0, %v295_v45, 0  ;;  %v2506_v45 = vand.u32 4294901760, %v2505_v49  ;;  %v8336_v49 = vand.u32 4294901760, %v6094_v2  ;;  %v570_v0 = vsel %vm397_vm0, %v278_v1, 0 }
  0xe2   : > { %4424 = vmatprep.subr.mxu1 %v8263_v46  ;;  %4460 = vmatprep.subr.mxu0 %v6033_v56  ;;  %v2618_v46 = vand.u32 4294901760, %v2617_v18  ;;  %v6156_v13 = vand.u32 4294901760, %v621_v17  ;;  %v573_v18 = vsel %vm397_vm0, %v279_v39, 0  ;;  %v7984_v39 = vand.u32 4294901760, %v6140_v16 }
  0xe3   : > { %4425 = vmatpush3.xpose.msra.mxu1 %v5481_v12  ;;  %4461 = vmatpush3.xpose.msra.mxu0 %v6049_v29  ;;  %v294_v12 = vld [vmem:[%s7771_s1 + $0x1c8] sm:$0xff]  ;;  %v2631_v9 = vsub.f32 %v6094_v2, %v8336_v49  ;;  %v8338_v49 = vld [vmem:[#allocation44_spill] sm:$0xff]  ;;  %v6197_v1 = vand.u32 4294901760, %v570_v0  ;;  %v2526_v11 = vsub.f32 %v6137_v57, %v8342_v30 }
  0xe4   : > { %4366 = vmatprep.mubr.f32.mxu0 %v8334_v5  ;;  %4426 = vmatprep.mubr.f32.mxu1 %v8329_v55  ;;  %v618_v54 = vsel %vm397_vm0, %v294_v12, 0  ;;  %v6187_v12 = vsub.f32 %v621_v17, %v6156_v13  ;;  %v2520_v17 = vand.u32 4294901760, %v2519_v41  ;;  %v2638_v38 = vsub.f32 %v6140_v16, %v7984_v39 }
  0xe5   : > { %394 = vperm.xlu1 %4885, %v316_v43   ;;  %4367 = vmatmul.mubr.f32.gmra.mxu0 %v8334_v5  ;;  %v6168_v43 = vsub.f32 %v624_v50, %v6126_v42  ;;  %v6179_v50 = vand.u32 4294901760, %v573_v18  ;;  %v6194_v35 = vand.u32 4294901760, %v618_v54  ;;  %8341 = vst [vmem:[#allocation21_spill] sm:$0xff] %v6197_v1  ;;  %v2632_v61 = vand.u32 4294901760, %v2631_v9  ;;  %v292_v9 = vld [vmem:[%s7771_s1 + $0x1b8] sm:$0xff] }
  0xe6   : > { %4427 = vmatmul.mubr.f32.vlgmr.msra.gmra.mxu1 %v8329_v55  ;;  %4462 = vmatprep.subr.mxu0 %v6067_v19  ;;  %v567_v41 = vsel %vm397_vm0, %v277_v63, 0  ;;  %v6228_v63 = vsub.f32 %v570_v0, %v6197_v1  ;;  %v2639_v30 = vand.u32 4294901760, %v2638_v38  ;;  %v612_v28 = vsel %vm397_vm0, %v292_v9, 0  ;;  %v291_v38 = vld [vmem:[%s7771_s1 + $0x1b0] sm:$0xff] }
  0xe7   : > { %4522 = vmatprep.subr.mxu1 %v2618_v46  ;;  %4463 = vmatpush3.xpose.msra.mxu0 %v6069_v7  ;;  %8339 = vst [vmem:[#allocation15_spill] sm:$0xff] %v6179_v50  ;;  %v293_v46 = vld [vmem:[%s7771_s1 + $0x1c0] sm:$0xff]  ;;  %8340 = vst [vmem:[#allocation18_spill] sm:$0xff] %v6194_v35  ;;  %v6231_v39 = vsub.f32 %v618_v54, %v6194_v35  ;;  %v6236_v21 = vand.u32 4294901760, %v567_v41  ;;  %v8348_v0 = vand.u32 4294901760, %v6177_v4 }
  0xe8   : > { %4523 = vmatpush3.xpose.msra.mxu1 %v2506_v45  ;;  %4368 = vmatprep.mubr.f32.mxu0 %v8338_v49  ;;  %v6208_v45 = vsub.f32 %v573_v18, %v6179_v50  ;;  %v615_v47 = vsel %vm397_vm0, %v293_v46, 0  ;;  %v8344_v18 = vand.u32 4294901760, %v6168_v43 }
  0xe9   : > { %4428 = vmatprep.mubr.f32.mxu1 %v8332_v52  ;;  %4369 = vmatmul.mubr.f32.gmra.mxu0 %v8338_v49  ;;  %8346 = vst [vmem:[#allocation36_spill] sm:$0xff] %v6236_v21  ;;  %v2533_v6 = vsub.f32 %v6177_v4, %v8348_v0  ;;  %v6255_v0 = vand.u32 4294901760, %v612_v28 }
  0xea   : > { %4429 = vmatmul.mubr.f32.gmra.mxu1 %v8332_v52  ;;  %4464 = vmatprep.subr.mxu0 %v6104_v3  ;;  %v2645_v46 = vsub.f32 %v6168_v43, %v8344_v18  ;;  %v2527_v18 = vand.u32 4294901760, %v2526_v11  ;;  %v8354_v10 = vand.u32 4294901760, %v6208_v45 }
  0xeb   : > { %4524 = vmatprep.subr.mxu1 %v2625_v51  ;;  %4465 = vmatpush3.xpose.msra.mxu0 %v6106_v8  ;;  %v6234_v51 = vand.u32 4294901760, %v615_v47  ;;  %8350 = vst [vmem:[#allocation24_spill] sm:$0xff] %v6255_v0  ;;  %v2534_v54 = vand.u32 4294901760, %v2533_v6  ;;  %v8355_v6 = vand.u32 4294901760, %v6231_v39  ;;  %v6293_v48 = vsub.f32 %v612_v28, %v6255_v0 }
  0xec   : > { %4525 = vmatpush3.xpose.msra.mxu1 %v2513_v53  ;;  %4370 = vmatprep.mubr.f32.mxu0 %v8343_v40  ;;  %v276_v53 = vld [vmem:[%s7771_s1 + $0x138] sm:$0xff]  ;;  %v2646_v9 = vand.u32 4294901760, %v2645_v46  ;;  %v609_v46 = vsel %vm397_vm0, %v291_v38, 0 }
  0xed   : > { %4430 = vmatprep.mubr.f32.mxu1 %v8334_v5  ;;  %4371 = vmatmul.mubr.f32.gmra.mxu0 %v8343_v40  ;;  %8345 = vst [vmem:[#allocation22_spill] sm:$0xff] %v6234_v51  ;;  %v6270_v44 = vsub.f32 %v615_v47, %v6234_v51  ;;  %v561_v47 = vsel %vm397_vm0, %v275_v22, 0  ;;  %v6290_v26 = vand.u32 4294901760, %v609_v46  ;;  %8358 = vst [vmem:[#allocation35_spill] sm:$0xff] %v6293_v48  ;;  %v274_v22 = vld [vmem:[%s7771_s1 + $0x128] sm:$0xff] }
  0xee   : > { %4431 = vmatmul.mubr.f32.gmra.mxu1 %v8334_v5  ;;  %4466 = vmatprep.subr.mxu0 %v6126_v42  ;;  %v6306_v37 = vand.u32 4294901760, %v561_v47 }
  0xef   : > { %4526 = vmatprep.subr.mxu1 %v2632_v61  ;;  %4467 = vmatpush3.xpose.msra.mxu0 %v6147_v20  ;;  %v564_v61 = vsel %vm397_vm0, %v276_v53, 0  ;;  %v8353_v53 = vld [vmem:[#allocation55_spill] sm:$0xff]  ;;  %8357 = vst [vmem:[#allocation33_spill] sm:$0xff] %v6290_v26  ;;  %v8364_v60 = vand.u32 4294901760, %v6270_v44 }
  0xf0   : > { %4527 = vmatpush3.xpose.msra.mxu1 %v2520_v17  ;;  %4372 = vmatprep.mubr.f32.mxu0 %v8347_v33  ;;  %v8349_v17 = vand.u32 4294901760, %v6187_v12  ;;  %v6266_v15 = vand.u32 4294901760, %v564_v61  ;;  %8361 = vst [vmem:[#allocation13_spill] sm:$0xff] %v6306_v37 }
  0xf1   : > { %4432 = vmatprep.mubr.f32.mxu1 %v8338_v49  ;;  %4373 = vmatmul.mubr.f32.gmra.mxu0 %v8347_v33 }
  0xf2   : > { %v2652_v11 = vsub.f32 %v6187_v12, %v8349_v17  ;;  %4433 = vmatmul.mubr.f32.gmra.mxu1 %v8338_v49  ;;  %4468 = vmatprep.subr.mxu0 %v6156_v13  ;;  %v6264_v17 = vsub.f32 %v567_v41, %v6236_v21  ;;  %8352 = vst [vmem:[#allocation28_spill] sm:$0xff] %v6266_v15  ;;  %v290_v41 = vld [vmem:[%s7771_s1 + $0x1a8] sm:$0xff] }
  0xf3   : > { %4528 = vmatprep.subr.mxu1 %v2639_v30  ;;  %4469 = vmatpush3.xpose.msra.mxu0 %v6179_v50  ;;  %v2540_v30 = vsub.f32 %v6208_v45, %v8354_v10  ;;  %v8356_v10 = vand.u32 4294901760, %v6228_v63  ;;  %v8366_v50 = vld [vmem:[#allocation60_spill] sm:$0xff] }
  0xf4   : > { %8351 = vst [vmem:[#allocation27_spill] sm:$0xff] %v6264_v17  ;;  %4529 = vmatpush3.xpose.msra.mxu1 %v2527_v18  ;;  %4374 = vmatprep.mubr.f32.mxu0 %v8353_v53  ;;  %v2653_v38 = vand.u32 4294901760, %v2652_v11  ;;  %v2659_v18 = vsub.f32 %v6231_v39, %v8355_v6  ;;  %v6300_v11 = vsub.f32 %v564_v61, %v6266_v15  ;;  %v289_v61 = vld [vmem:[%s7771_s1 + $0x1a0] sm:$0xff] }
  0xf5   : > { %4434 = vmatprep.mubr.f32.mxu1 %v8343_v40  ;;  %4375 = vmatmul.mubr.f32.gmra.mxu0 %v8353_v53  ;;  %v2547_v14 = vsub.f32 %v6228_v63, %v8356_v10  ;;  %v606_v10 = vsel %vm397_vm0, %v290_v41, 0  ;;  %v2541_v28 = vand.u32 4294901760, %v2540_v30  ;;  %v273_v41 = vld [vmem:[%s7771_s1 + $0x120] sm:$0xff]  ;;  %v6323_v6 = vsub.f32 %v609_v46, %v6290_v26 }
  0xf6   : > { %4435 = vmatmul.mubr.f32.gmra.mxu1 %v8343_v40  ;;  %4470 = vmatprep.subr.mxu0 %v6194_v35  ;;  %8359 = vst [vmem:[#allocation5_spill] sm:$0xff] %v6300_v11  ;;  %v6319_v30 = vand.u32 4294901760, %v606_v10  ;;  %v8365_v35 = vand.u32 4294901760, %v6264_v17  ;;  %v6335_v46 = vsub.f32 %v561_v47, %v6306_v37  ;;  %v555_v23 = vsel %vm397_vm0, %v273_v41, 0  ;;  %v272_v41 = vld [vmem:[%s7771_s1 + $0x118] sm:$0xff] }
  0xf7   : > { %4530 = vmatprep.subr.mxu1 %v2646_v9  ;;  %4471 = vmatpush3.xpose.msra.mxu0 %v6197_v1  ;;  %v558_v9 = vsel %vm397_vm0, %v274_v22, 0  ;;  %8363 = vst [vmem:[#allocation16_spill] sm:$0xff] %v6323_v6  ;;  %v2548_v22 = vand.u32 4294901760, %v2547_v14  ;;  %v2666_v1 = vsub.f32 %v6270_v44, %v8364_v60  ;;  %v603_v14 = vsel %vm397_vm0, %v289_v61, 0  ;;  %v288_v60 = vld [vmem:[%s7771_s1 + $0x198] sm:$0xff] }
  0xf8   : > { %4531 = vmatpush3.xpose.msra.mxu1 %v2534_v54  ;;  %4376 = vmatprep.mubr.f32.mxu0 %v8360_v34  ;;  %v2660_v54 = vand.u32 4294901760, %v2659_v18  ;;  %8362 = vst [vmem:[#allocation6_spill] sm:$0xff] %v6319_v30  ;;  %8367 = vst [vmem:[#allocation7_spill] sm:$0xff] %v6335_v46  ;;  %v6353_v61 = vsub.f32 %v606_v10, %v6319_v30 }
  0xf9   : > { %4436 = vmatprep.mubr.f32.mxu1 %v8347_v33  ;;  %4377 = vmatmul.mubr.f32.gmra.mxu0 %v8360_v34  ;;  %v2667_v18 = vand.u32 4294901760, %v2666_v1  ;;  %v287_v1 = vld [vmem:[%s7771_s1 + $0x190] sm:$0xff] }
  0xfa   : > { %4437 = vmatmul.mubr.f32.gmra.mxu1 %v8347_v33  ;;  %4472 = vmatprep.subr.mxu0 %v6234_v51  ;;  %v2554_v51 = vsub.f32 %v6264_v17, %v8365_v35  ;;  %v8369_v35 = vand.u32 4294901760, %v6293_v48  ;;  %8370 = vst [vmem:[#allocation9_spill] sm:$0xff] %v6353_v61 }
  0xfb   : > { %4532 = vmatprep.subr.mxu1 %v2653_v38  ;;  %4473 = vmatpush3.xpose.msra.mxu0 %v6236_v21  ;;  %v6337_v38 = vand.u32 4294901760, %v558_v9  ;;  %v8371_v21 = vand.u32 4294901760, %v6300_v11 }
  0xfc   : > { %4533 = vmatpush3.xpose.msra.mxu1 %v2541_v28  ;;  %4378 = vmatprep.mubr.f32.mxu0 %v8366_v50  ;;  %v2673_v47 = vsub.f32 %v6293_v48, %v8369_v35  ;;  %v6364_v35 = vand.u32 4294901760, %v555_v23  ;;  %v8374_v28 = vld [vmem:[#allocation67_spill] sm:$0xff]  ;;  %v2555_v10 = vand.u32 4294901760, %v2554_v51 }
  0xfd   : > { %8368 = vst [vmem:[#allocation19_spill] sm:$0xff] %v6337_v38  ;;  %4438 = vmatprep.mubr.f32.mxu1 %v8353_v53  ;;  %4379 = vmatmul.mubr.f32.gmra.mxu0 %v8366_v50  ;;  %v6368_v48 = vsub.f32 %v558_v9, %v6337_v38  ;;  %v8376_v9 = vand.u32 4294901760, %v6323_v6 }
  0xfe   : > { %4439 = vmatmul.mubr.f32.gmra.mxu1 %v8353_v53  ;;  %4474 = vmatprep.subr.mxu0 %v6255_v0  ;;  %v2561_v0 = vsub.f32 %v6300_v11, %v8371_v21  ;;  %v6362_v53 = vand.u32 4294901760, %v603_v14  ;;  %8373 = vst [vmem:[#allocation11_spill] sm:$0xff] %v6364_v35  ;;  %v552_v21 = vsel %vm397_vm0, %v272_v41, 0  ;;  %v2674_v51 = vand.u32 4294901760, %v2673_v47 }
  0xff   : > { %4534 = vmatprep.subr.mxu1 %v2660_v54  ;;  %4475 = vmatpush3.xpose.msra.mxu0 %v6266_v15  ;;  %8375 = vst [vmem:[#allocation42_spill] sm:$0xff] %v6368_v48  ;;  %v600_v15 = vsel %vm397_vm0, %v288_v60, 0  ;;  %v271_v54 = vld [vmem:[%s7771_s1 + $0x110] sm:$0xff]  ;;  %v6389_v11 = vsub.f32 %v555_v23, %v6364_v35 }
 0x100   : > { %8372 = vst [vmem:[#allocation23_spill] sm:$0xff] %v6362_v53  ;;  %4535 = vmatpush3.xpose.msra.mxu1 %v2548_v22  ;;  %4380 = vmatprep.mubr.f32.mxu0 %v8374_v28  ;;  %v2680_v22 = vsub.f32 %v6323_v6, %v8376_v9  ;;  %v2562_v41 = vand.u32 4294901760, %v2561_v0  ;;  %v6394_v47 = vsub.f32 %v603_v14, %v6362_v53  ;;  %v286_v9 = vld [vmem:[%s7771_s1 + $0x188] sm:$0xff]  ;;  %v8380_v60 = vld [vmem:[#allocation71_spill] sm:$0xff]  ;;  %v6403_v0 = vand.u32 4294901760, %v552_v21 }
 0x101   : > { %4440 = vmatprep.mubr.f32.mxu1 %v8360_v34  ;;  %4381 = vmatmul.mubr.f32.gmra.mxu0 %v8374_v28  ;;  %8377 = vst [vmem:[#allocation29_spill] sm:$0xff] %v6389_v11  ;;  %v549_v14 = vsel %vm397_vm0, %v271_v54, 0  ;;  %v8382_v6 = vand.u32 4294901760, %v6353_v61 }
 0x102   : > { %4441 = vmatmul.mubr.f32.gmra.mxu1 %v8360_v34  ;;  %4476 = vmatprep.subr.mxu0 %v6290_v26  ;;  %v6391_v34 = vand.u32 4294901760, %v600_v15  ;;  %8379 = vst [vmem:[#allocation91_spill] sm:$0xff] %v6394_v47  ;;  %v597_v26 = vsel %vm397_vm0, %v287_v1, 0  ;;  %v270_v1 = vld [vmem:[%s7771_s1 + $0x108] sm:$0xff] }
 0x103   : > { %4536 = vmatprep.subr.mxu1 %v2667_v18  ;;  %4477 = vmatpush3.xpose.msra.mxu0 %v6306_v37  ;;  %v8381_v18 = vand.u32 4294901760, %v6335_v46  ;;  %v6420_v23 = vand.u32 4294901760, %v597_v26 }
 0x104   : > { %8378 = vst [vmem:[#allocation31_spill] sm:$0xff] %v6391_v34  ;;  %4537 = vmatpush3.xpose.msra.mxu1 %v2555_v10  ;;  %4382 = vmatprep.mubr.f32.mxu0 %v8380_v60  ;;  %v2681_v10 = vand.u32 4294901760, %v2680_v22  ;;  %v6425_v22 = vsub.f32 %v600_v15, %v6391_v34 }
 0x105   : > { %v2568_v37 = vsub.f32 %v6335_v46, %v8381_v18  ;;  %4442 = vmatprep.mubr.f32.mxu1 %v8366_v50  ;;  %4383 = vmatmul.mubr.f32.gmra.mxu0 %v8380_v60  ;;  %v2687_v18 = vsub.f32 %v6353_v61, %v8382_v6  ;;  %v594_v46 = vsel %vm397_vm0, %v286_v9, 0  ;;  %8383 = vst [vmem:[#allocation92_spill] sm:$0xff] %v6420_v23  ;;  %v285_v6 = vld [vmem:[%s7771_s1 + $0x180] sm:$0xff]  ;;  %v8384_v9 = vld [vmem:[#allocation75_spill] sm:$0xff] }
 0x106   : > { %4443 = vmatmul.mubr.f32.gmra.mxu1 %v8366_v50  ;;  %4478 = vmatprep.subr.mxu0 %v6319_v30  ;;  %v6437_v50 = vand.u32 4294901760, %v549_v14  ;;  %v6441_v15 = vand.u32 4294901760, %v594_v46  ;;  %v8389_v30 = vand.u32 4294901760, %v6394_v47 }
 0x107   : > { %4538 = vmatprep.subr.mxu1 %v2674_v51  ;;  %4479 = vmatpush3.xpose.msra.mxu0 %v6337_v38  ;;  %v2569_v61 = vand.u32 4294901760, %v2568_v37  ;;  %v6432_v51 = vsub.f32 %v552_v21, %v6403_v0  ;;  %v8386_v38 = vand.u32 4294901760, %v6368_v48  ;;  %v2688_v37 = vand.u32 4294901760, %v2687_v18 }
 0x108   : > { %4539 = vmatpush3.xpose.msra.mxu1 %v2562_v41  ;;  %4384 = vmatprep.mubr.f32.mxu0 %v8384_v9  ;;  %8387 = vst [vmem:[#allocation94_spill] sm:$0xff] %v6437_v50  ;;  %8388 = vst [vmem:[#allocation95_spill] sm:$0xff] %v6441_v15  ;;  %v546_v41 = vsel %vm397_vm0, %v270_v1, 0  ;;  %v591_v21 = vsel %vm397_vm0, %v285_v6, 0  ;;  %v8390_v1 = vand.u32 4294901760, %v6389_v11  ;;  %v6459_v18 = vsub.f32 %v597_v26, %v6420_v23  ;;  %v8391_v6 = vld [vmem:[#allocation79_spill] sm:$0xff] }
 0x109   : > { %8385 = vst [vmem:[#allocation93_spill] sm:$0xff] %v6432_v51  ;;  %v2575_v54 = vsub.f32 %v6368_v48, %v8386_v38  ;;  %4444 = vmatprep.mubr.f32.mxu1 %v8374_v28  ;;  %4385 = vmatmul.mubr.f32.gmra.mxu0 %v8384_v9  ;;  %v269_v38 = vld [vmem:[%s7771_s1 + $0x100] sm:$0xff]  ;;  %v2694_v48 = vsub.f32 %v6394_v47, %v8389_v30 }
 0x10a   : > { %4445 = vmatmul.mubr.f32.gmra.mxu1 %v8374_v28  ;;  %4480 = vmatprep.subr.mxu0 %v6362_v53  ;;  %v2582_v28 = vsub.f32 %v6389_v11, %v8390_v1  ;;  %v8053_v53 = vand.u32 4294901760, %v6425_v22  ;;  %v6470_v1 = vand.u32 4294901760, %v591_v21  ;;  %v543_v26 = vsel %vm397_vm0, %v269_v38, 0  ;;  %v8394_v38 = vld [vmem:[#allocation80_spill] sm:$0xff] }
 0x10b   : > { %4540 = vmatprep.subr.mxu1 %v2681_v10  ;;  %4481 = vmatpush3.xpose.msra.mxu0 %v6364_v35  ;;  %v2576_v17 = vand.u32 4294901760, %v2575_v54  ;;  %v6463_v10 = vsub.f32 %v549_v14, %v6437_v50  ;;  %v6465_v35 = vand.u32 4294901760, %v546_v41  ;;  %v2695_v14 = vand.u32 4294901760, %v2694_v48 }
 0x10c   : > { %4541 = vmatpush3.xpose.msra.mxu1 %v2569_v61  ;;  %4386 = vmatprep.mubr.f32.mxu0 %v8391_v6  ;;  %8393 = vst [vmem:[#allocation97_spill] sm:$0xff] %v6470_v1  ;;  %v6474_v61 = vsub.f32 %v594_v46, %v6441_v15  ;;  %v2583_v54 = vand.u32 4294901760, %v2582_v28  ;;  %v2701_v30 = vsub.f32 %v6425_v22, %v8053_v53  ;;  %v8054_v11 = vand.u32 4294901760, %v6459_v18 }
 0x10d   : > { %8392 = vst [vmem:[#allocation96_spill] sm:$0xff] %v6465_v35  ;;  %4446 = vmatprep.mubr.f32.mxu1 %v8380_v60  ;;  %4387 = vmatmul.mubr.f32.gmra.mxu0 %v8391_v6  ;;  %v6485_v46 = vsub.f32 %v546_v41, %v6465_v35  ;;  %v8055_v48 = vand.u32 4294901760, %v6463_v10 }
 0x10e   : > { %4447 = vmatmul.mubr.f32.gmra.mxu1 %v8380_v60  ;;  %4482 = vmatprep.subr.mxu0 %v6391_v34  ;;  %v8395_v60 = vand.u32 4294901760, %v6432_v51  ;;  %v6490_v34 = vand.u32 4294901760, %v543_v26  ;;  %v2708_v41 = vsub.f32 %v6459_v18, %v8054_v11 }
 0x10f   : > { %4542 = vmatprep.subr.mxu1 %v2688_v37  ;;  %4483 = vmatpush3.xpose.msra.mxu0 %v6403_v0 }
 0x110   : > { %4543 = vmatpush3.xpose.msra.mxu1 %v2576_v17  ;;  %4388 = vmatprep.mubr.f32.mxu0 %v8394_v38  ;;  %v2589_v37 = vsub.f32 %v6432_v51, %v8395_v60  ;;  %8396 = vst [vmem:[#allocation98_spill] sm:$0xff] %v6490_v34  ;;  %v6497_v17 = vsub.f32 %v591_v21, %v6470_v1  ;;  %v2702_v60 = vand.u32 4294901760, %v2701_v30  ;;  %v8398_v30 = vand.u32 4294901760, %v6474_v61 }
 0x111   : > { %4448 = vmatprep.mubr.f32.mxu1 %v8384_v9  ;;  %4389 = vmatmul.mubr.f32.gmra.mxu0 %v8394_v38  ;;  %v6507_v28 = vsub.f32 %v543_v26, %v6490_v34  ;;  %v2596_v21 = vsub.f32 %v6463_v10, %v8055_v48  ;;  %v2709_v26 = vand.u32 4294901760, %v2708_v41 }
 0x112   : > { %8397 = vst [vmem:[#allocation99_spill] sm:$0xff] %v6497_v17  ;;  %4449 = vmatmul.mubr.f32.gmra.mxu1 %v8384_v9  ;;  %4484 = vmatprep.subr.mxu0 %v6420_v23  ;;  %v2590_v53 = vand.u32 4294901760, %v2589_v37 }
 0x113   : > { %4544 = vmatprep.subr.mxu1 %v2695_v14  ;;  %4485 = vmatpush3.xpose.msra.mxu0 %v6437_v50  ;;  %v8060_v14 = vand.u32 4294901760, %v6485_v46  ;;  %v2597_v48 = vand.u32 4294901760, %v2596_v21 }
 0x114   : > { %4545 = vmatpush3.xpose.msra.mxu1 %v2583_v54  ;;  %4390 = vmatprep.mubr.f32.mxu0 %v5743_v32  ;;  %v2715_v54 = vsub.f32 %v6474_v61, %v8398_v30  ;;  %v8067_v30 = vand.u32 4294901760, %v6507_v28 }
 0x115   : > { %4450 = vmatprep.mubr.f32.mxu1 %v8391_v6  ;;  %4391 = vmatmul.mubr.f32.gmra.mxu0 %v5743_v32  ;;  %v2603_v50 = vsub.f32 %v6485_v46, %v8060_v14 }
 0x116   : > { %4451 = vmatmul.mubr.f32.gmra.mxu1 %v8391_v6  ;;  %4486 = vmatprep.subr.mxu0 %v6441_v15  ;;  %v2716_v11 = vand.u32 4294901760, %v2715_v54  ;;  %v2610_v54 = vsub.f32 %v6507_v28, %v8067_v30  ;;  %v8401_v15 = vld [vmem:[#allocation38_spill] sm:$0xff] }
 0x117   : > { %4546 = vmatprep.subr.mxu1 %v2702_v60  ;;  %4487 = vmatpush3.xpose.msra.mxu0 %v6465_v35  ;;  %v741_v37 = vpop.f32.mrf.mxu0  ;;  %v8399_v35 = vand.u32 4294901760, %v6497_v17  ;;  %v2604_v14 = vand.u32 4294901760, %v2603_v50 }
 0x118   : > { %4547 = vmatpush3.xpose.msra.mxu1 %v2590_v53  ;;  %4392 = vmatprep.mubr.f32.mxu0 %v5764_v62  ;;  %v6532_v53 = vpop.permute.xlu0 %319 }
 0x119   : > { %4452 = vmatprep.mubr.f32.mxu1 %v8394_v38  ;;  %4393 = vmatmul.mubr.f32.gmra.mxu0 %v5764_v62  ;;  %v743_v60 = vpop.f32.mrf.mxu0  ;;  %v2722_v41 = vsub.f32 %v6497_v17, %v8399_v35  ;;  %8400 = vst [vmem:[#allocation100_spill] sm:$0xff] %v6532_v53  ;;  %v742_v35 = vadd.f32 %v741_v37, %v6532_v53 }
 0x11a   : > { %4453 = vmatmul.mubr.f32.gmra.mxu1 %v8394_v38  ;;  %4488 = vmatprep.subr.mxu0 %v6470_v1 }
 0x11b   : > { %4548 = vmatprep.subr.mxu1 %v2709_v26  ;;  %4489 = vmatpush3.xpose.msra.mxu0 %v6490_v34  ;;  %v752_v21 = vpop.f32.mrf.mxu0  ;;  %v2723_v23 = vand.u32 4294901760, %v2722_v41  ;;  %v2611_v26 = vand.u32 4294901760, %v2610_v54  ;;  %v8403_v41 = vld [vmem:[#allocation49_spill] sm:$0xff] }
 0x11c   : > { %4549 = vmatpush3.xpose.msra.mxu1 %v2597_v48  ;;  %4454 = vmatprep.mubr.f32.mxu1 %v5743_v32 }
 0x11d   : > { %4490 = vmatprep.mubr.f32.mxu0 %v8401_v15  ;;  %4550 = vmatprep.subr.mxu1 %v2716_v11  ;;  %v754_v17 = vpop.f32.mrf.mxu0  ;;  %v744_v11 = vadd.f32 %v743_v60, %v6532_v53 }
 0x11e   : > { %4455 = vmatmul.mubr.f32.gmra.mxu1 %v5743_v32  ;;  %4491 = vmatmul.mubr.f32.vlgmr.msra.gmra.mxu0 %v8401_v15 }
 0x11f   : > { %4586 = vmatprep.subr.mxu0 %v6041_v24  ;;  %4456 = vmatprep.mubr.f32.mxu1 %v5764_v62  ;;  %v763_v50 = vpop.f32.mrf.mxu0  ;;  %v1138_v48 = vpop.f32.mrf.mxu1 }
 0x120   : > { %4551 = vmatpush3.xpose.msra.mxu1 %v2604_v14  ;;  %4587 = vmatpush3.xpose.msra.mxu0 %v6047_v58  ;;  %v6548_v37 = vadd.f32 %v1138_v48, %v742_v35  ;;  %v8406_v14 = vld [vmem:[#allocation53_spill] sm:$0xff] }
 0x121   : > { %4492 = vmatprep.mubr.f32.mxu0 %v8403_v41  ;;  %4552 = vmatprep.subr.mxu1 %v2723_v23  ;;  %v765_v30 = vpop.f32.mrf.mxu0  ;;  %v1140_v34 = vpop.f32.mrf.mxu1 }
 0x122   : > { %8402 = vst [vmem:[#allocation38_spill] sm:$0xff] %v6548_v37  ;;  %4457 = vmatmul.mubr.f32.gmra.mxu1 %v5764_v62  ;;  %4493 = vmatmul.mubr.f32.gmra.mxu0 %v8403_v41  ;;  %v6554_v15 = vadd.f32 %v1140_v34, %v744_v11  ;;  %v6556_v1 = vpop.permute.xlu0 %324 }
 0x123   : > { %8405 = vst [vmem:[#allocation101_spill] sm:$0xff] %v6556_v1  ;;  %4588 = vmatprep.subr.mxu0 %v6059_v31  ;;  %4494 = vmatprep.mubr.f32.mxu0 %v8406_v14  ;;  %v774_v54 = vpop.f32.mrf.mxu0  ;;  %v753_v60 = vadd.f32 %v752_v21, %v6556_v1  ;;  %v1145_v35 = vpop.f32.mrf.mxu1  ;;  %v755_v23 = vadd.f32 %v754_v17, %v6556_v1 }
 0x124   : > { %8404 = vst [vmem:[#allocation49_spill] sm:$0xff] %v6554_v15  ;;  %4553 = vmatpush3.xpose.msra.mxu1 %v2611_v26  ;;  %4589 = vmatpush3.xpose.msra.mxu0 %v6076_v36  ;;  %v8410_v26 = vld [vmem:[#allocation57_spill] sm:$0xff] }
 0x125   : > { %4554 = vmatprep.mubr.f32.mxu1 %v8329_v55  ;;  %4590 = vmatprep.subr.mxu0 %v6094_v2  ;;  %v6565_v34 = vadd.f32 %v1145_v35, %v753_v60  ;;  %v776_v48 = vpop.f32.mrf.mxu0  ;;  %v1147_v11 = vpop.f32.mrf.mxu1 }
 0x126   : > { %4495 = vmatmul.mubr.f32.gmra.mxu0 %v8406_v14  ;;  %4650 = vmatprep.subr.mxu1 %v6016_v27  ;;  %v6569_v41 = vadd.f32 %v1147_v11, %v755_v23  ;;  %v6571_v21 = vpop.permute.xlu1 %329 }
 0x127   : > { %8407 = vst [vmem:[#allocation53_spill] sm:$0xff] %v6565_v34  ;;  %8409 = vst [vmem:[#allocation103_spill] sm:$0xff] %v6571_v21  ;;  %4555 = vmatmul.mubr.f32.vlgmr.msra.gmra.mxu1 %v8329_v55  ;;  %4496 = vmatprep.mubr.f32.mxu0 %v8410_v26  ;;  %v785_v17 = vpop.f32.mrf.mxu0  ;;  %v764_v1 = vadd.f32 %v763_v50, %v6571_v21  ;;  %v1152_v53 = vpop.f32.mrf.mxu1  ;;  %v766_v14 = vadd.f32 %v765_v30, %v6571_v21 }
 0x128   : > { %8408 = vst [vmem:[#allocation102_spill] sm:$0xff] %v6569_v41  ;;  %4591 = vmatpush3.xpose.msra.mxu0 %v6091_v59  ;;  %4651 = vmatpush3.xpose.msra.mxu1 %v6022_v25  ;;  %v8414_v41 = vld [vmem:[#allocation61_spill] sm:$0xff] }
 0x129   : > { %4556 = vmatprep.mubr.f32.mxu1 %v8332_v52  ;;  %4592 = vmatprep.subr.mxu0 %v6140_v16  ;;  %v6581_v60 = vadd.f32 %v1152_v53, %v764_v1  ;;  %v787_v35 = vpop.f32.mrf.mxu0  ;;  %v1154_v23 = vpop.f32.mrf.mxu1 }
 0x12a   : > { %4497 = vmatmul.mubr.f32.gmra.mxu0 %v8410_v26  ;;  %4652 = vmatprep.subr.mxu1 %v6033_v56  ;;  %v6585_v50 = vadd.f32 %v1154_v23, %v766_v14  ;;  %v6587_v11 = vpop.permute.xlu1 %334 }
 0x12b   : > { %8411 = vst [vmem:[#allocation57_spill] sm:$0xff] %v6581_v60  ;;  %8413 = vst [vmem:[#allocation105_spill] sm:$0xff] %v6587_v11  ;;  %4557 = vmatmul.mubr.f32.gmra.mxu1 %v8332_v52  ;;  %4498 = vmatprep.mubr.f32.mxu0 %v8414_v41  ;;  %v796_v30 = vpop.f32.mrf.mxu0  ;;  %v775_v21 = vadd.f32 %v774_v54, %v6587_v11  ;;  %v1159_v34 = vpop.f32.mrf.mxu1  ;;  %v777_v1 = vadd.f32 %v776_v48, %v6587_v11  ;;  %v8439_v52 = vld [vmem:[#allocation5_spill] sm:$0xff] }
 0x12c   : > { %8412 = vst [vmem:[#allocation104_spill] sm:$0xff] %v6585_v50  ;;  %4593 = vmatpush3.xpose.msra.mxu0 %v6137_v57  ;;  %4653 = vmatpush3.xpose.msra.mxu1 %v6049_v29  ;;  %v8418_v50 = vld [vmem:[#allocation65_spill] sm:$0xff] }
 0x12d   : > { %4558 = vmatprep.mubr.f32.mxu1 %v8334_v5  ;;  %4594 = vmatprep.subr.mxu0 %v6168_v43  ;;  %v6597_v53 = vadd.f32 %v1159_v34, %v775_v21  ;;  %v798_v26 = vpop.f32.mrf.mxu0  ;;  %v1161_v14 = vpop.f32.mrf.mxu1 }
 0x12e   : > { %4499 = vmatmul.mubr.f32.gmra.mxu0 %v8414_v41  ;;  %4654 = vmatprep.subr.mxu1 %v6067_v19  ;;  %v6601_v54 = vadd.f32 %v1161_v14, %v777_v1  ;;  %v6603_v23 = vpop.permute.xlu0 %339  ;;  %v8421_v14 = vld [vmem:[#allocation69_spill] sm:$0xff] }
 0x12f   : > { %8415 = vst [vmem:[#allocation61_spill] sm:$0xff] %v6597_v53  ;;  %8417 = vst [vmem:[#allocation107_spill] sm:$0xff] %v6603_v23  ;;  %4559 = vmatmul.mubr.f32.gmra.mxu1 %v8334_v5  ;;  %4500 = vmatprep.mubr.f32.mxu0 %v8418_v50  ;;  %v807_v48 = vpop.f32.mrf.mxu0  ;;  %v786_v11 = vadd.f32 %v785_v17, %v6603_v23  ;;  %v1166_v60 = vpop.f32.mrf.mxu1  ;;  %v788_v34 = vadd.f32 %v787_v35, %v6603_v23 }
 0x130   : > { %8416 = vst [vmem:[#allocation106_spill] sm:$0xff] %v6601_v54  ;;  %4595 = vmatpush3.xpose.msra.mxu0 %v6177_v4  ;;  %4655 = vmatpush3.xpose.msra.mxu1 %v6069_v7 }
 0x131   : > { %4560 = vmatprep.mubr.f32.mxu1 %v8338_v49  ;;  %4596 = vmatprep.subr.mxu0 %v6187_v12  ;;  %v6613_v41 = vadd.f32 %v1166_v60, %v786_v11  ;;  %v809_v21 = vpop.f32.mrf.mxu0  ;;  %v1168_v1 = vpop.f32.mrf.mxu1 }
 0x132   : > { %4501 = vmatmul.mubr.f32.gmra.mxu0 %v8418_v50  ;;  %4656 = vmatprep.subr.mxu1 %v6104_v3  ;;  %v6617_v17 = vadd.f32 %v1168_v1, %v788_v34 }
 0x133   : > { %8419 = vst [vmem:[#allocation65_spill] sm:$0xff] %v6613_v41  ;;  %4561 = vmatmul.mubr.f32.gmra.mxu1 %v8338_v49  ;;  %4502 = vmatprep.mubr.f32.mxu0 %v8421_v14  ;;  %v6621_v54 = vpop.permute.xlu1 %344  ;;  %v818_v35 = vpop.f32.mrf.mxu0 }
 0x134   : > { %8420 = vst [vmem:[#allocation108_spill] sm:$0xff] %v6617_v17  ;;  %8422 = vst [vmem:[#allocation69_spill] sm:$0xff] %v6621_v54  ;;  %4597 = vmatpush3.xpose.msra.mxu0 %v6208_v45  ;;  %4657 = vmatpush3.xpose.msra.mxu1 %v6106_v8  ;;  %v797_v60 = vadd.f32 %v796_v30, %v6621_v54  ;;  %v1173_v11 = vpop.f32.mrf.mxu1  ;;  %v799_v34 = vadd.f32 %v798_v26, %v6621_v54  ;;  %v8424_v17 = vld [vmem:[#allocation72_spill] sm:$0xff] }
 0x135   : > { %4562 = vmatprep.mubr.f32.mxu1 %v8343_v40  ;;  %4598 = vmatprep.subr.mxu0 %v6231_v39  ;;  %v820_v50 = vpop.f32.mrf.mxu0  ;;  %v8428_v54 = vld [vmem:[#allocation76_spill] sm:$0xff] }
 0x136   : > { %4503 = vmatmul.mubr.f32.gmra.mxu0 %v8421_v14  ;;  %4658 = vmatprep.subr.mxu1 %v6126_v42  ;;  %v6631_v1 = vadd.f32 %v1173_v11, %v797_v60  ;;  %v1175_v23 = vpop.f32.mrf.mxu1 }
 0x137   : > { %4563 = vmatmul.mubr.f32.gmra.mxu1 %v8343_v40  ;;  %4504 = vmatprep.mubr.f32.mxu0 %v8424_v17  ;;  %v6635_v30 = vadd.f32 %v1175_v23, %v799_v34  ;;  %v6637_v41 = vpop.permute.xlu0 %349  ;;  %v829_v53 = vpop.f32.mrf.mxu0  ;;  %v8431_v40 = vld [vmem:[#allocation15_spill] sm:$0xff] }
 0x138   : > { %8423 = vst [vmem:[#allocation109_spill] sm:$0xff] %v6631_v1  ;;  %8426 = vst [vmem:[#allocation110_spill] sm:$0xff] %v6637_v41  ;;  %4599 = vmatpush3.xpose.msra.mxu0 %v6228_v63  ;;  %4659 = vmatpush3.xpose.msra.mxu1 %v6147_v20  ;;  %v808_v26 = vadd.f32 %v807_v48, %v6637_v41  ;;  %v1180_v14 = vpop.f32.mrf.mxu1  ;;  %v810_v11 = vadd.f32 %v809_v21, %v6637_v41  ;;  %v8430_v1 = vld [vmem:[#allocation27_spill] sm:$0xff] }
 0x139   : > { %8425 = vst [vmem:[#allocation72_spill] sm:$0xff] %v6635_v30  ;;  %4564 = vmatprep.mubr.f32.mxu1 %v8347_v33  ;;  %4600 = vmatprep.subr.mxu0 %v6270_v44  ;;  %v831_v60 = vpop.f32.mrf.mxu0  ;;  %v8434_v41 = vld [vmem:[#allocation35_spill] sm:$0xff] }
 0x13a   : > { %4505 = vmatmul.mubr.f32.gmra.mxu0 %v8424_v17  ;;  %4660 = vmatprep.subr.mxu1 %v6156_v13  ;;  %v6647_v23 = vadd.f32 %v1180_v14, %v808_v26  ;;  %v1182_v34 = vpop.f32.mrf.mxu1  ;;  %v8433_v17 = vld [vmem:[#allocation55_spill] sm:$0xff] }
 0x13b   : > { %4565 = vmatmul.mubr.f32.gmra.mxu1 %v8347_v33  ;;  %4506 = vmatprep.mubr.f32.mxu0 %v8428_v54  ;;  %v6651_v48 = vadd.f32 %v1182_v34, %v810_v11  ;;  %v840_v30 = vpop.f32.mrf.mxu0  ;;  %v8435_v11 = vld [vmem:[#allocation18_spill] sm:$0xff] }
 0x13c   : > { %8427 = vst [vmem:[#allocation111_spill] sm:$0xff] %v6647_v23  ;;  %4601 = vmatpush3.xpose.msra.mxu0 %v8430_v1  ;;  %4661 = vmatpush3.xpose.msra.mxu1 %v8431_v40  ;;  %v6655_v49 = vpop.permute.xlu1 %354  ;;  %v1187_v21 = vpop.f32.mrf.mxu1 }
 0x13d   : > { %8429 = vst [vmem:[#allocation76_spill] sm:$0xff] %v6651_v48  ;;  %8432 = vst [vmem:[#allocation27_spill] sm:$0xff] %v6655_v49  ;;  %4566 = vmatprep.mubr.f32.mxu1 %v8433_v17  ;;  %4602 = vmatprep.subr.mxu0 %v8434_v41  ;;  %v819_v26 = vadd.f32 %v818_v35, %v6655_v49  ;;  %v842_v14 = vpop.f32.mrf.mxu0  ;;  %v821_v23 = vadd.f32 %v820_v50, %v6655_v49  ;;  %v8436_v48 = vld [vmem:[#allocation81_spill] sm:$0xff]  ;;  %v8443_v49 = vld [vmem:[#allocation16_spill] sm:$0xff] }
 0x13e   : > { %4507 = vmatmul.mubr.f32.gmra.mxu0 %v8428_v54  ;;  %4662 = vmatprep.subr.mxu1 %v8435_v11  ;;  %v1189_v34 = vpop.f32.mrf.mxu1  ;;  %v8440_v35 = vld [vmem:[#allocation21_spill] sm:$0xff]  ;;  %v8442_v54 = vld [vmem:[#allocation56_spill] sm:$0xff] }
 0x13f   : > { %4567 = vmatmul.mubr.f32.gmra.mxu1 %v8433_v17  ;;  %4508 = vmatprep.mubr.f32.mxu0 %v8436_v48  ;;  %v6665_v33 = vadd.f32 %v1187_v21, %v819_v26  ;;  %v6667_v5 = vadd.f32 %v1189_v34, %v821_v23  ;;  %v851_v15 = vpop.f32.mrf.mxu0  ;;  %v8444_v23 = vld [vmem:[#allocation22_spill] sm:$0xff]  ;;  %v8445_v34 = vld [vmem:[#allocation85_spill] sm:$0xff] }
 0x140   : > { %4603 = vmatpush3.xpose.msra.mxu0 %v8439_v52  ;;  %4663 = vmatpush3.xpose.msra.mxu1 %v8440_v35  ;;  %v6671_v37 = vpop.permute.xlu0 %359  ;;  %v1194_v50 = vpop.f32.mrf.mxu1 }
 0x141   : > { %8437 = vst [vmem:[#allocation15_spill] sm:$0xff] %v6665_v33  ;;  %8438 = vst [vmem:[#allocation35_spill] sm:$0xff] %v6667_v5  ;;  %4568 = vmatprep.mubr.f32.mxu1 %v8442_v54  ;;  %4604 = vmatprep.subr.mxu0 %v8443_v49  ;;  %v830_v17 = vadd.f32 %v829_v53, %v6671_v37  ;;  %v853_v55 = vpop.f32.mrf.mxu0  ;;  %v832_v21 = vadd.f32 %v831_v60, %v6671_v37  ;;  %v8448_v49 = vld [vmem:[#allocation7_spill] sm:$0xff]  ;;  %v8449_v53 = vld [vmem:[#allocation36_spill] sm:$0xff] }
 0x142   : > { %8441 = vst [vmem:[#allocation18_spill] sm:$0xff] %v6671_v37  ;;  %4509 = vmatmul.mubr.f32.gmra.mxu0 %v8436_v48  ;;  %4664 = vmatprep.subr.mxu1 %v8444_v23  ;;  %v1196_v26 = vpop.f32.mrf.mxu1  ;;  %v8450_v60 = vld [vmem:[#allocation60_spill] sm:$0xff]  ;;  %v8451_v48 = vld [vmem:[#allocation9_spill] sm:$0xff] }
 0x143   : > { %4569 = vmatmul.mubr.f32.gmra.mxu1 %v8442_v54  ;;  %4510 = vmatprep.mubr.f32.mxu0 %v8445_v34  ;;  %v6681_v5 = vadd.f32 %v1194_v50, %v830_v17  ;;  %v6683_v33 = vadd.f32 %v1196_v26, %v832_v21  ;;  %v862_v35 = vpop.f32.mrf.mxu0  ;;  %v8453_v54 = vld [vmem:[#allocation24_spill] sm:$0xff] }
 0x144   : > { %4605 = vmatpush3.xpose.msra.mxu0 %v8448_v49  ;;  %4665 = vmatpush3.xpose.msra.mxu1 %v8449_v53  ;;  %v1201_v52 = vpop.f32.mrf.mxu1  ;;  %v8454_v26 = vld [vmem:[#allocation8_spill] sm:$0xff] }
 0x145   : > { %8446 = vst [vmem:[#allocation81_spill] sm:$0xff] %v6681_v5  ;;  %8447 = vst [vmem:[#allocation85_spill] sm:$0xff] %v6683_v33  ;;  %4570 = vmatprep.mubr.f32.mxu1 %v8450_v60  ;;  %4606 = vmatprep.subr.mxu0 %v8451_v48  ;;  %v6689_v37 = vpop.permute.xlu1 %364  ;;  %v864_v23 = vpop.f32.mrf.mxu0  ;;  %v8455_v5 = vld [vmem:[#allocation42_spill] sm:$0xff]  ;;  %v8456_v48 = vld [vmem:[#allocation28_spill] sm:$0xff] }
 0x146   : > { %8452 = vst [vmem:[#allocation112_spill] sm:$0xff] %v6689_v37  ;;  %4511 = vmatmul.mubr.f32.gmra.mxu0 %v8445_v34  ;;  %4666 = vmatprep.subr.mxu1 %v8453_v54  ;;  %v841_v17 = vadd.f32 %v840_v30, %v6689_v37  ;;  %v843_v50 = vadd.f32 %v842_v14, %v6689_v37  ;;  %v1203_v21 = vpop.f32.mrf.mxu1  ;;  %v8459_v54 = vld [vmem:[#allocation67_spill] sm:$0xff]  ;;  %v8461_v37 = vld [vmem:[#allocation33_spill] sm:$0xff] }
 0x147   : > { %4571 = vmatmul.mubr.f32.gmra.mxu1 %v8450_v60  ;;  %4512 = vmatprep.mubr.f32.mxu0 %v8454_v26  ;;  %v873_v33 = vpop.f32.mrf.mxu0 }
 0x148   : > { %4607 = vmatpush3.xpose.msra.mxu0 %v8455_v5  ;;  %4667 = vmatpush3.xpose.msra.mxu1 %v8456_v48  ;;  %v6699_v53 = vadd.f32 %v1201_v52, %v841_v17  ;;  %v6701_v49 = vadd.f32 %v1203_v21, %v843_v50  ;;  %v1208_v34 = vpop.f32.mrf.mxu1  ;;  %v8462_v17 = vld [vmem:[#allocation20_spill] sm:$0xff]  ;;  %v8463_v21 = vld [vmem:[#allocation29_spill] sm:$0xff] }
 0x149   : > { %4572 = vmatprep.mubr.f32.mxu1 %v8459_v54  ;;  %4608 = vmatprep.subr.mxu0 %v6394_v47  ;;  %v6705_v30 = vpop.permute.xlu0 %369  ;;  %v875_v14 = vpop.f32.mrf.mxu0 }
 0x14a   : > { %8457 = vst [vmem:[#allocation8_spill] sm:$0xff] %v6699_v53  ;;  %8458 = vst [vmem:[#allocation42_spill] sm:$0xff] %v6701_v49  ;;  %4513 = vmatmul.mubr.f32.gmra.mxu0 %v8454_v26  ;;  %4668 = vmatprep.subr.mxu1 %v8461_v37  ;;  %v852_v60 = vadd.f32 %v851_v15, %v6705_v30  ;;  %v854_v48 = vadd.f32 %v853_v55, %v6705_v30  ;;  %v1210_v52 = vpop.f32.mrf.mxu1  ;;  %v8464_v49 = vld [vmem:[#allocation13_spill] sm:$0xff]  ;;  %v8467_v37 = vld [vmem:[#allocation71_spill] sm:$0xff] }
 0x14b   : > { %8460 = vst [vmem:[#allocation113_spill] sm:$0xff] %v6705_v30  ;;  %4573 = vmatmul.mubr.f32.gmra.mxu1 %v8459_v54  ;;  %4514 = vmatprep.mubr.f32.mxu0 %v8462_v17  ;;  %v884_v50 = vpop.f32.mrf.mxu0  ;;  %v8468_v15 = vld [vmem:[#allocation6_spill] sm:$0xff] }
 0x14c   : > { %4609 = vmatpush3.xpose.msra.mxu0 %v8463_v21  ;;  %4669 = vmatpush3.xpose.msra.mxu1 %v8464_v49  ;;  %v6715_v53 = vadd.f32 %v1208_v34, %v852_v60  ;;  %v6717_v47 = vadd.f32 %v1210_v52, %v854_v48  ;;  %v1215_v26 = vpop.f32.mrf.mxu1  ;;  %v8470_v49 = vld [vmem:[#allocation25_spill] sm:$0xff]  ;;  %v8471_v52 = vld [vmem:[#allocation19_spill] sm:$0xff] }
 0x14d   : > { %4574 = vmatprep.mubr.f32.mxu1 %v8467_v37  ;;  %4610 = vmatprep.subr.mxu0 %v6425_v22  ;;  %v886_v55 = vpop.f32.mrf.mxu0 }
 0x14e   : > { %8465 = vst [vmem:[#allocation20_spill] sm:$0xff] %v6715_v53  ;;  %8466 = vst [vmem:[#allocation29_spill] sm:$0xff] %v6717_v47  ;;  %4515 = vmatmul.mubr.f32.gmra.mxu0 %v8462_v17  ;;  %4670 = vmatprep.subr.mxu1 %v8468_v15  ;;  %v6723_v30 = vpop.permute.xlu1 %374  ;;  %v1217_v54 = vpop.f32.mrf.mxu1 }
 0x14f   : > { %8469 = vst [vmem:[#allocation6_spill] sm:$0xff] %v6723_v30  ;;  %4575 = vmatmul.mubr.f32.gmra.mxu1 %v8467_v37  ;;  %4516 = vmatprep.mubr.f32.mxu0 %v8470_v49  ;;  %v863_v60 = vadd.f32 %v862_v35, %v6723_v30  ;;  %v865_v48 = vadd.f32 %v864_v23, %v6723_v30  ;;  %v895_v34 = vpop.f32.mrf.mxu0  ;;  %v8474_v35 = vld [vmem:[#allocation23_spill] sm:$0xff] }
 0x150   : > { %4611 = vmatpush3.xpose.msra.mxu0 %v6432_v51  ;;  %4671 = vmatpush3.xpose.msra.mxu1 %v8471_v52  ;;  %v1222_v47 = vpop.f32.mrf.mxu1  ;;  %v8476_v52 = vld [vmem:[#allocation26_spill] sm:$0xff] }
 0x151   : > { %4576 = vmatprep.mubr.f32.mxu1 %v8384_v9  ;;  %v6732_v17 = vadd.f32 %v1215_v26, %v863_v60  ;;  %4612 = vmatprep.subr.mxu0 %v6459_v18  ;;  %v6735_v53 = vadd.f32 %v1217_v54, %v865_v48  ;;  %v897_v37 = vpop.f32.mrf.mxu0  ;;  %v8477_v54 = vld [vmem:[#allocation11_spill] sm:$0xff] }
 0x152   : > { %4517 = vmatmul.mubr.f32.gmra.mxu0 %v8470_v49  ;;  %4672 = vmatprep.subr.mxu1 %v8474_v35  ;;  %v6739_v23 = vpop.permute.xlu0 %379  ;;  %v1224_v30 = vpop.f32.mrf.mxu1 }
 0x153   : > { %8472 = vst [vmem:[#allocation25_spill] sm:$0xff] %v6732_v17  ;;  %8473 = vst [vmem:[#allocation114_spill] sm:$0xff] %v6735_v53  ;;  %4577 = vmatmul.mubr.f32.gmra.mxu1 %v8384_v9  ;;  %4518 = vmatprep.mubr.f32.mxu0 %v8476_v52  ;;  %v874_v51 = vadd.f32 %v873_v33, %v6739_v23  ;;  %v876_v26 = vadd.f32 %v875_v14, %v6739_v23  ;;  %v906_v60 = vpop.f32.mrf.mxu0  ;;  %v8480_v33 = vld [vmem:[#allocation31_spill] sm:$0xff]  ;;  %v8482_v9 = vld [vmem:[#allocation14_spill] sm:$0xff] }
 0x154   : > { %8475 = vst [vmem:[#allocation23_spill] sm:$0xff] %v6739_v23  ;;  %4613 = vmatpush3.xpose.msra.mxu0 %v6463_v10  ;;  %4673 = vmatpush3.xpose.msra.mxu1 %v8477_v54  ;;  %v1229_v48 = vpop.f32.mrf.mxu1 }
 0x155   : > { %4578 = vmatprep.mubr.f32.mxu1 %v8391_v6  ;;  %v6748_v49 = vadd.f32 %v1222_v47, %v874_v51  ;;  %4614 = vmatprep.subr.mxu0 %v6474_v61  ;;  %v6751_v53 = vadd.f32 %v1224_v30, %v876_v26  ;;  %v908_v17 = vpop.f32.mrf.mxu0 }
 0x156   : > { %4519 = vmatmul.mubr.f32.gmra.mxu0 %v8476_v52  ;;  %4674 = vmatprep.subr.mxu1 %v8480_v33  ;;  %v1231_v14 = vpop.f32.mrf.mxu1  ;;  %v8484_v52 = vld [vmem:[#allocation99_spill] sm:$0xff] }
 0x157   : > { %8478 = vst [vmem:[#allocation26_spill] sm:$0xff] %v6748_v49  ;;  %8479 = vst [vmem:[#allocation115_spill] sm:$0xff] %v6751_v53  ;;  %4579 = vmatmul.mubr.f32.gmra.mxu1 %v8391_v6  ;;  %v6756_v23 = vpop.permute.xlu1 %384  ;;  %4520 = vmatprep.mubr.f32.mxu0 %v8482_v9  ;;  %v6759_v54 = vpop.f32.mrf.mxu0  ;;  %v8487_v49 = vld [vmem:[#allocation92_spill] sm:$0xff] }
 0x158   : > { %8481 = vst [vmem:[#allocation31_spill] sm:$0xff] %v6756_v23  ;;  %8483 = vst [vmem:[#allocation14_spill] sm:$0xff] %v6759_v54  ;;  %4615 = vmatpush3.xpose.msra.mxu0 %v6485_v46  ;;  %4675 = vmatpush3.xpose.msra.mxu1 %v6403_v0  ;;  %v885_v47 = vadd.f32 %v884_v50, %v6756_v23  ;;  %v887_v51 = vadd.f32 %v886_v55, %v6756_v23  ;;  %v1236_v30 = vpop.f32.mrf.mxu1  ;;  %v8490_v55 = vld [vmem:[#allocation32_spill] sm:$0xff] }
 0x159   : > { %4580 = vmatprep.mubr.f32.mxu1 %v8394_v38  ;;  %4616 = vmatprep.subr.mxu0 %v8484_v52  ;;  %v6767_v26 = vpop.f32.mrf.mxu0 }
 0x15a   : > { %8485 = vst [vmem:[#allocation99_spill] sm:$0xff] %v6767_v26  ;;  %v6769_v53 = vadd.f32 %v1229_v48, %v885_v47  ;;  %4521 = vmatmul.mubr.f32.gmra.mxu0 %v8482_v9  ;;  %4676 = vmatprep.subr.mxu1 %v8487_v49  ;;  %v6773_v6 = vadd.f32 %v1231_v14, %v887_v51  ;;  %v1238_v54 = vpop.f32.mrf.mxu1  ;;  %v8492_v26 = vld [vmem:[#allocation94_spill] sm:$0xff]  ;;  %v8493_v14 = vld [vmem:[#allocation95_spill] sm:$0xff] }
 0x15b   : > { %4581 = vmatmul.mubr.f32.gmra.mxu1 %v8394_v38  ;;  %v6776_v50 = vpop.permute.xlu0 %389  ;;  %4618 = vmatprep.mubr.f32.mxu0 %v8490_v55  ;;  %v6779_v23 = vpop.f32.mrf.mxu0 }
 0x15c   : > { %8486 = vst [vmem:[#allocation116_spill] sm:$0xff] %v6769_v53  ;;  %8488 = vst [vmem:[#allocation92_spill] sm:$0xff] %v6773_v6  ;;  %4617 = vmatpush3.xpose.msra.mxu0 %v6507_v28  ;;  %4677 = vmatpush3.xpose.msra.mxu1 %v8492_v26  ;;  %v898_v48 = vadd.f32 %v897_v37, %v6776_v50  ;;  %v896_v9 = vadd.f32 %v895_v34, %v6776_v50  ;;  %v1243_v47 = vpop.f32.mrf.mxu1  ;;  %v8496_v53 = vand.u32 4294901760, %v6041_v24  ;;  %v8498_v34 = vld [vmem:[#allocation96_spill] sm:$0xff] }
 0x15d   : > { %8489 = vst [vmem:[#allocation117_spill] sm:$0xff] %v6776_v50  ;;  %8491 = vst [vmem:[#allocation32_spill] sm:$0xff] %v6779_v23  ;;  %4582 = vmatprep.mubr.f32.mxu1 %v5743_v32  ;;  %4678 = vmatprep.subr.mxu1 %v8493_v14  ;;  %v6787_v51 = vpop.f32.mrf.mxu0  ;;  %v8499_v50 = vand.u32 4294901760, %v6047_v58 }
 0x15e   : > { %8494 = vst [vmem:[#allocation94_spill] sm:$0xff] %v6787_v51  ;;  %v6789_v6 = vadd.f32 %v1236_v30, %v896_v9  ;;  %4714 = vmatprep.subr.mxu0 %v8496_v53  ;;  %v6793_v38 = vadd.f32 %v1238_v54, %v898_v48  ;;  %v1245_v23 = vpop.f32.mrf.mxu1  ;;  %v8501_v53 = vld [vmem:[#allocation39_spill] sm:$0xff]  ;;  %v8502_v48 = vld [vmem:[#allocation97_spill] sm:$0xff]  ;;  %v8503_v9 = vand.u32 4294901760, %v6059_v31 }
 0x15f   : > { %4583 = vmatmul.mubr.f32.gmra.mxu1 %v5743_v32  ;;  %4619 = vmatmul.mubr.f32.vlgmr.msra.gmra.mxu0 %v8490_v55  ;;  %v6797_v37 = vpop.f32.mrf.mxu0  ;;  %v8508_v31 = vld [vmem:[#allocation43_spill] sm:$0xff]  ;;  %v8548_v32 = vld [vmem:[#allocation74_spill] sm:$0xff] }
 0x160   : > { %8495 = vst [vmem:[#allocation95_spill] sm:$0xff] %v6789_v6  ;;  %8497 = vst [vmem:[#allocation118_spill] sm:$0xff] %v6793_v38  ;;  %4679 = vmatpush3.xpose.msra.mxu1 %v8498_v34  ;;  %4715 = vmatpush3.xpose.msra.mxu0 %v8499_v50  ;;  %v6802_v51 = vpop.permute.xlu1 %394  ;;  %v6804_v30 = vpop.f32.mrf.mxu1 }
 0x161   : > { %8500 = vst [vmem:[#allocation96_spill] sm:$0xff] %v6802_v51  ;;  %v909_v24 = vadd.f32 %v908_v17, %v6802_v51  ;;  %4584 = vmatprep.mubr.f32.mxu1 %v5764_v62  ;;  %4620 = vmatprep.mubr.f32.mxu0 %v8501_v53  ;;  %v907_v54 = vadd.f32 %v906_v60, %v6802_v51  ;;  %v6810_v55 = vpop.f32.mrf.mxu0  ;;  %v8506_v60 = vld [vmem:[#allocation98_spill] sm:$0xff]  ;;  %v8507_v51 = vand.u32 4294901760, %v6076_v36 }
 0x162   : > { %4680 = vmatprep.subr.mxu1 %v8502_v48  ;;  %4716 = vmatprep.subr.mxu0 %v8503_v9  ;;  %v6815_v58 = vpop.f32.mrf.mxu1  ;;  %v8509_v9 = vld [vmem:[#allocation34_spill] sm:$0xff] }
 0x163   : > { %v6817_v50 = vadd.f32 %v1243_v47, %v907_v54  ;;  %4585 = vmatmul.mubr.f32.gmra.mxu1 %v5764_v62  ;;  %4621 = vmatmul.mubr.f32.gmra.mxu0 %v8501_v53  ;;  %v6821_v17 = vadd.f32 %v1245_v23, %v909_v24  ;;  %v6823_v38 = vpop.f32.mrf.mxu0  ;;  %v8510_v54 = vand.u32 4294901760, %v6094_v2  ;;  %v8512_v53 = vld [vmem:[#allocation46_spill] sm:$0xff]  ;;  %v8513_v2 = vld [vmem:[#allocation41_spill] sm:$0xff] }
 0x164   : > { %4681 = vmatpush3.xpose.msra.mxu1 %v8506_v60  ;;  %4717 = vmatpush3.xpose.msra.mxu0 %v8507_v51  ;;  %v6828_v6 = vpop.f32.mrf.mxu1  ;;  %v8511_v51 = vand.u32 4294901760, %v6091_v59  ;;  %v8515_v59 = vand.u32 4294901760, %v6137_v57  ;;  %v8519_v57 = vand.u32 4294901760, %v6177_v4 }
 0x165   : > { %8504 = vst [vmem:[#allocation39_spill] sm:$0xff] %v6817_v50  ;;  %8505 = vst [vmem:[#allocation97_spill] sm:$0xff] %v6821_v17  ;;  %4622 = vmatprep.mubr.f32.mxu0 %v8508_v31  ;;  %4682 = vmatprep.mubr.f32.mxu1 %v8509_v9  ;;  %v6832_v47 = vpop.f32.mrf.mxu0  ;;  %v8539_v17 = vld [vmem:[#allocation66_spill] sm:$0xff]  ;;  %v8547_v50 = vld [vmem:[#allocation36_spill] sm:$0xff] }
 0x166   : > { %4718 = vmatprep.subr.mxu0 %v8510_v54  ;;  %4778 = vmatprep.subr.mxu1 %v6016_v27  ;;  %v6837_v23 = vpop.f32.mrf.mxu1  ;;  %v8514_v54 = vand.u32 4294901760, %v6140_v16  ;;  %v8517_v16 = vld [vmem:[#allocation45_spill] sm:$0xff] }
 0x167   : > { %4623 = vmatmul.mubr.f32.gmra.mxu0 %v8508_v31  ;;  %4683 = vmatmul.mubr.f32.vlgmr.msra.gmra.mxu1 %v8509_v9  ;;  %v6841_v36 = vpop.f32.mrf.mxu0 }
 0x168   : > { %4719 = vmatpush3.xpose.msra.mxu0 %v8511_v51  ;;  %4779 = vmatpush3.xpose.msra.mxu1 %v6022_v25  ;;  %v6846_v24 = vpop.f32.mrf.mxu1  ;;  %v8516_v51 = vld [vmem:[#allocation51_spill] sm:$0xff] }
 0x169   : > { %4624 = vmatprep.mubr.f32.mxu0 %v8512_v53  ;;  %4684 = vmatprep.mubr.f32.mxu1 %v8513_v2  ;;  %v6850_v27 = vpop.f32.mrf.mxu0 }
 0x16a   : > { %4720 = vmatprep.subr.mxu0 %v8514_v54  ;;  %4780 = vmatprep.subr.mxu1 %v6033_v56  ;;  %v6855_v31 = vpop.f32.mrf.mxu1  ;;  %v8518_v54 = vand.u32 4294901760, %v6168_v43  ;;  %v8521_v43 = vld [vmem:[#allocation50_spill] sm:$0xff] }
 0x16b   : > { %4625 = vmatmul.mubr.f32.gmra.mxu0 %v8512_v53  ;;  %4685 = vmatmul.mubr.f32.gmra.mxu1 %v8513_v2  ;;  %v6859_v25 = vpop.f32.mrf.mxu0 }
 0x16c   : > { %4721 = vmatpush3.xpose.msra.mxu0 %v8515_v59  ;;  %4781 = vmatpush3.xpose.msra.mxu1 %v6049_v29  ;;  %v6864_v9 = vpop.f32.mrf.mxu1  ;;  %v8520_v59 = vld [vmem:[#allocation52_spill] sm:$0xff] }
 0x16d   : > { %4626 = vmatprep.mubr.f32.mxu0 %v8516_v51  ;;  %4686 = vmatprep.mubr.f32.mxu1 %v8517_v16  ;;  %v6868_v56 = vpop.f32.mrf.mxu0 }
 0x16e   : > { %4722 = vmatprep.subr.mxu0 %v8518_v54  ;;  %4782 = vmatprep.subr.mxu1 %v6067_v19  ;;  %v6873_v53 = vpop.f32.mrf.mxu1  ;;  %v8522_v54 = vand.u32 4294901760, %v6187_v12  ;;  %v8525_v12 = vld [vmem:[#allocation54_spill] sm:$0xff] }
 0x16f   : > { %4627 = vmatmul.mubr.f32.gmra.mxu0 %v8516_v51  ;;  %4687 = vmatmul.mubr.f32.gmra.mxu1 %v8517_v16  ;;  %v6877_v29 = vpop.f32.mrf.mxu0 }
 0x170   : > { %4723 = vmatpush3.xpose.msra.mxu0 %v8519_v57  ;;  %4783 = vmatpush3.xpose.msra.mxu1 %v6069_v7  ;;  %v6882_v2 = vpop.f32.mrf.mxu1  ;;  %v8523_v7 = vand.u32 4294901760, %v6208_v45  ;;  %v8524_v57 = vld [vmem:[#allocation59_spill] sm:$0xff] }
 0x171   : > { %4628 = vmatprep.mubr.f32.mxu0 %v8520_v59  ;;  %4688 = vmatprep.mubr.f32.mxu1 %v8521_v43  ;;  %v6886_v19 = vpop.f32.mrf.mxu0 }
 0x172   : > { %4724 = vmatprep.subr.mxu0 %v8522_v54  ;;  %4784 = vmatprep.subr.mxu1 %v6104_v3  ;;  %v6891_v51 = vpop.f32.mrf.mxu1  ;;  %v8526_v3 = vand.u32 4294901760, %v6231_v39  ;;  %v8528_v54 = vld [vmem:[#allocation63_spill] sm:$0xff]  ;;  %v8529_v39 = vld [vmem:[#allocation58_spill] sm:$0xff] }
 0x173   : > { %4629 = vmatmul.mubr.f32.gmra.mxu0 %v8520_v59  ;;  %4689 = vmatmul.mubr.f32.gmra.mxu1 %v8521_v43 }
 0x174   : > { %4725 = vmatpush3.xpose.msra.mxu0 %v8523_v7  ;;  %4785 = vmatpush3.xpose.msra.mxu1 %v6106_v8  ;;  %v6898_v4 = vpop.f32.mrf.mxu0  ;;  %v6900_v16 = vpop.f32.mrf.mxu1  ;;  %v8527_v8 = vand.u32 4294901760, %v6228_v63  ;;  %v8530_v7 = vand.u32 4294901760, %v6270_v44  ;;  %v8531_v63 = vand.u32 4294901760, %v8430_v1 }
 0x175   : > { %4630 = vmatprep.mubr.f32.mxu0 %v8524_v57  ;;  %4690 = vmatprep.mubr.f32.mxu1 %v8525_v12 }
 0x176   : > { %4726 = vmatprep.subr.mxu0 %v8526_v3  ;;  %4786 = vmatprep.subr.mxu1 %v6126_v42  ;;  %v6907_v59 = vpop.f32.mrf.mxu0  ;;  %v6909_v43 = vpop.f32.mrf.mxu1  ;;  %v8533_v3 = vld [vmem:[#allocation62_spill] sm:$0xff] }
 0x177   : > { %4631 = vmatmul.mubr.f32.gmra.mxu0 %v8524_v57  ;;  %4691 = vmatmul.mubr.f32.gmra.mxu1 %v8525_v12  ;;  %v8532_v12 = vld [vmem:[#allocation64_spill] sm:$0xff] }
 0x178   : > { %4727 = vmatpush3.xpose.msra.mxu0 %v8527_v8  ;;  %4787 = vmatpush3.xpose.msra.mxu1 %v6147_v20  ;;  %v6916_v45 = vpop.f32.mrf.mxu0  ;;  %v8534_v8 = vand.u32 4294901760, %v8434_v41 }
 0x179   : > { %4632 = vmatprep.mubr.f32.mxu0 %v8528_v54  ;;  %4692 = vmatprep.mubr.f32.mxu1 %v8529_v39  ;;  %v6920_v42 = vpop.f32.mrf.mxu1 }
 0x17a   : > { %4728 = vmatprep.subr.mxu0 %v8530_v7  ;;  %4788 = vmatprep.subr.mxu1 %v6156_v13  ;;  %v6925_v57 = vpop.f32.mrf.mxu0  ;;  %v8537_v7 = vld [vmem:[#allocation21_spill] sm:$0xff] }
 0x17b   : > { %4633 = vmatmul.mubr.f32.gmra.mxu0 %v8528_v54  ;;  %4693 = vmatmul.mubr.f32.gmra.mxu1 %v8529_v39  ;;  %v6929_v20 = vpop.f32.mrf.mxu1  ;;  %v8535_v54 = vld [vmem:[#allocation5_spill] sm:$0xff] }
 0x17c   : > { %4729 = vmatpush3.xpose.msra.mxu0 %v8531_v63  ;;  %4789 = vmatpush3.xpose.msra.mxu1 %v8431_v40  ;;  %v8536_v39 = vand.u32 4294901760, %v8535_v54  ;;  %v8538_v63 = vld [vmem:[#allocation70_spill] sm:$0xff] }
 0x17d   : > { %4634 = vmatprep.mubr.f32.mxu0 %v8532_v12  ;;  %4694 = vmatprep.mubr.f32.mxu1 %v8533_v3  ;;  %v6936_v44 = vpop.f32.mrf.mxu0  ;;  %v6938_v13 = vpop.f32.mrf.mxu1 }
 0x17e   : > { %4730 = vmatprep.subr.mxu0 %v8534_v8  ;;  %4790 = vmatprep.subr.mxu1 %v8435_v11  ;;  %v8541_v11 = vld [vmem:[#allocation16_spill] sm:$0xff] }
 0x17f   : > { %4635 = vmatmul.mubr.f32.gmra.mxu0 %v8532_v12  ;;  %4695 = vmatmul.mubr.f32.gmra.mxu1 %v8533_v3  ;;  %v6945_v1 = vpop.f32.mrf.mxu0  ;;  %v6947_v40 = vpop.f32.mrf.mxu1  ;;  %v8542_v8 = vand.u32 4294901760, %v8541_v11  ;;  %v8543_v12 = vld [vmem:[#allocation22_spill] sm:$0xff]  ;;  %v8549_v11 = vld [vmem:[#allocation68_spill] sm:$0xff] }
 0x180   : > { %4731 = vmatpush3.xpose.msra.mxu0 %v8536_v39  ;;  %4791 = vmatpush3.xpose.msra.mxu1 %v8537_v7  ;;  %v8545_v39 = vld [vmem:[#allocation7_spill] sm:$0xff] }
 0x181   : > { %4636 = vmatprep.mubr.f32.mxu0 %v8538_v63  ;;  %4696 = vmatprep.mubr.f32.mxu1 %v8539_v17  ;;  %v6954_v41 = vpop.f32.mrf.mxu0  ;;  %v8546_v7 = vand.u32 4294901760, %v8545_v39  ;;  %v8556_v39 = vld [vmem:[#allocation28_spill] sm:$0xff] }
 0x182   : > { %8540 = vst [vmem:[#allocation98_spill] sm:$0xff] %v6954_v41  ;;  %4732 = vmatprep.subr.mxu0 %v8542_v8  ;;  %4792 = vmatprep.subr.mxu1 %v8543_v12  ;;  %v6959_v3 = vpop.f32.mrf.mxu1  ;;  %v8550_v8 = vld [vmem:[#allocation9_spill] sm:$0xff]  ;;  %v8552_v41 = vld [vmem:[#allocation24_spill] sm:$0xff] }
 0x183   : > { %4637 = vmatmul.mubr.f32.gmra.mxu0 %v8538_v63  ;;  %4697 = vmatmul.mubr.f32.gmra.mxu1 %v8539_v17  ;;  %v6963_v54 = vpop.f32.mrf.mxu0  ;;  %v8551_v12 = vand.u32 4294901760, %v8550_v8  ;;  %v8558_v8 = vld [vmem:[#allocation78_spill] sm:$0xff] }
 0x184   : > { %8544 = vst [vmem:[#allocation43_spill] sm:$0xff] %v6963_v54  ;;  %4733 = vmatpush3.xpose.msra.mxu0 %v8546_v7  ;;  %4793 = vmatpush3.xpose.msra.mxu1 %v8547_v50  ;;  %v6968_v62 = vpop.f32.mrf.mxu1  ;;  %v8555_v50 = vand.u32 4294901760, %v8455_v5 }
 0x185   : > { %4638 = vmatprep.mubr.f32.mxu0 %v8548_v32  ;;  %4698 = vmatprep.mubr.f32.mxu1 %v8549_v11 }
 0x186   : > { %4734 = vmatprep.subr.mxu0 %v8551_v12  ;;  %4794 = vmatprep.subr.mxu1 %v8552_v41  ;;  %v6975_v63 = vpop.f32.mrf.mxu0  ;;  %v6977_v17 = vpop.f32.mrf.mxu1  ;;  %v8559_v41 = vld [vmem:[#allocation73_spill] sm:$0xff]  ;;  %v8560_v12 = vld [vmem:[#allocation91_spill] sm:$0xff] }
 0x187   : > { %8553 = vst [vmem:[#allocation34_spill] sm:$0xff] %v6975_v63  ;;  %8554 = vst [vmem:[#allocation46_spill] sm:$0xff] %v6977_v17  ;;  %4639 = vmatmul.mubr.f32.gmra.mxu0 %v8548_v32  ;;  %4699 = vmatmul.mubr.f32.gmra.mxu1 %v8549_v11  ;;  %v8561_v63 = vand.u32 4294901760, %v8560_v12  ;;  %v8562_v17 = vld [vmem:[#allocation33_spill] sm:$0xff]  ;;  %v8564_v11 = vand.u32 4294901760, %v8463_v21  ;;  %v8569_v12 = vand.u32 4294901760, %v6425_v22 }
 0x188   : > { %4735 = vmatpush3.xpose.msra.mxu0 %v8555_v50  ;;  %4795 = vmatpush3.xpose.msra.mxu1 %v8556_v39  ;;  %v6984_v7 = vpop.f32.mrf.mxu0  ;;  %v6986_v54 = vpop.f32.mrf.mxu1  ;;  %v8565_v50 = vld [vmem:[#allocation13_spill] sm:$0xff] }
 0x189   : > { %8557 = vst [vmem:[#allocation41_spill] sm:$0xff] %v6984_v7  ;;  %4640 = vmatprep.mubr.f32.mxu0 %v8558_v8  ;;  %4700 = vmatprep.mubr.f32.mxu1 %v8559_v41  ;;  %v8567_v7 = vld [vmem:[#allocation83_spill] sm:$0xff] }
 0x18a   : > { %4736 = vmatprep.subr.mxu0 %v8561_v63  ;;  %4796 = vmatprep.subr.mxu1 %v8562_v17  ;;  %v6993_v32 = vpop.f32.mrf.mxu0  ;;  %v8568_v63 = vld [vmem:[#allocation77_spill] sm:$0xff] }
 0x18b   : > { %8563 = vst [vmem:[#allocation51_spill] sm:$0xff] %v6993_v32  ;;  %4641 = vmatmul.mubr.f32.gmra.mxu0 %v8558_v8  ;;  %4701 = vmatmul.mubr.f32.gmra.mxu1 %v8559_v41  ;;  %v6997_v5 = vpop.f32.mrf.mxu1  ;;  %v8571_v41 = vld [vmem:[#allocation93_spill] sm:$0xff]  ;;  %v8575_v32 = vld [vmem:[#allocation82_spill] sm:$0xff] }
 0x18c   : > { %4737 = vmatpush3.xpose.msra.mxu0 %v8564_v11  ;;  %4797 = vmatpush3.xpose.msra.mxu1 %v8565_v50  ;;  %v7002_v39 = vpop.f32.mrf.mxu0  ;;  %v8572_v11 = vand.u32 4294901760, %v8571_v41  ;;  %v8573_v50 = vld [vmem:[#allocation19_spill] sm:$0xff] }
 0x18d   : > { %8566 = vst [vmem:[#allocation45_spill] sm:$0xff] %v7002_v39  ;;  %4642 = vmatprep.mubr.f32.mxu0 %v8567_v7  ;;  %4702 = vmatprep.mubr.f32.mxu1 %v8568_v63  ;;  %v7006_v17 = vpop.f32.mrf.mxu1  ;;  %v8574_v39 = vld [vmem:[#allocation87_spill] sm:$0xff] }
 0x18e   : > { %4738 = vmatprep.subr.mxu0 %v8569_v12  ;;  %4798 = vmatprep.subr.mxu1 %v8468_v15  ;;  %v8579_v12 = vand.u32 4294901760, %v6463_v10  ;;  %v8580_v41 = vld [vmem:[#allocation11_spill] sm:$0xff]  ;;  %v8587_v10 = vand.u32 4294901760, %v6485_v46 }
 0x18f   : > { %4643 = vmatmul.mubr.f32.gmra.mxu0 %v8567_v7  ;;  %4703 = vmatmul.mubr.f32.gmra.mxu1 %v8568_v63  ;;  %v7013_v21 = vpop.f32.mrf.mxu0  ;;  %v7015_v8 = vpop.f32.mrf.mxu1  ;;  %v8577_v7 = vand.u32 4294901760, %v6459_v18 }
 0x190   : > { %8570 = vst [vmem:[#allocation52_spill] sm:$0xff] %v7013_v21  ;;  %4739 = vmatpush3.xpose.msra.mxu0 %v8572_v11  ;;  %4799 = vmatpush3.xpose.msra.mxu1 %v8573_v50  ;;  %v8582_v50 = vld [vmem:[#allocation89_spill] sm:$0xff] }
 0x191   : > { %4644 = vmatprep.mubr.f32.mxu0 %v8574_v39  ;;  %4704 = vmatprep.mubr.f32.mxu1 %v8575_v32  ;;  %v7022_v22 = vpop.f32.mrf.mxu0  ;;  %v7024_v15 = vpop.f32.mrf.mxu1 }
 0x192   : > { %8576 = vst [vmem:[#allocation50_spill] sm:$0xff] %v7022_v22  ;;  %4740 = vmatprep.subr.mxu0 %v8577_v7  ;;  %4800 = vmatprep.subr.mxu1 %v8474_v35  ;;  %v8583_v22 = vld [vmem:[#allocation86_spill] sm:$0xff]  ;;  %v8585_v35 = vand.u32 4294901760, %v6474_v61  ;;  %v8591_v61 = vld [vmem:[#allocation88_spill] sm:$0xff] }
 0x193   : > { %4645 = vmatmul.mubr.f32.gmra.mxu0 %v8574_v39  ;;  %4705 = vmatmul.mubr.f32.gmra.mxu1 %v8575_v32  ;;  %v7031_v63 = vpop.f32.mrf.mxu0 }
 0x194   : > { %8578 = vst [vmem:[#allocation59_spill] sm:$0xff] %v7031_v63  ;;  %4741 = vmatpush3.xpose.msra.mxu0 %v8579_v12  ;;  %4801 = vmatpush3.xpose.msra.mxu1 %v8580_v41  ;;  %v7036_v11 = vpop.f32.mrf.mxu1  ;;  %v8590_v12 = vld [vmem:[#allocation90_spill] sm:$0xff]  ;;  %v8592_v41 = vand.u32 4294901760, %v8484_v52  ;;  %v8611_v63 = vld [vmem:[#allocation32_spill] sm:$0xff] }
 0x195   : > { %8581 = vst [vmem:[#allocation54_spill] sm:$0xff] %v7036_v11  ;;  %4646 = vmatprep.mubr.f32.mxu0 %v8582_v50  ;;  %4706 = vmatprep.mubr.f32.mxu1 %v8583_v22  ;;  %v7040_v18 = vpop.f32.mrf.mxu0  ;;  %v8598_v52 = vld [vmem:[#allocation30_spill] sm:$0xff] }
 0x196   : > { %8584 = vst [vmem:[#allocation63_spill] sm:$0xff] %v7040_v18  ;;  %4742 = vmatprep.subr.mxu0 %v8585_v35  ;;  %4802 = vmatprep.subr.mxu1 %v8480_v33  ;;  %v7045_v32 = vpop.f32.mrf.mxu1  ;;  %v3820_v33 = vlaneseq  ;;  %v8597_v35 = vld [vmem:[#allocation10_spill] sm:$0xff]  ;;  %v8609_v18 = vld [vmem:[#allocation40_spill] sm:$0xff] }
 0x197   : > { %8586 = vst [vmem:[#allocation58_spill] sm:$0xff] %v7045_v32  ;;  %4647 = vmatmul.mubr.f32.gmra.mxu0 %v8582_v50  ;;  %4707 = vmatmul.mubr.f32.gmra.mxu1 %v8583_v22 }
 0x198   : > { %4743 = vmatpush3.xpose.msra.mxu0 %v8587_v10  ;;  %4803 = vmatpush3.xpose.msra.mxu1 %v6403_v0  ;;  %v7052_v39 = vpop.f32.mrf.mxu0  ;;  %v7054_v7 = vpop.f32.mrf.mxu1  ;;  %v8595_v0 = vand.u32 4294901760, %v6507_v28  ;;  %v7074_v10 = vshrl.u32 %v3820_v33, 7 }
 0x199   : > { %8588 = vst [vmem:[#allocation64_spill] sm:$0xff] %v7052_v39  ;;  %8589 = vst [vmem:[#allocation62_spill] sm:$0xff] %v7054_v7  ;;  %4648 = vmatprep.mubr.f32.mxu0 %v8590_v12  ;;  %4708 = vmatprep.mubr.f32.mxu1 %v8591_v61 }
 0x19a   : > { %4744 = vmatprep.subr.mxu0 %v8592_v41  ;;  %4804 = vmatprep.subr.mxu1 %v8487_v49  ;;  %v7061_v22 = vpop.f32.mrf.mxu0  ;;  %v7063_v46 = vpop.f32.mrf.mxu1  ;;  %8599 = vst [vmem:[#allocation66_spill] sm:$0xff] %v7074_v10  ;;  %v8603_v41 = vld [vmem:[#allocation14_spill] sm:$0xff] }
 0x19b   : > { %8593 = vst [vmem:[#allocation5_spill] sm:$0xff] %v7061_v22  ;;  %8594 = vst [vmem:[#allocation21_spill] sm:$0xff] %v7063_v46  ;;  %4649 = vmatmul.mubr.f32.gmra.mxu0 %v8590_v12  ;;  %4709 = vmatmul.mubr.f32.gmra.mxu1 %v8591_v61  ;;  %v8602_v61 = vld [vmem:[#allocation38_spill] sm:$0xff]  ;;  %v8604_v22 = vld [vmem:[#allocation37_spill] sm:$0xff] }
 0x19c   : > { %4745 = vmatpush3.xpose.msra.mxu0 %v8595_v0  ;;  %4805 = vmatpush3.xpose.msra.mxu1 %v8492_v26  ;;  %v7070_v50 = vpop.f32.mrf.mxu1  ;;  %v8601_v26 = vld [vmem:[#allocation12_spill] sm:$0xff]  ;;  %v1381_v0 = vadd.f32 %v8603_v41, %v8602_v61  ;;  %v8610_v46 = vld [vmem:[#allocation53_spill] sm:$0xff] }
 0x19d   : > { %8596 = vst [vmem:[#allocation70_spill] sm:$0xff] %v7070_v50  ;;  %4710 = vmatprep.mubr.f32.mxu1 %v8597_v35  ;;  %4746 = vmatprep.mubr.f32.mxu0 %v8598_v52  ;;  %v1909_v49 = vpop.f32.mrf.mxu0  ;;  %v8607_v50 = vld [vmem:[#allocation99_spill] sm:$0xff]  ;;  %v1389_v7 = vadd.f32 %v8611_v63, %v8610_v46  ;;  %v8614_v46 = vld [vmem:[#allocation57_spill] sm:$0xff] }
 0x19e   : > { %4806 = vmatprep.subr.mxu1 %v8493_v14  ;;  %v7077_v12 = vpop.f32.mrf.mxu1  ;;  %v3822_v14 = vsub.s32 0, %v7074_v10  ;;  %v1607_v41 = vadd.f32 %v6804_v30, %v1381_v0 }
 0x19f   : > { %8600 = vst [vmem:[#allocation16_spill] sm:$0xff] %v7077_v12  ;;  %4711 = vmatmul.mubr.f32.gmra.mxu1 %v8597_v35  ;;  %4747 = vmatmul.mubr.f32.vlgmr.msra.gmra.mxu0 %v8598_v52  ;;  %v1911_v28 = vpop.f32.mrf.mxu0  ;;  %v3826_v35 = vsub.s32 1, %v7074_v10  ;;  %v8606_v12 = vld [vmem:[#allocation49_spill] sm:$0xff]  ;;  %v1616_v21 = vadd.f32 %v6828_v6, %v1389_v7 }
 0x1a0   : > { %4807 = vmatpush3.xpose.msra.mxu1 %v8498_v34  ;;  %4712 = vmatprep.mubr.f32.mxu1 %v8601_v26  ;;  %v3818_v34 = vld [vmem:[%s7773_s3] sm:$0xf]  ;;  %v1383_v61 = vadd.f32 %v8607_v50, %v8606_v12  ;;  %v1910_v32 = vadd.f32 %v1909_v49, %v1607_v41  ;;  %v8612_v12 = vld [vmem:[#allocation102_spill] sm:$0xff]  ;;  %v1397_v49 = vadd.f32 %v6797_v37, %v8614_v46 }
 0x1a1   : > { %4748 = vmatprep.mubr.f32.mxu0 %v8604_v22  ;;  %v7086_v33 = vpop.f32.mrf.mxu1  ;;  %v1916_v39 = vpop.f32.mrf.mxu0  ;;  %4808 = vmatprep.subr.mxu1 %v8502_v48  ;;  %v7110_v50 = vrot.slane %v3818_v34, %v3822_v14  ;;  %v8619_v46 = vld [vmem:[#allocation106_spill] sm:$0xff] }
 0x1a2   : > { %8605 = vst [vmem:[#allocation22_spill] sm:$0xff] %v7086_v33  ;;  %v1609_v10 = vadd.f32 %v6815_v58, %v1383_v61  ;;  %v8615_v61 = vld [vmem:[#allocation44_spill] sm:$0xff] }
 0x1a3   : > { %4713 = vmatmul.mubr.f32.gmra.mxu1 %v8601_v26  ;;  %4749 = vmatmul.mubr.f32.gmra.mxu0 %v8604_v22  ;;  %v7100_v48 = vpop.f32.mrf.mxu1  ;;  %v1918_v33 = vpop.f32.mrf.mxu0  ;;  %v8613_v26 = vld [vmem:[#allocation94_spill] sm:$0xff] }
 0x1a4   : > { %8608 = vst [vmem:[#allocation7_spill] sm:$0xff] %v7100_v48  ;;  %4809 = vmatpush3.xpose.msra.mxu1 %v8506_v60  ;;  %4750 = vmatprep.mubr.f32.mxu0 %v8609_v18  ;;  %v1391_v0 = vadd.f32 %v8613_v26, %v8612_v12  ;;  %v7114_v60 = vrot.slane %v3818_v34, %v3826_v35 }
 0x1a5   : > { %4810 = vmatprep.mubr.f32.mxu1 %v8598_v52  ;;  %v1923_v30 = vpop.f32.mrf.mxu0  ;;  %v1912_v11 = vadd.f32 %v1911_v28, %v1609_v10  ;;  %v1917_v35 = vadd.f32 %v1916_v39, %v1616_v21  ;;  %v8616_v10 = vld [vmem:[#allocation104_spill] sm:$0xff]  ;;  %v8618_v39 = vld [vmem:[#allocation47_spill] sm:$0xff] }
 0x1a6   : > { %v2118_v48 = vpop.f32.mrf.mxu1  ;;  %v1618_v34 = vadd.f32 %v6837_v23, %v1391_v0  ;;  %v1399_v28 = vadd.f32 %v6810_v55, %v8616_v10 }
 0x1a7   : > { %v2119_v63 = vadd.f32 %v2118_v48, %v1910_v32  ;;  %4751 = vmatmul.mubr.f32.gmra.mxu0 %v8609_v18  ;;  %4811 = vmatmul.mubr.f32.vlgmr.msra.gmra.mxu1 %v8598_v52  ;;  %v1925_v58 = vpop.f32.mrf.mxu0  ;;  %v1625_v52 = vadd.f32 %v6846_v24, %v1397_v49 }
 0x1a8   : > { %v2120_v14 = vpop.f32.mrf.mxu1  ;;  %4752 = vmatprep.mubr.f32.mxu0 %v8615_v61  ;;  %4812 = vmatprep.mubr.f32.mxu1 %v8604_v22  ;;  %v1919_v48 = vadd.f32 %v1918_v33, %v1618_v34  ;;  %v1627_v33 = vadd.f32 %v6855_v31, %v1399_v28 }
 0x1a9   : > { %v3840_v6 = vadd.f32 %v7110_v50, %v2119_v63  ;;  %v2121_v7 = vadd.f32 %v2120_v14, %v1912_v11  ;;  %v1930_v32 = vpop.f32.mrf.mxu0  ;;  %v8617_v11 = vld [vmem:[#allocation61_spill] sm:$0xff]  ;;  %v1924_v12 = vadd.f32 %v1923_v30, %v1625_v52 }
 0x1aa   : > { %v2125_v41 = vpop.f32.mrf.mxu1  ;;  %v1405_v55 = vadd.f32 %v6823_v38, %v8617_v11  ;;  %v1926_v14 = vadd.f32 %v1925_v58, %v1627_v33  ;;  %v8620_v30 = vld [vmem:[#allocation65_spill] sm:$0xff] }
 0x1ab   : > { %3904 = vst [vmem:[%s7128_s30] sm:$0xff] %v3840_v6  ;;  %v3841_v37 = vadd.f32 %v7114_v60, %v2121_v7  ;;  %v2126_v23 = vadd.f32 %v2125_v41, %v1917_v35  ;;  %4753 = vmatmul.mubr.f32.gmra.mxu0 %v8615_v61  ;;  %4813 = vmatmul.mubr.f32.gmra.mxu1 %v8604_v22  ;;  %v1932_v21 = vpop.f32.mrf.mxu0  ;;  %v8622_v41 = vld [vmem:[#allocation108_spill] sm:$0xff] }
 0x1ac   : > { %v2127_v24 = vpop.f32.mrf.mxu1  ;;  %4754 = vmatprep.mubr.f32.mxu0 %v8618_v39  ;;  %4814 = vmatprep.mubr.f32.mxu1 %v8609_v18  ;;  %v1407_v22 = vadd.f32 %v6832_v47, %v8619_v46  ;;  %v1634_v49 = vadd.f32 %v6864_v9, %v1405_v55  ;;  %v1413_v6 = vadd.f32 %v6841_v36, %v8620_v30  ;;  %v8621_v47 = vld [vmem:[#allocation48_spill] sm:$0xff] }
 0x1ad   : > { %3905 = vst [vmem:[%s7128_s30 + $0x8] sm:$0xff] %v3841_v37  ;;  %v3844_v26 = vadd.f32 %v7110_v50, %v2126_v23  ;;  %v2128_v0 = vadd.f32 %v2127_v24, %v1919_v48  ;;  %v1937_v63 = vpop.f32.mrf.mxu0 }
 0x1ae   : > { %v2132_v38 = vpop.f32.mrf.mxu1  ;;  %v1636_v9 = vadd.f32 %v6873_v53, %v1407_v22  ;;  %v1931_v58 = vadd.f32 %v1930_v32, %v1634_v49  ;;  %v1643_v48 = vadd.f32 %v6882_v2, %v1413_v6  ;;  %v8623_v32 = vld [vmem:[#allocation109_spill] sm:$0xff] }
 0x1af   : > { %3908 = vst [vmem:[%s7128_s30 + $0x20] sm:$0xff] %v3844_v26  ;;  %v3845_v34 = vadd.f32 %v7114_v60, %v2128_v0  ;;  %v2133_v35 = vadd.f32 %v2132_v38, %v1924_v12  ;;  %4755 = vmatmul.mubr.f32.gmra.mxu0 %v8618_v39  ;;  %4815 = vmatmul.mubr.f32.gmra.mxu1 %v8609_v18  ;;  %v1939_v31 = vpop.f32.mrf.mxu0  ;;  %v8625_v0 = vld [vmem:[#allocation72_spill] sm:$0xff] }
 0x1b0   : > { %v2134_v7 = vpop.f32.mrf.mxu1  ;;  %4756 = vmatprep.mubr.f32.mxu0 %v8621_v47  ;;  %4816 = vmatprep.mubr.f32.mxu1 %v8615_v61  ;;  %v1415_v18 = vadd.f32 %v6850_v27, %v8622_v41  ;;  %v1933_v37 = vadd.f32 %v1932_v21, %v1636_v9  ;;  %v1421_v55 = vadd.f32 %v6859_v25, %v8623_v32  ;;  %v8624_v27 = vld [vmem:[#allocation55_spill] sm:$0xff] }
 0x1b1   : > { %3909 = vst [vmem:[%s7128_s30 + $0x28] sm:$0xff] %v3845_v34  ;;  %v3848_v10 = vadd.f32 %v7110_v50, %v2133_v35  ;;  %v2135_v28 = vadd.f32 %v2134_v7, %v1926_v14  ;;  %v1944_v52 = vpop.f32.mrf.mxu0  ;;  %v1938_v21 = vadd.f32 %v1937_v63, %v1643_v48  ;;  %v8626_v63 = vld [vmem:[#allocation111_spill] sm:$0xff]  ;;  %v8628_v7 = vld [vmem:[#allocation76_spill] sm:$0xff] }
 0x1b2   : > { %v2139_v36 = vpop.f32.mrf.mxu1  ;;  %v1645_v2 = vadd.f32 %v6891_v51, %v1415_v18  ;;  %v1652_v46 = vadd.f32 %v6900_v16, %v1421_v55  ;;  %v1429_v14 = vadd.f32 %v6877_v29, %v8626_v63 }
 0x1b3   : > { %3912 = vst [vmem:[%s7128_s30 + $0x40] sm:$0xff] %v3848_v10  ;;  %v3849_v23 = vadd.f32 %v7114_v60, %v2135_v28  ;;  %v2140_v11 = vadd.f32 %v2139_v36, %v1931_v58  ;;  %4757 = vmatmul.mubr.f32.gmra.mxu0 %v8621_v47  ;;  %4817 = vmatmul.mubr.f32.gmra.mxu1 %v8615_v61  ;;  %v1946_v53 = vpop.f32.mrf.mxu0 }
 0x1b4   : > { %v2141_v24 = vpop.f32.mrf.mxu1  ;;  %4758 = vmatprep.mubr.f32.mxu0 %v8624_v27  ;;  %4818 = vmatprep.mubr.f32.mxu1 %v8618_v39  ;;  %v1423_v61 = vadd.f32 %v6868_v56, %v8625_v0  ;;  %v1940_v22 = vadd.f32 %v1939_v31, %v1645_v2  ;;  %v8627_v56 = vld [vmem:[#allocation56_spill] sm:$0xff]  ;;  %v1945_v35 = vadd.f32 %v1944_v52, %v1652_v46  ;;  %v8629_v52 = vld [vmem:[#allocation15_spill] sm:$0xff]  ;;  %v8632_v2 = vld [vmem:[#allocation81_spill] sm:$0xff] }
 0x1b5   : > { %3913 = vst [vmem:[%s7128_s30 + $0x48] sm:$0xff] %v3849_v23  ;;  %v3852_v33 = vadd.f32 %v7110_v50, %v2140_v11  ;;  %v2142_v12 = vadd.f32 %v2141_v24, %v1933_v37  ;;  %v1951_v26 = vpop.f32.mrf.mxu0  ;;  %v1661_v9 = vadd.f32 %v6920_v42, %v1429_v14  ;;  %v1437_v41 = vadd.f32 %v6898_v4, %v8629_v52  ;;  %v8631_v11 = vld [vmem:[#allocation35_spill] sm:$0xff]  ;;  %v8634_v46 = vld [vmem:[#allocation85_spill] sm:$0xff] }
 0x1b6   : > { %v2146_v25 = vpop.f32.mrf.mxu1  ;;  %v1654_v16 = vadd.f32 %v6909_v43, %v1423_v61 }
 0x1b7   : > { %3916 = vst [vmem:[%s7128_s30 + $0x60] sm:$0xff] %v3852_v33  ;;  %v3853_v49 = vadd.f32 %v7114_v60, %v2142_v12  ;;  %v2147_v38 = vadd.f32 %v2146_v25, %v1938_v21  ;;  %4759 = vmatmul.mubr.f32.gmra.mxu0 %v8624_v27  ;;  %4819 = vmatmul.mubr.f32.gmra.mxu1 %v8618_v39  ;;  %v1953_v51 = vpop.f32.mrf.mxu0 }
 0x1b8   : > { %v2148_v34 = vpop.f32.mrf.mxu1  ;;  %4760 = vmatprep.mubr.f32.mxu0 %v8627_v56  ;;  %4820 = vmatprep.mubr.f32.mxu1 %v8621_v47  ;;  %v1431_v39 = vadd.f32 %v6886_v19, %v8628_v7  ;;  %v1947_v58 = vadd.f32 %v1946_v53, %v1654_v16  ;;  %v8630_v19 = vld [vmem:[#allocation60_spill] sm:$0xff]  ;;  %v1952_v48 = vadd.f32 %v1951_v26, %v1661_v9 }
 0x1b9   : > { %3917 = vst [vmem:[%s7128_s30 + $0x68] sm:$0xff] %v3853_v49  ;;  %v3856_v31 = vadd.f32 %v7110_v50, %v2147_v38  ;;  %v2149_v30 = vadd.f32 %v2148_v34, %v1940_v22  ;;  %v1958_v6 = vpop.f32.mrf.mxu0  ;;  %v1670_v53 = vadd.f32 %v6938_v13, %v1437_v41  ;;  %v1445_v21 = vadd.f32 %v6916_v45, %v8632_v2  ;;  %v8646_v2 = vld [vmem:[#allocation79_spill] sm:$0xff] }
 0x1ba   : > { %v2153_v29 = vpop.f32.mrf.mxu1  ;;  %v1663_v42 = vadd.f32 %v6929_v20, %v1431_v39 }
 0x1bb   : > { %3920 = vst [vmem:[%s7128_s30 + $0x80] sm:$0xff] %v3856_v31  ;;  %v3857_v10 = vadd.f32 %v7114_v60, %v2149_v30  ;;  %v2154_v28 = vadd.f32 %v2153_v29, %v1945_v35  ;;  %4761 = vmatmul.mubr.f32.gmra.mxu0 %v8627_v56  ;;  %4821 = vmatmul.mubr.f32.gmra.mxu1 %v8621_v47  ;;  %v1960_v43 = vpop.f32.mrf.mxu0  ;;  %v8637_v30 = vld [vmem:[#allocation42_spill] sm:$0xff] }
 0x1bc   : > { %v2155_v18 = vpop.f32.mrf.mxu1  ;;  %4762 = vmatprep.mubr.f32.mxu0 %v8630_v19  ;;  %4822 = vmatprep.mubr.f32.mxu1 %v8624_v27  ;;  %v1439_v47 = vadd.f32 %v6907_v59, %v8631_v11  ;;  %v1954_v32 = vadd.f32 %v1953_v51, %v1663_v42  ;;  %v8633_v59 = vld [vmem:[#allocation67_spill] sm:$0xff]  ;;  %v1959_v12 = vadd.f32 %v1958_v6, %v1670_v53  ;;  %v8635_v51 = vld [vmem:[#allocation8_spill] sm:$0xff]  ;;  %v8638_v6 = vld [vmem:[#allocation46_spill] sm:$0xff] }
 0x1bd   : > { %3921 = vst [vmem:[%s7128_s30 + $0x88] sm:$0xff] %v3857_v10  ;;  %v3860_v36 = vadd.f32 %v7110_v50, %v2154_v28  ;;  %v2156_v37 = vadd.f32 %v2155_v18, %v1947_v58  ;;  %v1965_v23 = vpop.f32.mrf.mxu0  ;;  %v1679_v25 = vadd.f32 %v6959_v3, %v1445_v21  ;;  %v1453_v63 = vadd.f32 %v6936_v44, %v8635_v51  ;;  %v8639_v58 = vld [vmem:[#allocation20_spill] sm:$0xff]  ;;  %v8640_v10 = vld [vmem:[#allocation98_spill] sm:$0xff] }
 0x1be   : > { %v2160_v4 = vpop.f32.mrf.mxu1  ;;  %v1672_v13 = vadd.f32 %v6947_v40, %v1439_v47  ;;  %v1461_v28 = vadd.f32 %v8640_v10, %v8639_v58  ;;  %v8651_v51 = vld [vmem:[#allocation80_spill] sm:$0xff]  ;;  %v8658_v10 = vld [vmem:[#allocation58_spill] sm:$0xff] }
 0x1bf   : > { %3924 = vst [vmem:[%s7128_s30 + $0xa0] sm:$0xff] %v3860_v36  ;;  %v3861_v55 = vadd.f32 %v7114_v60, %v2156_v37  ;;  %v2161_v24 = vadd.f32 %v2160_v4, %v1952_v48  ;;  %4763 = vmatmul.mubr.f32.gmra.mxu0 %v8630_v19  ;;  %4823 = vmatmul.mubr.f32.gmra.mxu1 %v8624_v27  ;;  %v1967_v20 = vpop.f32.mrf.mxu0  ;;  %v8642_v36 = vld [vmem:[#allocation29_spill] sm:$0xff]  ;;  %v8657_v58 = vld [vmem:[#allocation84_spill] sm:$0xff] }
 0x1c0   : > { %v2162_v33 = vpop.f32.mrf.mxu1  ;;  %4764 = vmatprep.mubr.f32.mxu0 %v8633_v59  ;;  %4824 = vmatprep.mubr.f32.mxu1 %v8627_v56  ;;  %v1447_v27 = vadd.f32 %v6925_v57, %v8634_v46  ;;  %v1961_v22 = vadd.f32 %v1960_v43, %v1672_v13  ;;  %v8636_v57 = vld [vmem:[#allocation71_spill] sm:$0xff]  ;;  %v1966_v34 = vadd.f32 %v1965_v23, %v1679_v25 }
 0x1c1   : > { %3925 = vst [vmem:[%s7128_s30 + $0xa8] sm:$0xff] %v3861_v55  ;;  %v3864_v26 = vadd.f32 %v7110_v50, %v2161_v24  ;;  %v2163_v0 = vadd.f32 %v2162_v33, %v1954_v32  ;;  %v1972_v61 = vpop.f32.mrf.mxu0  ;;  %v1688_v7 = vadd.f32 %v8638_v6, %v1453_v63  ;;  %v1697_v23 = vadd.f32 %v6997_v5, %v1461_v28  ;;  %v8644_v32 = vld [vmem:[#allocation25_spill] sm:$0xff]  ;;  %v8645_v55 = vld [vmem:[#allocation34_spill] sm:$0xff] }
 0x1c2   : > { %v2167_v45 = vpop.f32.mrf.mxu1  ;;  %v1681_v3 = vadd.f32 %v6968_v62, %v1447_v27  ;;  %v1469_v24 = vadd.f32 %v8645_v55, %v8644_v32 }
 0x1c3   : > { %3928 = vst [vmem:[%s7128_s30 + $0xc0] sm:$0xff] %v3864_v26  ;;  %v3865_v49 = vadd.f32 %v7114_v60, %v2163_v0  ;;  %v2168_v38 = vadd.f32 %v2167_v45, %v1959_v12  ;;  %4765 = vmatmul.mubr.f32.gmra.mxu0 %v8633_v59  ;;  %4825 = vmatmul.mubr.f32.gmra.mxu1 %v8627_v56  ;;  %v1974_v40 = vpop.f32.mrf.mxu0  ;;  %v8647_v26 = vld [vmem:[#allocation114_spill] sm:$0xff] }
 0x1c4   : > { %v2169_v14 = vpop.f32.mrf.mxu1  ;;  %4766 = vmatprep.mubr.f32.mxu0 %v8636_v57  ;;  %4826 = vmatprep.mubr.f32.mxu1 %v8630_v19  ;;  %v1455_v56 = vadd.f32 %v6945_v1, %v8637_v30  ;;  %v1968_v39 = vadd.f32 %v1967_v20, %v1681_v3  ;;  %v8641_v1 = vld [vmem:[#allocation75_spill] sm:$0xff]  ;;  %v1973_v41 = vadd.f32 %v1972_v61, %v1688_v7 }
 0x1c5   : > { %3929 = vst [vmem:[%s7128_s30 + $0xc8] sm:$0xff] %v3865_v49  ;;  %v3868_v16 = vadd.f32 %v7110_v50, %v2168_v38  ;;  %v2170_v35 = vadd.f32 %v2169_v14, %v1961_v22  ;;  %v1979_v31 = vpop.f32.mrf.mxu0  ;;  %v1706_v61 = vadd.f32 %v7015_v8, %v1469_v24  ;;  %v8649_v22 = vld [vmem:[#allocation26_spill] sm:$0xff]  ;;  %v8650_v49 = vld [vmem:[#allocation51_spill] sm:$0xff]  ;;  %v8664_v24 = vld [vmem:[#allocation17_spill] sm:$0xff] }
 0x1c6   : > { %v2174_v44 = vpop.f32.mrf.mxu1  ;;  %v1690_v52 = vadd.f32 %v6986_v54, %v1455_v56  ;;  %v1980_v21 = vadd.f32 %v1979_v31, %v1697_v23  ;;  %v1477_v38 = vadd.f32 %v8650_v49, %v8649_v22  ;;  %v8654_v31 = vld [vmem:[#allocation54_spill] sm:$0xff]  ;;  %v8669_v22 = vld [vmem:[#allocation39_spill] sm:$0xff]  ;;  %v8670_v49 = vld [vmem:[#allocation64_spill] sm:$0xff] }
 0x1c7   : > { %3932 = vst [vmem:[%s7128_s30 + $0xe0] sm:$0xff] %v3868_v16  ;;  %v3869_v9 = vadd.f32 %v7114_v60, %v2170_v35  ;;  %v2175_v29 = vadd.f32 %v2174_v44, %v1966_v34  ;;  %4767 = vmatmul.mubr.f32.gmra.mxu0 %v8636_v57  ;;  %4827 = vmatmul.mubr.f32.gmra.mxu1 %v8630_v19  ;;  %v1981_v62 = vpop.f32.mrf.mxu0  ;;  %v8643_v19 = vld [vmem:[#allocation43_spill] sm:$0xff] }
 0x1c8   : > { %v2176_v43 = vpop.f32.mrf.mxu1  ;;  %4768 = vmatprep.mubr.f32.mxu0 %v8641_v1  ;;  %4828 = vmatprep.mubr.f32.mxu1 %v8633_v59  ;;  %v1463_v37 = vadd.f32 %v8643_v19, %v8642_v36  ;;  %v1975_v47 = vadd.f32 %v1974_v40, %v1690_v52  ;;  %v8652_v16 = vld [vmem:[#allocation115_spill] sm:$0xff]  ;;  %v1715_v30 = vadd.f32 %v8654_v31, %v1477_v38  ;;  %v8661_v36 = vld [vmem:[#allocation62_spill] sm:$0xff] }
 0x1c9   : > { %3933 = vst [vmem:[%s7128_s30 + $0xe8] sm:$0xff] %v3869_v9  ;;  %v3872_v18 = vadd.f32 %v7110_v50, %v2175_v29  ;;  %v2177_v42 = vadd.f32 %v2176_v43, %v1968_v39  ;;  %v1986_v48 = vpop.f32.mrf.mxu0  ;;  %v8655_v39 = vld [vmem:[#allocation116_spill] sm:$0xff]  ;;  %v1501_v38 = vadd.f32 %v8670_v49, %v8669_v22 }
 0x1ca   : > { %v2181_v11 = vpop.f32.mrf.mxu1  ;;  %v1699_v5 = vadd.f32 %v7006_v17, %v1463_v37  ;;  %v1987_v63 = vadd.f32 %v1986_v48, %v1706_v61  ;;  %v8656_v9 = vld [vmem:[#allocation52_spill] sm:$0xff] }
 0x1cb   : > { %3936 = vst [vmem:[%s7128_s30 + $0x100] sm:$0xff] %v3872_v18  ;;  %v3873_v53 = vadd.f32 %v7114_v60, %v2177_v42  ;;  %v2182_v4 = vadd.f32 %v2181_v11, %v1973_v41  ;;  %4769 = vmatmul.mubr.f32.gmra.mxu0 %v8641_v1  ;;  %4829 = vmatmul.mubr.f32.gmra.mxu1 %v8633_v59  ;;  %v1988_v54 = vpop.f32.mrf.mxu0  ;;  %v8648_v59 = vld [vmem:[#allocation41_spill] sm:$0xff]  ;;  %v8659_v42 = vld [vmem:[#allocation92_spill] sm:$0xff] }
 0x1cc   : > { %v2183_v20 = vpop.f32.mrf.mxu1  ;;  %4770 = vmatprep.mubr.f32.mxu0 %v8646_v2  ;;  %4830 = vmatprep.mubr.f32.mxu1 %v8636_v57  ;;  %v1471_v0 = vadd.f32 %v8648_v59, %v8647_v26  ;;  %v1982_v27 = vadd.f32 %v1981_v62, %v1699_v5  ;;  %v1485_v29 = vadd.f32 %v8656_v9, %v8655_v39  ;;  %v8666_v26 = vld [vmem:[#allocation118_spill] sm:$0xff]  ;;  %v8675_v9 = vld [vmem:[#allocation7_spill] sm:$0xff] }
 0x1cd   : > { %3937 = vst [vmem:[%s7128_s30 + $0x108] sm:$0xff] %v3873_v53  ;;  %v3876_v33 = vadd.f32 %v7110_v50, %v2182_v4  ;;  %v2184_v13 = vadd.f32 %v2183_v20, %v1975_v47  ;;  %v1993_v12 = vpop.f32.mrf.mxu0  ;;  %v8662_v4 = vld [vmem:[#allocation95_spill] sm:$0xff]  ;;  %v8665_v20 = vld [vmem:[#allocation21_spill] sm:$0xff] }
 0x1ce   : > { %v2188_v46 = vpop.f32.mrf.mxu1  ;;  %v1708_v8 = vadd.f32 %v7024_v15, %v1471_v0  ;;  %v1994_v43 = vadd.f32 %v1993_v12, %v1715_v30  ;;  %v1724_v19 = vadd.f32 %v8661_v36, %v1485_v29  ;;  %v8668_v0 = vld [vmem:[#allocation70_spill] sm:$0xff] }
 0x1cf   : > { %3940 = vst [vmem:[%s7128_s30 + $0x120] sm:$0xff] %v3876_v33  ;;  %v3877_v25 = vadd.f32 %v7114_v60, %v2184_v13  ;;  %v2189_v45 = vadd.f32 %v2188_v46, %v1980_v21  ;;  %4771 = vmatmul.mubr.f32.gmra.mxu0 %v8646_v2  ;;  %4831 = vmatmul.mubr.f32.gmra.mxu1 %v8636_v57  ;;  %v1995_v17 = vpop.f32.mrf.mxu0  ;;  %v8653_v57 = vld [vmem:[#allocation45_spill] sm:$0xff]  ;;  %v8674_v30 = vld [vmem:[#allocation22_spill] sm:$0xff] }
 0x1d0   : > { %v2190_v40 = vpop.f32.mrf.mxu1  ;;  %4772 = vmatprep.mubr.f32.mxu0 %v8651_v51  ;;  %4832 = vmatprep.mubr.f32.mxu1 %v8641_v1  ;;  %v1479_v35 = vadd.f32 %v8653_v57, %v8652_v16  ;;  %v1989_v6 = vadd.f32 %v1988_v54, %v1708_v8  ;;  %v8663_v54 = vld [vmem:[#allocation59_spill] sm:$0xff]  ;;  %v8671_v8 = vld [vmem:[#allocation16_spill] sm:$0xff]  ;;  %v8672_v16 = vld [vmem:[#allocation97_spill] sm:$0xff] }
 0x1d1   : > { %3941 = vst [vmem:[%s7128_s30 + $0x128] sm:$0xff] %v3877_v25  ;;  %v3880_v14 = vadd.f32 %v7110_v50, %v2189_v45  ;;  %v2191_v3 = vadd.f32 %v2190_v40, %v1982_v27  ;;  %v2000_v34 = vpop.f32.mrf.mxu0  ;;  %v1493_v32 = vadd.f32 %v8663_v54, %v8662_v4  ;;  %v8673_v57 = vld [vmem:[#allocation5_spill] sm:$0xff] }
 0x1d2   : > { %v2195_v56 = vpop.f32.mrf.mxu1  ;;  %v1717_v28 = vadd.f32 %v8658_v10, %v1479_v35  ;;  %v2001_v21 = vadd.f32 %v2000_v34, %v1724_v19  ;;  %v1503_v35 = vadd.f32 %v8673_v57, %v8672_v16  ;;  %v8677_v4 = vld [vmem:[#allocation101_spill] sm:$0xff] }
 0x1d3   : > { %3944 = vst [vmem:[%s7128_s30 + $0x140] sm:$0xff] %v3880_v14  ;;  %v3881_v7 = vadd.f32 %v7114_v60, %v2191_v3  ;;  %v2196_v44 = vadd.f32 %v2195_v56, %v1987_v63  ;;  %4773 = vmatmul.mubr.f32.gmra.mxu0 %v8651_v51  ;;  %4833 = vmatmul.mubr.f32.gmra.mxu1 %v8641_v1  ;;  %v2002_v15 = vpop.f32.mrf.mxu0  ;;  %v8660_v1 = vld [vmem:[#allocation50_spill] sm:$0xff] }
 0x1d4   : > { %v2197_v62 = vpop.f32.mrf.mxu1  ;;  %4774 = vmatprep.mubr.f32.mxu0 %v8657_v58  ;;  %4834 = vmatprep.mubr.f32.mxu1 %v8646_v2  ;;  %v1487_v48 = vadd.f32 %v8660_v1, %v8659_v42  ;;  %v1996_v23 = vadd.f32 %v1995_v17, %v1717_v28  ;;  %v1733_v61 = vadd.f32 %v8668_v0, %v1493_v32  ;;  %v8676_v42 = vld [vmem:[#allocation100_spill] sm:$0xff] }
 0x1d5   : > { %3945 = vst [vmem:[%s7128_s30 + $0x148] sm:$0xff] %v3881_v7  ;;  %v3884_v52 = vadd.f32 %v7110_v50, %v2196_v44  ;;  %v2198_v41 = vadd.f32 %v2197_v62, %v1989_v6  ;;  %v2007_v18 = vpop.f32.mrf.mxu0  ;;  %v1742_v56 = vadd.f32 %v8674_v30, %v1501_v38  ;;  %v1744_v29 = vadd.f32 %v8675_v9, %v1503_v35 }
 0x1d6   : > { %v2202_v37 = vpop.f32.mrf.mxu1  ;;  %v1726_v5 = vadd.f32 %v8665_v20, %v1487_v48  ;;  %v2008_v14 = vadd.f32 %v2007_v18, %v1733_v61 }
 0x1d7   : > { %3948 = vst [vmem:[%s7128_s30 + $0x160] sm:$0xff] %v3884_v52  ;;  %v3885_v11 = vadd.f32 %v7114_v60, %v2198_v41  ;;  %v2203_v47 = vadd.f32 %v2202_v37, %v1994_v43  ;;  %4775 = vmatmul.mubr.f32.gmra.mxu0 %v8657_v58  ;;  %4835 = vmatmul.mubr.f32.gmra.mxu1 %v8646_v2  ;;  %v2009_v53 = vpop.f32.mrf.mxu0  ;;  %v8667_v2 = vld [vmem:[#allocation63_spill] sm:$0xff] }
 0x1d8   : > { %v2204_v55 = vpop.f32.mrf.mxu1  ;;  %4776 = vmatprep.mubr.f32.mxu0 %v8664_v24  ;;  %4836 = vmatprep.mubr.f32.mxu1 %v8651_v51  ;;  %v1495_v59 = vadd.f32 %v8667_v2, %v8666_v26  ;;  %v2003_v27 = vadd.f32 %v2002_v15, %v1726_v5 }
 0x1d9   : > { %3949 = vst [vmem:[%s7128_s30 + $0x168] sm:$0xff] %v3885_v11  ;;  %v3888_v33 = vadd.f32 %v7110_v50, %v2203_v47  ;;  %v2205_v13 = vadd.f32 %v2204_v55, %v1996_v23  ;;  %v2014_v12 = vpop.f32.mrf.mxu0 }
 0x1da   : > { %v2209_v46 = vpop.f32.mrf.mxu1  ;;  %v1735_v63 = vadd.f32 %v8671_v8, %v1495_v59  ;;  %v2015_v62 = vadd.f32 %v2014_v12, %v1742_v56  ;;  %v8680_v8 = vld [vmem:[#allocation107_spill] sm:$0xff] }
 0x1db   : > { %3952 = vst [vmem:[%s7128_s30 + $0x180] sm:$0xff] %v3888_v33  ;;  %v3889_v25 = vadd.f32 %v7114_v60, %v2205_v13  ;;  %v2210_v45 = vadd.f32 %v2209_v46, %v2001_v21  ;;  %4777 = vmatmul.mubr.f32.gmra.mxu0 %v8664_v24  ;;  %4837 = vmatmul.mubr.f32.gmra.mxu1 %v8651_v51  ;;  %v2016_v17 = vpop.f32.mrf.mxu0  ;;  %v8678_v33 = vld [vmem:[#allocation103_spill] sm:$0xff]  ;;  %v8679_v46 = vld [vmem:[#allocation105_spill] sm:$0xff] }
 0x1dc   : > { %v2211_v40 = vpop.f32.mrf.mxu1  ;;  %4838 = vmatprep.mubr.f32.mxu1 %v8657_v58  ;;  %v2010_v6 = vadd.f32 %v2009_v53, %v1735_v63  ;;  %v2017_v41 = vadd.f32 %v2016_v17, %v1744_v29  ;;  %v8682_v29 = vld [vmem:[#allocation110_spill] sm:$0xff] }
 0x1dd   : > { %3953 = vst [vmem:[%s7128_s30 + $0x188] sm:$0xff] %v3889_v25  ;;  %v3892_v3 = vadd.f32 %v7110_v50, %v2210_v45  ;;  %v2212_v34 = vadd.f32 %v2211_v40, %v2003_v27 }
 0x1de   : > { %v2216_v31 = vpop.f32.mrf.mxu1  ;;  %v2331_v51 = vpop.f32.mrf.mxu0 }
 0x1df   : > { %3956 = vst [vmem:[%s7128_s30 + $0x1a0] sm:$0xff] %v3892_v3  ;;  %v3893_v7 = vadd.f32 %v7114_v60, %v2212_v34  ;;  %v2217_v44 = vadd.f32 %v2216_v31, %v2008_v14  ;;  %4839 = vmatmul.mubr.f32.gmra.mxu1 %v8657_v58  ;;  %v2332_v1 = vadd.f32 %v2331_v51, %v8676_v42  ;;  %v8681_v51 = vld [vmem:[#allocation69_spill] sm:$0xff] }
 0x1e0   : > { %v2218_v15 = vpop.f32.mrf.mxu1  ;;  %v2333_v39 = vpop.f32.mrf.mxu0  ;;  %4840 = vmatprep.mubr.f32.mxu1 %v8664_v24 }
 0x1e1   : > { %3957 = vst [vmem:[%s7128_s30 + $0x1a8] sm:$0xff] %v3893_v7  ;;  %v3896_v10 = vadd.f32 %v7110_v50, %v2217_v44  ;;  %v2219_v28 = vadd.f32 %v2218_v15, %v2010_v6  ;;  %v2334_v53 = vadd.f32 %v2333_v39, %v8676_v42  ;;  %v8683_v42 = vld [vmem:[#allocation27_spill] sm:$0xff] }
 0x1e2   : > { %v2223_v43 = vpop.f32.mrf.mxu1  ;;  %v2342_v52 = vpop.f32.mrf.mxu0 }
 0x1e3   : > { %3960 = vst [vmem:[%s7128_s30 + $0x1c0] sm:$0xff] %v3896_v10  ;;  %v3897_v18 = vadd.f32 %v7114_v60, %v2219_v28  ;;  %v2224_v58 = vadd.f32 %v2223_v43, %v2015_v62  ;;  %4841 = vmatmul.mubr.f32.gmra.mxu1 %v8664_v24  ;;  %v2343_v54 = vadd.f32 %v2342_v52, %v8677_v4 }
 0x1e4   : > { %v2225_v48 = vpop.f32.mrf.mxu1  ;;  %v2344_v36 = vpop.f32.mrf.mxu0 }
 0x1e5   : > { %3961 = vst [vmem:[%s7128_s30 + $0x1c8] sm:$0xff] %v3897_v18  ;;  %v3900_v19 = vadd.f32 %v7110_v50, %v2224_v58  ;;  %v2226_v37 = vadd.f32 %v2225_v48, %v2017_v41  ;;  %v2345_v50 = vadd.f32 %v2344_v36, %v8677_v4 }
 0x1e6   : > { %v2353_v23 = vpop.f32.mrf.mxu0 }
 0x1e7   : > { %3964 = vst [vmem:[%s7128_s30 + $0x1e0] sm:$0xff] %v3900_v19  ;;  %v3901_v11 = vadd.f32 %v7114_v60, %v2226_v37  ;;  %v2728_v47 = vpop.f32.mrf.mxu1  ;;  %v2354_v13 = vadd.f32 %v2353_v23, %v8678_v33 }
 0x1e8   : > { %v7328_v32 = vadd.f32 %v2728_v47, %v2332_v1  ;;  %v2355_v55 = vpop.f32.mrf.mxu0 }
 0x1e9   : > { %3965 = vst [vmem:[%s7128_s30 + $0x1e8] sm:$0xff] %v3901_v11  ;;  %v2730_v24 = vpop.f32.mrf.mxu1  ;;  %v2356_v61 = vadd.f32 %v2355_v55, %v8678_v33 }
 0x1ea   : > { %v7331_v20 = vadd.f32 %v2730_v24, %v2334_v53  ;;  %v2364_v5 = vpop.f32.mrf.mxu0  ;;  %v8684_v53 = vld [vmem:[#allocation18_spill] sm:$0xff] }
 0x1eb   : > { %v2735_v21 = vpop.f32.mrf.mxu1  ;;  %v2365_v27 = vadd.f32 %v2364_v5, %v8679_v46 }
 0x1ec   : > { %v7335_v12 = vadd.f32 %v2735_v21, %v2343_v54  ;;  %v2366_v60 = vpop.f32.mrf.mxu0 }
 0x1ed   : > { %v2737_v26 = vpop.f32.mrf.mxu1  ;;  %v2367_v40 = vadd.f32 %v2366_v60, %v8679_v46 }
 0x1ee   : > { %v7337_v2 = vadd.f32 %v2737_v26, %v2345_v50  ;;  %v2375_v59 = vpop.f32.mrf.mxu0 }
 0x1ef   : > { %v2742_v0 = vpop.f32.mrf.mxu1  ;;  %v2376_v63 = vadd.f32 %v2375_v59, %v8680_v8 }
 0x1f0   : > { %v7341_v25 = vadd.f32 %v2742_v0, %v2354_v13  ;;  %v2377_v45 = vpop.f32.mrf.mxu0  ;;  %v8685_v13 = vld [vmem:[#allocation112_spill] sm:$0xff] }
 0x1f1   : > { %v2744_v17 = vpop.f32.mrf.mxu1  ;;  %v2378_v31 = vadd.f32 %v2377_v45, %v8680_v8 }
 0x1f2   : > { %v7343_v22 = vadd.f32 %v2744_v17, %v2356_v61  ;;  %v2386_v49 = vpop.f32.mrf.mxu0  ;;  %v8687_v17 = vld [vmem:[#allocation113_spill] sm:$0xff] }
 0x1f3   : > { %v2749_v38 = vpop.f32.mrf.mxu1  ;;  %v2387_v30 = vadd.f32 %v2386_v49, %v8681_v51 }
 0x1f4   : > { %v7347_v14 = vadd.f32 %v2749_v38, %v2365_v27  ;;  %v2388_v3 = vpop.f32.mrf.mxu0 }
 0x1f5   : > { %v2751_v34 = vpop.f32.mrf.mxu1  ;;  %v2389_v9 = vadd.f32 %v2388_v3, %v8681_v51 }
 0x1f6   : > { %v7349_v16 = vadd.f32 %v2751_v34, %v2367_v40  ;;  %v2397_v57 = vpop.f32.mrf.mxu0 }
 0x1f7   : > { %v2756_v35 = vpop.f32.mrf.mxu1  ;;  %v2398_v62 = vadd.f32 %v2397_v57, %v8682_v29 }
 0x1f8   : > { %v7353_v56 = vadd.f32 %v2756_v35, %v2376_v63  ;;  %v2399_v6 = vpop.f32.mrf.mxu0  ;;  %v8690_v35 = vld [vmem:[#allocation6_spill] sm:$0xff] }
 0x1f9   : > { %v2758_v7 = vpop.f32.mrf.mxu1  ;;  %v2400_v58 = vadd.f32 %v2399_v6, %v8682_v29  ;;  %v8693_v29 = vld [vmem:[#allocation23_spill] sm:$0xff] }
 0x1fa   : > { %v7355_v44 = vadd.f32 %v2758_v7, %v2378_v31  ;;  %v2408_v15 = vpop.f32.mrf.mxu0 }
 0x1fb   : > { %v2763_v39 = vpop.f32.mrf.mxu1  ;;  %v2409_v1 = vadd.f32 %v2408_v15, %v8683_v42 }
 0x1fc   : > { %v7359_v10 = vadd.f32 %v2763_v39, %v2387_v30  ;;  %v2410_v28 = vpop.f32.mrf.mxu0 }
 0x1fd   : > { %v2765_v43 = vpop.f32.mrf.mxu1  ;;  %v2411_v47 = vadd.f32 %v2410_v28, %v8683_v42 }
 0x1fe   : > { %v7361_v52 = vadd.f32 %v2765_v43, %v2389_v9  ;;  %v2419_v41 = vpop.f32.mrf.mxu0 }
 0x1ff   : > { %v2770_v18 = vpop.f32.mrf.mxu1  ;;  %v2420_v4 = vadd.f32 %v2419_v41, %v8684_v53 }
 0x200   : > { %v7365_v48 = vadd.f32 %v2770_v18, %v2398_v62  ;;  %v2421_v36 = vpop.f32.mrf.mxu0 }
 0x201   : > { %v2772_v19 = vpop.f32.mrf.mxu1  ;;  %v2422_v33 = vadd.f32 %v2421_v36, %v8684_v53  ;;  %v8696_v36 = vld [vmem:[#allocation31_spill] sm:$0xff] }
 0x202   : > { %v7367_v37 = vadd.f32 %v2772_v19, %v2400_v58  ;;  %v2430_v23 = vpop.f32.mrf.mxu0 }
 0x203   : > { %v2777_v11 = vpop.f32.mrf.mxu1  ;;  %v2431_v60 = vadd.f32 %v2430_v23, %v8685_v13 }
 0x204   : > { %v7371_v54 = vadd.f32 %v2777_v11, %v2409_v1  ;;  %v2432_v55 = vpop.f32.mrf.mxu0 }
 0x205   : > { %v2779_v24 = vpop.f32.mrf.mxu1  ;;  %v2433_v45 = vadd.f32 %v2432_v55, %v8685_v13 }
 0x206   : > { %v7373_v5 = vadd.f32 %v2779_v24, %v2411_v47  ;;  %v2441_v21 = vpop.f32.mrf.mxu0 }
 0x207   : > { %v2784_v50 = vpop.f32.mrf.mxu1  ;;  %v2442_v49 = vadd.f32 %v2441_v21, %v8687_v17  ;;  %v8699_v21 = vld [vmem:[#allocation117_spill] sm:$0xff] }
 0x208   : > { %v7377_v26 = vadd.f32 %v2784_v50, %v2420_v4  ;;  %v2443_v59 = vpop.f32.mrf.mxu0 }
 0x209   : > { %v2786_v0 = vpop.f32.mrf.mxu1  ;;  %v2444_v57 = vadd.f32 %v2443_v59, %v8687_v17 }
 0x20a   : > { %v7379_v61 = vadd.f32 %v2786_v0, %v2422_v33  ;;  %v2452_v46 = vpop.f32.mrf.mxu0 }
 0x20b   : > { %v2791_v27 = vpop.f32.mrf.mxu1  ;;  %v2453_v31 = vadd.f32 %v2452_v46, %v8690_v35 }
 0x20c   : > { %8686 = vst [vmem:[#allocation36_spill] sm:$0xff] %v7379_v61  ;;  %v7383_v38 = vadd.f32 %v2791_v27, %v2431_v60  ;;  %v2454_v40 = vpop.f32.mrf.mxu0 }
 0x20d   : > { %v2793_v8 = vpop.f32.mrf.mxu1  ;;  %v2455_v9 = vadd.f32 %v2454_v40, %v8690_v35 }
 0x20e   : > { %8688 = vst [vmem:[#allocation74_spill] sm:$0xff] %v7383_v38  ;;  %v7385_v63 = vadd.f32 %v2793_v8, %v2433_v45  ;;  %v2463_v3 = vpop.f32.mrf.mxu0  ;;  %v8702_v45 = vld [vmem:[#allocation96_spill] sm:$0xff] }
 0x20f   : > { %v2798_v34 = vpop.f32.mrf.mxu1  ;;  %v2464_v62 = vadd.f32 %v2463_v3, %v8693_v29 }
 0x210   : > { %8689 = vst [vmem:[#allocation68_spill] sm:$0xff] %v7385_v63  ;;  %v7389_v51 = vadd.f32 %v2798_v34, %v2442_v49  ;;  %v2465_v30 = vpop.f32.mrf.mxu0 }
 0x211   : > { %v2800_v6 = vpop.f32.mrf.mxu1  ;;  %v2466_v1 = vadd.f32 %v2465_v30, %v8693_v29 }
 0x212   : > { %8691 = vst [vmem:[#allocation9_spill] sm:$0xff] %v7389_v51  ;;  %v7391_v7 = vadd.f32 %v2800_v6, %v2444_v57  ;;  %v2474_v15 = vpop.f32.mrf.mxu0 }
 0x213   : > { %v2805_v39 = vpop.f32.mrf.mxu1  ;;  %v2475_v19 = vadd.f32 %v2474_v15, %v8696_v36 }
 0x214   : > { %8692 = vst [vmem:[#allocation24_spill] sm:$0xff] %v7391_v7  ;;  %v7395_v28 = vadd.f32 %v2805_v39, %v2453_v31  ;;  %v2476_v43 = vpop.f32.mrf.mxu0 }
 0x215   : > { %v2807_v41 = vpop.f32.mrf.mxu1  ;;  %v2477_v24 = vadd.f32 %v2476_v43, %v8696_v36 }
 0x216   : > { %8694 = vst [vmem:[#allocation28_spill] sm:$0xff] %v7395_v28  ;;  %v7397_v18 = vadd.f32 %v2807_v41, %v2455_v9  ;;  %v2485_v58 = vpop.f32.mrf.mxu0 }
 0x217   : > { %v2812_v42 = vpop.f32.mrf.mxu1  ;;  %v2486_v50 = vadd.f32 %v2485_v58, %v8699_v21 }
 0x218   : > { %8695 = vst [vmem:[#allocation78_spill] sm:$0xff] %v7397_v18  ;;  %v7401_v23 = vadd.f32 %v2812_v42, %v2464_v62  ;;  %v2487_v11 = vpop.f32.mrf.mxu0 }
 0x219   : > { %v2814_v47 = vpop.f32.mrf.mxu1  ;;  %v2488_v27 = vadd.f32 %v2487_v11, %v8699_v21 }
 0x21a   : > { %8697 = vst [vmem:[#allocation73_spill] sm:$0xff] %v7401_v23  ;;  %v7403_v53 = vadd.f32 %v2814_v47, %v2466_v1  ;;  %v2496_v4 = vpop.f32.mrf.mxu0 }
 0x21b   : > { %v2819_v55 = vpop.f32.mrf.mxu1  ;;  %v2497_v17 = vadd.f32 %v2496_v4, %v8702_v45 }
 0x21c   : > { %8698 = vst [vmem:[#allocation91_spill] sm:$0xff] %v7403_v53  ;;  %v7407_v33 = vadd.f32 %v2819_v55, %v2475_v19  ;;  %v2498_v13 = vpop.f32.mrf.mxu0 }
 0x21d   : > { %v2821_v60 = vpop.f32.mrf.mxu1  ;;  %v2499_v35 = vadd.f32 %v2498_v13, %v8702_v45 }
 0x21e   : > { %8700 = vst [vmem:[#allocation33_spill] sm:$0xff] %v7407_v33  ;;  %v7409_v59 = vadd.f32 %v2821_v60, %v2477_v24 }
 0x21f   : > { %v2826_v0 = vpop.f32.mrf.mxu1  ;;  %v7411_v46 = vpop.f32.mrf.mxu0 }
 0x220   : > { %8701 = vst [vmem:[#allocation13_spill] sm:$0xff] %v7409_v59  ;;  %v7415_v49 = vadd.f32 %v2826_v0, %v2486_v50 }
 0x221   : > { %v2828_v40 = vpop.f32.mrf.mxu1  ;;  %v7417_v8 = vpop.f32.mrf.mxu0 }
 0x222   : > { %8703 = vst [vmem:[#allocation83_spill] sm:$0xff] %v7415_v49  ;;  %v7419_v3 = vadd.f32 %v2828_v40, %v2488_v27 }
 0x223   : > { %v2833_v34 = vpop.f32.mrf.mxu1  ;;  %v7421_v57 = vpop.f32.mrf.mxu0 }
 0x224   : > { %8704 = vst [vmem:[#allocation77_spill] sm:$0xff] %v7419_v3  ;;  %v7424_v31 = vadd.f32 %v2833_v34, %v2497_v17 }
 0x225   : > { %v2835_v30 = vpop.f32.mrf.mxu1  ;;  %v7426_v6 = vpop.f32.mrf.mxu0 }
 0x226   : > { %8705 = vst [vmem:[#allocation93_spill] sm:$0xff] %v7424_v31  ;;  %v7428_v15 = vadd.f32 %v2835_v30, %v2499_v35 }
 0x227   : > { %v7430_v39 = vpop.f32.mrf.mxu0  ;;  %v7432_v9 = vpop.f32.mrf.mxu1 }
 0x228   : > { %8706 = vst [vmem:[#allocation19_spill] sm:$0xff] %v7428_v15 }
 0x229   : > { %v7434_v29 = vpop.f32.mrf.mxu0  ;;  %v7436_v62 = vpop.f32.mrf.mxu1 }
 0x22b   : > { %v7438_v43 = vpop.f32.mrf.mxu0  ;;  %v7440_v41 = vpop.f32.mrf.mxu1 }
 0x22d   : > { %v7442_v58 = vpop.f32.mrf.mxu0  ;;  %v7444_v42 = vpop.f32.mrf.mxu1 }
 0x22f   : > { %v7446_v1 = vpop.f32.mrf.mxu0  ;;  %v7448_v36 = vpop.f32.mrf.mxu1 }
 0x231   : > { %v7450_v19 = vpop.f32.mrf.mxu0  ;;  %v7452_v11 = vpop.f32.mrf.mxu1 }
 0x233   : > { %v7454_v47 = vpop.f32.mrf.mxu0  ;;  %v7456_v4 = vpop.f32.mrf.mxu1 }
 0x235   : > { %v7458_v55 = vpop.f32.mrf.mxu0  ;;  %v7460_v24 = vpop.f32.mrf.mxu1 }
 0x237   : > { %v7462_v21 = vpop.f32.mrf.mxu0  ;;  %v7464_v50 = vpop.f32.mrf.mxu1 }
 0x239   : > { %v7466_v13 = vpop.f32.mrf.mxu0  ;;  %v7468_v60 = vpop.f32.mrf.mxu1 }
 0x23b   : > { %v7470_v0 = vpop.f32.mrf.mxu0  ;;  %v7472_v27 = vpop.f32.mrf.mxu1 }
 0x23d   : > { %v7474_v45 = vpop.f32.mrf.mxu0  ;;  %v7476_v17 = vpop.f32.mrf.mxu1 }
 0x23f   : > { %v7478_v40 = vpop.f32.mrf.mxu0  ;;  %v7480_v34 = vpop.f32.mrf.mxu1 }
 0x241   : > { %v7482_v35 = vpop.f32.mrf.mxu0  ;;  %v7484_v30 = vpop.f32.mrf.mxu1 }
 0x242   : > { %8707 = vst [vmem:[#allocation87_spill] sm:$0xff] %v7482_v35 }
 0x243   : > { %v7486_v15 = vpop.f32.mrf.mxu0  ;;  %v7488_v31 = vpop.f32.mrf.mxu1 }
 0x244   : > { %8708 = vst [vmem:[#allocation82_spill] sm:$0xff] %v7486_v15 }
 0x245   : > { %v7490_v3 = vpop.f32.mrf.mxu0  ;;  %v7492_v49 = vpop.f32.mrf.mxu1 }
 0x246   : > { %8709 = vst [vmem:[#allocation11_spill] sm:$0xff] %v7490_v3  ;;  %8710 = vst [vmem:[#allocation89_spill] sm:$0xff] %v7492_v49 }
 0x247   : > { %v7494_v59 = vpop.f32.mrf.mxu0  ;;  %v7496_v33 = vpop.f32.mrf.mxu1 }
 0x248   : > { %8711 = vst [vmem:[#allocation86_spill] sm:$0xff] %v7494_v59  ;;  %8712 = vst [vmem:[#allocation90_spill] sm:$0xff] %v7496_v33 }
 0x249   : > { %v7498_v53 = vpop.f32.mrf.mxu0  ;;  %v7500_v23 = vpop.f32.mrf.mxu1 }
 0x24a   : > { %8713 = vst [vmem:[#allocation88_spill] sm:$0xff] %v7498_v53  ;;  %8714 = vst [vmem:[#allocation10_spill] sm:$0xff] %v7500_v23 }
 0x24b   : > { %v7502_v18 = vpop.f32.mrf.mxu0  ;;  %v7504_v28 = vpop.f32.mrf.mxu1 }
 0x24c   : > { %8715 = vst [vmem:[#allocation30_spill] sm:$0xff] %v7502_v18  ;;  %8716 = vst [vmem:[#allocation12_spill] sm:$0xff] %v7504_v28 }
 0x24d   : > { %v7506_v7 = vpop.f32.mrf.mxu0  ;;  %v7508_v51 = vpop.f32.mrf.mxu1 }
 0x24e   : > { %8717 = vst [vmem:[#allocation38_spill] sm:$0xff] %v7506_v7  ;;  %8718 = vst [vmem:[#allocation14_spill] sm:$0xff] %v7508_v51 }
 0x24f   : > { %v7510_v63 = vpop.f32.mrf.mxu0  ;;  %v7512_v3 = vpop.f32.mrf.mxu1 }
 0x250   : > { %8719 = vst [vmem:[#allocation37_spill] sm:$0xff] %v7510_v63  ;;  %8720 = vst [vmem:[#allocation49_spill] sm:$0xff] %v7512_v3 }
 0x251   : > { %v7514_v15 = vpop.f32.mrf.mxu0  ;;  %v7516_v59 = vpop.f32.mrf.mxu1 }
 0x252   : > { %8721 = vst [vmem:[#allocation99_spill] sm:$0xff] %v7514_v15  ;;  %8722 = vst [vmem:[#allocation40_spill] sm:$0xff] %v7516_v59 }
 0x253   : > { %v7518_v38 = vpop.f32.mrf.mxu0  ;;  %v7520_v53 = vpop.f32.mrf.mxu1 }
 0x254   : > { %8723 = vst [vmem:[#allocation53_spill] sm:$0xff] %v7518_v38  ;;  %8724 = vst [vmem:[#allocation32_spill] sm:$0xff] %v7520_v53 }
 0x255   : > { %v7522_v23 = vpop.f32.mrf.mxu0  ;;  %v7524_v18 = vpop.f32.mrf.mxu1 }
 0x256   : > { %8725 = vst [vmem:[#allocation102_spill] sm:$0xff] %v7522_v23  ;;  %8726 = vst [vmem:[#allocation94_spill] sm:$0xff] %v7524_v18 }
 0x257   : > { %v7526_v28 = vpop.f32.mrf.mxu0  ;;  %v7528_v7 = vpop.f32.mrf.mxu1 }
 0x258   : > { %8727 = vst [vmem:[#allocation57_spill] sm:$0xff] %v7526_v28  ;;  %8728 = vst [vmem:[#allocation44_spill] sm:$0xff] %v7528_v7  ;;  %v2971_v7 = vadd.f32 %v7411_v46, %v7328_v32 }
 0x259   : > { %v7530_v51 = vpop.f32.mrf.mxu0  ;;  %v7532_v63 = vpop.f32.mrf.mxu1 }
 0x25a   : > { %8729 = vst [vmem:[#allocation104_spill] sm:$0xff] %v7530_v51  ;;  %8730 = vst [vmem:[#allocation61_spill] sm:$0xff] %v7532_v63  ;;  %v8737_v51 = vld [vmem:[#allocation66_spill] sm:$0xff] }
 0x25b   : > { %v7534_v3 = vpop.f32.mrf.mxu0  ;;  %v7536_v15 = vpop.f32.mrf.mxu1  ;;  %v3830_v33 = vsub.s32 2, %v8737_v51 }
 0x25c   : > { %8731 = vst [vmem:[#allocation47_spill] sm:$0xff] %v7534_v3  ;;  %8732 = vst [vmem:[#allocation106_spill] sm:$0xff] %v7536_v15  ;;  %v3834_v15 = vsub.s32 3, %v8737_v51 }
 0x25d   : > { %v7538_v59 = vpop.f32.mrf.mxu0  ;;  %v7540_v38 = vpop.f32.mrf.mxu1 }
 0x25e   : > { %8733 = vst [vmem:[#allocation65_spill] sm:$0xff] %v7538_v59  ;;  %8734 = vst [vmem:[#allocation48_spill] sm:$0xff] %v7540_v38  ;;  %v2973_v59 = vadd.f32 %v7417_v8, %v7331_v20  ;;  %v3197_v38 = vadd.f32 %v7432_v9, %v2971_v7  ;;  %v2981_v7 = vadd.f32 %v7426_v6, %v7337_v2 }
 0x25f   : > { %v7542_v53 = vpop.f32.mrf.mxu1  ;;  %v3499_v23 = vpop.f32.mrf.mxu0  ;;  %v2989_v2 = vadd.f32 %v7434_v29, %v7343_v22 }
 0x260   : > { %8735 = vst [vmem:[#allocation108_spill] sm:$0xff] %v7542_v53  ;;  %v3199_v32 = vadd.f32 %v7436_v62, %v2973_v59  ;;  %v3500_v46 = vadd.f32 %v3499_v23, %v3197_v38  ;;  %v2987_v38 = vadd.f32 %v7430_v39, %v7341_v25 }
 0x261   : > { %v7544_v18 = vpop.f32.mrf.mxu1  ;;  %v3501_v28 = vpop.f32.mrf.mxu0 }
 0x262   : > { %8736 = vst [vmem:[#allocation109_spill] sm:$0xff] %v7544_v18  ;;  %v2979_v18 = vadd.f32 %v7421_v57, %v7335_v12  ;;  %v3502_v12 = vadd.f32 %v3501_v28, %v3199_v32  ;;  %v3215_v28 = vadd.f32 %v7448_v36, %v2987_v38  ;;  %v2997_v36 = vadd.f32 %v7442_v58, %v7349_v16 }
 0x263   : > { %v7549_v63 = vpop.f32.mrf.mxu1  ;;  %v3506_v3 = vpop.f32.mrf.mxu0 }
 0x264   : > { %8738 = vst [vmem:[#allocation55_spill] sm:$0xff] %v7549_v63  ;;  %v4886_v63 = vld [vmem:[%s7773_s3] sm:$0xf]  ;;  %v3206_v8 = vadd.f32 %v7440_v41, %v2979_v18 }
 0x265   : > { %v7555_v53 = vpop.f32.mrf.mxu1  ;;  %v3508_v35 = vpop.f32.mrf.mxu0  ;;  %v7563_v61 = vrot.slane %v4886_v63, %v3830_v33  ;;  %v7565_v20 = vrot.slane %v4886_v63, %v3834_v15  ;;  %v3208_v33 = vadd.f32 %v7444_v42, %v2981_v7  ;;  %v3217_v42 = vadd.f32 %v7452_v11, %v2989_v2 }
 0x266   : > { %v3507_v9 = vadd.f32 %v3506_v3, %v3206_v8  ;;  %v2995_v3 = vadd.f32 %v7438_v43, %v7347_v14  ;;  %v3003_v11 = vadd.f32 %v7446_v1, %v7353_v56 }
 0x267   : > { %v3513_v51 = vpop.f32.mrf.mxu0  ;;  %v3708_v49 = vpop.f32.mrf.mxu1  ;;  %v3509_v18 = vadd.f32 %v3508_v35, %v3208_v33 }
 0x268   : > { %v3709_v57 = vadd.f32 %v3708_v49, %v3500_v46  ;;  %v3514_v32 = vadd.f32 %v3513_v51, %v3215_v28  ;;  %v3224_v7 = vadd.f32 %v7456_v4, %v2995_v3  ;;  %v3005_v4 = vadd.f32 %v7450_v19, %v7355_v44 }
 0x269   : > { %v3515_v23 = vpop.f32.mrf.mxu0  ;;  %v3710_v59 = vpop.f32.mrf.mxu1  ;;  %v3233_v33 = vadd.f32 %v7464_v50, %v3003_v11  ;;  %v3013_v50 = vadd.f32 %v7458_v55, %v7361_v52 }
 0x26a   : > { %v3842_v63 = vadd.f32 %v7563_v61, %v3709_v57  ;;  %v3711_v15 = vadd.f32 %v3710_v59, %v3502_v12  ;;  %v3516_v8 = vadd.f32 %v3515_v23, %v3217_v42  ;;  %v3226_v57 = vadd.f32 %v7460_v24, %v2997_v36 }
 0x26b   : > { %v3520_v6 = vpop.f32.mrf.mxu0  ;;  %v3715_v62 = vpop.f32.mrf.mxu1  ;;  %v3011_v24 = vadd.f32 %v7454_v47, %v7359_v10  ;;  %v3235_v2 = vadd.f32 %v7468_v60, %v3005_v4  ;;  %v3019_v60 = vadd.f32 %v7462_v21, %v7365_v48 }
 0x26c   : > { %3906 = vst [vmem:[%s7128_s30 + $0x10] sm:$0xff] %v3842_v63  ;;  %v3843_v25 = vadd.f32 %v7565_v20, %v3711_v15  ;;  %v3716_v49 = vadd.f32 %v3715_v62, %v3507_v9  ;;  %v3521_v38 = vadd.f32 %v3520_v6, %v3224_v7 }
 0x26d   : > { %v3522_v39 = vpop.f32.mrf.mxu0  ;;  %v3717_v41 = vpop.f32.mrf.mxu1 }
 0x26e   : > { %3907 = vst [vmem:[%s7128_s30 + $0x18] sm:$0xff] %v3843_v25  ;;  %v3846_v22 = vadd.f32 %v7563_v61, %v3716_v49  ;;  %v3718_v29 = vadd.f32 %v3717_v41, %v3509_v18  ;;  %v3523_v9 = vadd.f32 %v3522_v39, %v3226_v57  ;;  %v3242_v18 = vadd.f32 %v7472_v27, %v3011_v24  ;;  %v8739_v57 = vld [vmem:[#allocation89_spill] sm:$0xff]  ;;  %v8744_v24 = vld [vmem:[#allocation82_spill] sm:$0xff] }
 0x26f   : > { %v3527_v35 = vpop.f32.mrf.mxu0  ;;  %v3722_v46 = vpop.f32.mrf.mxu1  ;;  %v3244_v39 = vadd.f32 %v7476_v17, %v3013_v50  ;;  %v3021_v27 = vadd.f32 %v7466_v13, %v7367_v37  ;;  %v3027_v17 = vadd.f32 %v7470_v0, %v7371_v54 }
 0x270   : > { %3910 = vst [vmem:[%s7128_s30 + $0x30] sm:$0xff] %v3846_v22  ;;  %v3847_v14 = vadd.f32 %v7565_v20, %v3718_v29  ;;  %v3723_v43 = vadd.f32 %v3722_v46, %v3514_v32  ;;  %v3528_v6 = vadd.f32 %v3527_v35, %v3233_v33  ;;  %v3251_v22 = vadd.f32 %v7480_v34, %v3019_v60  ;;  %v8742_v33 = vld [vmem:[#allocation90_spill] sm:$0xff]  ;;  %v8748_v60 = vld [vmem:[#allocation12_spill] sm:$0xff] }
 0x271   : > { %v3529_v51 = vpop.f32.mrf.mxu0  ;;  %v3724_v12 = vpop.f32.mrf.mxu1  ;;  %v3253_v46 = vadd.f32 %v7484_v30, %v3021_v27  ;;  %v3029_v34 = vadd.f32 %v7474_v45, %v7373_v5  ;;  %v3035_v30 = vadd.f32 %v7478_v40, %v7377_v26 }
 0x272   : > { %3911 = vst [vmem:[%s7128_s30 + $0x38] sm:$0xff] %v3847_v14  ;;  %v3850_v16 = vadd.f32 %v7563_v61, %v3723_v43  ;;  %v3725_v58 = vadd.f32 %v3724_v12, %v3516_v8  ;;  %v3530_v25 = vadd.f32 %v3529_v51, %v3235_v2  ;;  %v3260_v43 = vadd.f32 %v7488_v31, %v3027_v17  ;;  %v8740_v31 = vld [vmem:[#allocation36_spill] sm:$0xff] }
 0x273   : > { %v3534_v23 = vpop.f32.mrf.mxu0  ;;  %v3729_v59 = vpop.f32.mrf.mxu1 }
 0x274   : > { %3914 = vst [vmem:[%s7128_s30 + $0x50] sm:$0xff] %v3850_v16  ;;  %v3851_v56 = vadd.f32 %v7565_v20, %v3725_v58  ;;  %v3730_v1 = vadd.f32 %v3729_v59, %v3521_v38  ;;  %v3535_v41 = vadd.f32 %v3534_v23, %v3242_v18  ;;  %v3262_v38 = vadd.f32 %v8739_v57, %v3029_v34  ;;  %v8741_v58 = vld [vmem:[#allocation87_spill] sm:$0xff] }
 0x275   : > { %v3536_v63 = vpop.f32.mrf.mxu0  ;;  %v3731_v15 = vpop.f32.mrf.mxu1  ;;  %v3037_v4 = vadd.f32 %v8741_v58, %v8740_v31  ;;  %v8747_v18 = vld [vmem:[#allocation11_spill] sm:$0xff]  ;;  %v8759_v31 = vld [vmem:[#allocation38_spill] sm:$0xff] }
 0x276   : > { %3915 = vst [vmem:[%s7128_s30 + $0x58] sm:$0xff] %v3851_v56  ;;  %v3854_v44 = vadd.f32 %v7563_v61, %v3730_v1  ;;  %v3732_v19 = vadd.f32 %v3731_v15, %v3523_v9  ;;  %v3537_v29 = vadd.f32 %v3536_v63, %v3244_v39  ;;  %v3269_v9 = vadd.f32 %v8742_v33, %v3035_v30  ;;  %v8743_v1 = vld [vmem:[#allocation74_spill] sm:$0xff] }
 0x277   : > { %v3541_v62 = vpop.f32.mrf.mxu0  ;;  %v3736_v28 = vpop.f32.mrf.mxu1  ;;  %v3043_v63 = vadd.f32 %v8744_v24, %v8743_v1  ;;  %v8762_v1 = vld [vmem:[#allocation37_spill] sm:$0xff] }
 0x278   : > { %3918 = vst [vmem:[%s7128_s30 + $0x70] sm:$0xff] %v3854_v44  ;;  %v3855_v10 = vadd.f32 %v7565_v20, %v3732_v19  ;;  %v3737_v47 = vadd.f32 %v3736_v28, %v3528_v6  ;;  %v3542_v7 = vadd.f32 %v3541_v62, %v3251_v22  ;;  %v8745_v6 = vld [vmem:[#allocation10_spill] sm:$0xff]  ;;  %v8746_v28 = vld [vmem:[#allocation68_spill] sm:$0xff] }
 0x279   : > { %v3543_v49 = vpop.f32.mrf.mxu0  ;;  %v3738_v3 = vpop.f32.mrf.mxu1  ;;  %v3271_v44 = vadd.f32 %v8745_v6, %v3037_v4  ;;  %v8751_v22 = vld [vmem:[#allocation14_spill] sm:$0xff] }
 0x27a   : > { %3919 = vst [vmem:[%s7128_s30 + $0x78] sm:$0xff] %v3855_v10  ;;  %v3858_v52 = vadd.f32 %v7563_v61, %v3737_v47  ;;  %v3739_v55 = vadd.f32 %v3738_v3, %v3530_v25  ;;  %v3544_v11 = vadd.f32 %v3543_v49, %v3253_v46  ;;  %v3045_v25 = vadd.f32 %v8747_v18, %v8746_v28  ;;  %v8765_v28 = vld [vmem:[#allocation99_spill] sm:$0xff] }
 0x27b   : > { %v3548_v42 = vpop.f32.mrf.mxu0  ;;  %v3743_v32 = vpop.f32.mrf.mxu1  ;;  %v3278_v49 = vadd.f32 %v8748_v60, %v3043_v63 }
 0x27c   : > { %3922 = vst [vmem:[%s7128_s30 + $0x90] sm:$0xff] %v3858_v52  ;;  %v3859_v48 = vadd.f32 %v7565_v20, %v3739_v55  ;;  %v3744_v21 = vadd.f32 %v3743_v32, %v3535_v41  ;;  %v3549_v16 = vadd.f32 %v3548_v42, %v3260_v43  ;;  %v8749_v52 = vld [vmem:[#allocation9_spill] sm:$0xff]  ;;  %v8750_v55 = vld [vmem:[#allocation86_spill] sm:$0xff] }
 0x27d   : > { %v3550_v36 = vpop.f32.mrf.mxu0  ;;  %v3745_v35 = vpop.f32.mrf.mxu1  ;;  %v3051_v27 = vadd.f32 %v8750_v55, %v8749_v52  ;;  %v8768_v52 = vld [vmem:[#allocation53_spill] sm:$0xff] }
 0x27e   : > { %3923 = vst [vmem:[%s7128_s30 + $0x98] sm:$0xff] %v3859_v48  ;;  %v3862_v37 = vadd.f32 %v7563_v61, %v3744_v21  ;;  %v3746_v13 = vadd.f32 %v3745_v35, %v3537_v29  ;;  %v3551_v56 = vadd.f32 %v3550_v36, %v3262_v38  ;;  %v3280_v29 = vadd.f32 %v8751_v22, %v3045_v25  ;;  %v8752_v36 = vld [vmem:[#allocation24_spill] sm:$0xff] }
 0x27f   : > { %v3555_v8 = vpop.f32.mrf.mxu0  ;;  %v3750_v14 = vpop.f32.mrf.mxu1  ;;  %v8753_v35 = vld [vmem:[#allocation88_spill] sm:$0xff] }
 0x280   : > { %3926 = vst [vmem:[%s7128_s30 + $0xb0] sm:$0xff] %v3862_v37  ;;  %v3863_v54 = vadd.f32 %v7565_v20, %v3746_v13  ;;  %v3751_v0 = vadd.f32 %v3750_v14, %v3542_v7  ;;  %v3556_v19 = vadd.f32 %v3555_v8, %v3269_v9  ;;  %v3053_v46 = vadd.f32 %v8753_v35, %v8752_v36  ;;  %v8754_v13 = vld [vmem:[#allocation49_spill] sm:$0xff]  ;;  %v8771_v36 = vld [vmem:[#allocation102_spill] sm:$0xff] }
 0x281   : > { %v3557_v51 = vpop.f32.mrf.mxu0  ;;  %v3752_v12 = vpop.f32.mrf.mxu1  ;;  %v3287_v34 = vadd.f32 %v8754_v13, %v3051_v27 }
 0x282   : > { %3927 = vst [vmem:[%s7128_s30 + $0xb8] sm:$0xff] %v3863_v54  ;;  %v3866_v5 = vadd.f32 %v7563_v61, %v3751_v0  ;;  %v3753_v45 = vadd.f32 %v3752_v12, %v3544_v11  ;;  %v3558_v3 = vadd.f32 %v3557_v51, %v3271_v44  ;;  %v8755_v11 = vld [vmem:[#allocation28_spill] sm:$0xff]  ;;  %v8756_v54 = vld [vmem:[#allocation30_spill] sm:$0xff] }
 0x283   : > { %v3562_v23 = vpop.f32.mrf.mxu0  ;;  %v3757_v59 = vpop.f32.mrf.mxu1  ;;  %v3059_v0 = vadd.f32 %v8756_v54, %v8755_v11  ;;  %v8757_v12 = vld [vmem:[#allocation40_spill] sm:$0xff]  ;;  %v8774_v11 = vld [vmem:[#allocation57_spill] sm:$0xff] }
 0x284   : > { %3930 = vst [vmem:[%s7128_s30 + $0xd0] sm:$0xff] %v3866_v5  ;;  %v3867_v26 = vadd.f32 %v7565_v20, %v3753_v45  ;;  %v3758_v40 = vadd.f32 %v3757_v59, %v3549_v16  ;;  %v3563_v48 = vadd.f32 %v3562_v23, %v3278_v49  ;;  %v3289_v57 = vadd.f32 %v8757_v12, %v3053_v46  ;;  %v8758_v45 = vld [vmem:[#allocation78_spill] sm:$0xff]  ;;  %v8760_v59 = vld [vmem:[#allocation32_spill] sm:$0xff] }
 0x285   : > { %v3564_v15 = vpop.f32.mrf.mxu0  ;;  %v3759_v2 = vpop.f32.mrf.mxu1  ;;  %v3061_v58 = vadd.f32 %v8759_v31, %v8758_v45  ;;  %v3296_v33 = vadd.f32 %v8760_v59, %v3059_v0  ;;  %v8777_v45 = vld [vmem:[#allocation104_spill] sm:$0xff] }
 0x286   : > { %3931 = vst [vmem:[%s7128_s30 + $0xd8] sm:$0xff] %v3867_v26  ;;  %v3870_v50 = vadd.f32 %v7563_v61, %v3758_v40  ;;  %v3760_v62 = vadd.f32 %v3759_v2, %v3551_v56  ;;  %v3565_v8 = vadd.f32 %v3564_v15, %v3280_v29  ;;  %v8761_v40 = vld [vmem:[#allocation73_spill] sm:$0xff]  ;;  %v8763_v2 = vld [vmem:[#allocation94_spill] sm:$0xff] }
 0x287   : > { %v3569_v10 = vpop.f32.mrf.mxu0  ;;  %v3764_v47 = vpop.f32.mrf.mxu1  ;;  %v3067_v24 = vadd.f32 %v8762_v1, %v8761_v40  ;;  %v3298_v6 = vadd.f32 %v8763_v2, %v3061_v58 }
 0x288   : > { %3934 = vst [vmem:[%s7128_s30 + $0xf0] sm:$0xff] %v3870_v50  ;;  %v3871_v39 = vadd.f32 %v7565_v20, %v3760_v62  ;;  %v3765_v41 = vadd.f32 %v3764_v47, %v3556_v19  ;;  %v3570_v38 = vadd.f32 %v3569_v10, %v3287_v34  ;;  %v8764_v62 = vld [vmem:[#allocation91_spill] sm:$0xff]  ;;  %v8766_v47 = vld [vmem:[#allocation44_spill] sm:$0xff] }
 0x289   : > { %v3571_v42 = vpop.f32.mrf.mxu0  ;;  %v3766_v32 = vpop.f32.mrf.mxu1  ;;  %v3069_v18 = vadd.f32 %v8765_v28, %v8764_v62  ;;  %v3305_v60 = vadd.f32 %v8766_v47, %v3067_v24 }
 0x28a   : > { %3935 = vst [vmem:[%s7128_s30 + $0xf8] sm:$0xff] %v3871_v39  ;;  %v3874_v21 = vadd.f32 %v7563_v61, %v3765_v41  ;;  %v3767_v17 = vadd.f32 %v3766_v32, %v3558_v3  ;;  %v3572_v9 = vadd.f32 %v3571_v42, %v3289_v57  ;;  %v8767_v41 = vld [vmem:[#allocation33_spill] sm:$0xff] }
 0x28b   : > { %v3576_v7 = vpop.f32.mrf.mxu0  ;;  %v3771_v37 = vpop.f32.mrf.mxu1  ;;  %v3075_v55 = vadd.f32 %v8768_v52, %v8767_v41  ;;  %v8769_v32 = vld [vmem:[#allocation61_spill] sm:$0xff] }
 0x28c   : > { %3938 = vst [vmem:[%s7128_s30 + $0x110] sm:$0xff] %v3874_v21  ;;  %v3875_v14 = vadd.f32 %v7565_v20, %v3767_v17  ;;  %v3772_v43 = vadd.f32 %v3771_v37, %v3563_v48  ;;  %v3577_v44 = vadd.f32 %v3576_v7, %v3296_v33  ;;  %v3307_v22 = vadd.f32 %v8769_v32, %v3069_v18  ;;  %v8770_v17 = vld [vmem:[#allocation13_spill] sm:$0xff]  ;;  %v8772_v37 = vld [vmem:[#allocation106_spill] sm:$0xff]  ;;  %v8784_v18 = vld [vmem:[#allocation55_spill] sm:$0xff] }
 0x28d   : > { %v3578_v30 = vpop.f32.mrf.mxu0  ;;  %v3773_v51 = vpop.f32.mrf.mxu1  ;;  %v3077_v35 = vadd.f32 %v8771_v36, %v8770_v17  ;;  %v3314_v13 = vadd.f32 %v8772_v37, %v3075_v55 }
 0x28e   : > { %3939 = vst [vmem:[%s7128_s30 + $0x118] sm:$0xff] %v3875_v14  ;;  %v3878_v16 = vadd.f32 %v7563_v61, %v3772_v43  ;;  %v3774_v5 = vadd.f32 %v3773_v51, %v3565_v8  ;;  %v3579_v49 = vadd.f32 %v3578_v30, %v3298_v6  ;;  %v8773_v43 = vld [vmem:[#allocation83_spill] sm:$0xff]  ;;  %v8775_v51 = vld [vmem:[#allocation48_spill] sm:$0xff] }
 0x28f   : > { %v3583_v4 = vpop.f32.mrf.mxu0  ;;  %v3778_v23 = vpop.f32.mrf.mxu1  ;;  %v3083_v54 = vadd.f32 %v8774_v11, %v8773_v43  ;;  %v3316_v12 = vadd.f32 %v8775_v51, %v3077_v35 }
 0x290   : > { %3942 = vst [vmem:[%s7128_s30 + $0x130] sm:$0xff] %v3878_v16  ;;  %v3879_v56 = vadd.f32 %v7565_v20, %v3774_v5  ;;  %v3779_v26 = vadd.f32 %v3778_v23, %v3570_v38  ;;  %v3584_v29 = vadd.f32 %v3583_v4, %v3305_v60  ;;  %v8776_v5 = vld [vmem:[#allocation77_spill] sm:$0xff]  ;;  %v8778_v4 = vld [vmem:[#allocation108_spill] sm:$0xff] }
 0x291   : > { %v3585_v63 = vpop.f32.mrf.mxu0  ;;  %v3780_v15 = vpop.f32.mrf.mxu1  ;;  %v3085_v31 = vadd.f32 %v8777_v45, %v8776_v5  ;;  %v3323_v23 = vadd.f32 %v8778_v4, %v3083_v54 }
 0x292   : > { %3943 = vst [vmem:[%s7128_s30 + $0x138] sm:$0xff] %v3879_v56  ;;  %v3882_v19 = vadd.f32 %v7563_v61, %v3779_v26  ;;  %v3781_v50 = vadd.f32 %v3780_v15, %v3572_v9  ;;  %v3586_v34 = vadd.f32 %v3585_v63, %v3307_v22  ;;  %v8779_v56 = vld [vmem:[#allocation93_spill] sm:$0xff]  ;;  %v8780_v26 = vld [vmem:[#allocation47_spill] sm:$0xff] }
 0x293   : > { %v3590_v25 = vpop.f32.mrf.mxu0  ;;  %v3785_v10 = vpop.f32.mrf.mxu1  ;;  %v3091_v40 = vadd.f32 %v8780_v26, %v8779_v56  ;;  %v8781_v63 = vld [vmem:[#allocation109_spill] sm:$0xff] }
 0x294   : > { %3946 = vst [vmem:[%s7128_s30 + $0x150] sm:$0xff] %v3882_v19  ;;  %v3883_v3 = vadd.f32 %v7565_v20, %v3781_v50  ;;  %v3786_v39 = vadd.f32 %v3785_v10, %v3577_v44  ;;  %v3591_v57 = vadd.f32 %v3590_v25, %v3314_v13  ;;  %v3325_v15 = vadd.f32 %v8781_v63, %v3085_v31  ;;  %v8782_v19 = vld [vmem:[#allocation19_spill] sm:$0xff]  ;;  %v8783_v50 = vld [vmem:[#allocation65_spill] sm:$0xff] }
 0x295   : > { %v3592_v27 = vpop.f32.mrf.mxu0  ;;  %v3787_v42 = vpop.f32.mrf.mxu1  ;;  %v3093_v62 = vadd.f32 %v8783_v50, %v8782_v19  ;;  %v3332_v25 = vadd.f32 %v8784_v18, %v3091_v40 }
 0x296   : > { %3947 = vst [vmem:[%s7128_s30 + $0x158] sm:$0xff] %v3883_v3  ;;  %v3886_v48 = vadd.f32 %v7563_v61, %v3786_v39  ;;  %v3788_v21 = vadd.f32 %v3787_v42, %v3579_v49  ;;  %v3593_v59 = vadd.f32 %v3592_v27, %v3316_v12 }
 0x297   : > { %v3597_v46 = vpop.f32.mrf.mxu0  ;;  %v3792_v7 = vpop.f32.mrf.mxu1  ;;  %v3334_v39 = vadd.f32 %v7555_v53, %v3093_v62 }
 0x298   : > { %3950 = vst [vmem:[%s7128_s30 + $0x170] sm:$0xff] %v3886_v48  ;;  %v3887_v8 = vadd.f32 %v7565_v20, %v3788_v21  ;;  %v3793_v14 = vadd.f32 %v3792_v7, %v3584_v29  ;;  %v3598_v2 = vadd.f32 %v3597_v46, %v3323_v23 }
 0x299   : > { %v3599_v0 = vpop.f32.mrf.mxu0  ;;  %v3794_v30 = vpop.f32.mrf.mxu1 }
 0x29a   : > { %3951 = vst [vmem:[%s7128_s30 + $0x178] sm:$0xff] %v3887_v8  ;;  %v3890_v38 = vadd.f32 %v7563_v61, %v3793_v14  ;;  %v3795_v16 = vadd.f32 %v3794_v30, %v3586_v34  ;;  %v3600_v10 = vadd.f32 %v3599_v0, %v3325_v15 }
 0x29b   : > { %v3799_v58 = vpop.f32.mrf.mxu1  ;;  %v3604_v1 = vpop.f32.mrf.mxu0 }
 0x29c   : > { %3954 = vst [vmem:[%s7128_s30 + $0x190] sm:$0xff] %v3890_v38  ;;  %v3891_v33 = vadd.f32 %v7565_v20, %v3795_v16  ;;  %v3800_v9 = vadd.f32 %v3799_v58, %v3591_v57  ;;  %v3605_v41 = vadd.f32 %v3604_v1, %v3332_v25 }
 0x29d   : > { %v3801_v24 = vpop.f32.mrf.mxu1  ;;  %v3606_v49 = vpop.f32.mrf.mxu0 }
 0x29e   : > { %3955 = vst [vmem:[%s7128_s30 + $0x198] sm:$0xff] %v3891_v33  ;;  %v3894_v6 = vadd.f32 %v7563_v61, %v3800_v9  ;;  %v3802_v44 = vadd.f32 %v3801_v24, %v3593_v59  ;;  %v3607_v42 = vadd.f32 %v3606_v49, %v3334_v39 }
 0x29f   : > { %v3806_v28 = vpop.f32.mrf.mxu1 }
 0x2a0   : > { %3958 = vst [vmem:[%s7128_s30 + $0x1b0] sm:$0xff] %v3894_v6  ;;  %v3895_v47 = vadd.f32 %v7565_v20, %v3802_v44  ;;  %v3807_v60 = vadd.f32 %v3806_v28, %v3598_v2 }
 0x2a1   : > { %v3808_v3 = vpop.f32.mrf.mxu1 }
 0x2a2   : > { %3959 = vst [vmem:[%s7128_s30 + $0x1b8] sm:$0xff] %v3895_v47  ;;  %v3898_v52 = vadd.f32 %v7563_v61, %v3807_v60  ;;  %v3809_v55 = vadd.f32 %v3808_v3, %v3600_v10 }
 0x2a3   : > { %v3813_v27 = vpop.f32.mrf.mxu1 }
 0x2a4   : > { %3962 = vst [vmem:[%s7128_s30 + $0x1d0] sm:$0xff] %v3898_v52  ;;  %v3899_v32 = vadd.f32 %v7565_v20, %v3809_v55  ;;  %v3814_v22 = vadd.f32 %v3813_v27, %v3605_v41 }
 0x2a5   : > { %v3815_v29 = vpop.f32.mrf.mxu1 }
 0x2a6   : > { %3963 = vst [vmem:[%s7128_s30 + $0x1d8] sm:$0xff] %v3899_v32  ;;  %v3902_v53 = vadd.f32 %v7563_v61, %v3814_v22  ;;  %v3816_v48 = vadd.f32 %v3815_v29, %v3607_v42 }
 0x2a8   : > { %3966 = vst [vmem:[%s7128_s30 + $0x1f0] sm:$0xff] %v3902_v53  ;;  %v3903_v21 = vadd.f32 %v7565_v20, %v3816_v48 }
 0x2aa   : > { %3967 = vst [vmem:[%s7128_s30 + $0x1f8] sm:$0xff] %v3903_v21 }
 0x2ab   : > { %4900 = shalt.err (!%p4897_p3)
}
 0x2ac   : > { %s4901_s28 = scalar_lea.hbm %s7721_s7, 8192  ;;  %s4905_s6 = scalar_lea.hbm %s7774_s4, 16384 }
 0x2ad   : > { %p4902_p4 = scmp.ne.s32.totalorder %s7721_s7, %s4901_s28  ;;  %p4906_p9 = scmp.lt.s32.totalorder %s7721_s7, %s7774_s4 }
 0x2ae   : > { %p4907_p10 = scmp.lt.s32.totalorder %s4905_s6, %s4901_s28 }
 0x2af   : > { %p4903_p7 = pnand %p4902_p4, %p5016_p5 }
 0x2b0   : > { %p4908_p11 = por %p4907_p10, %p4906_p9 }
 0x2b1   : > { %p4904_p8 = pneg %p4903_p7 }
 0x2b3   : > { %p4909_p12 = pnand %p4908_p11, %p4904_p8 }
 0x2b5   : > { %4912 = shalt.err (!%p4909_p12)
}
 0x2b6   : > { %s4951_s8 = smov 512   ;;  %s4952_s10 = smov 32  }
 0x2b7   : > { %4842 = dma.vmem_to_hbm [thread:$0]  (%p5016_p5), %s7723_s12, 8192, %s7721_s7, %s7730_s19, %s4951_s8, %s4951_s8, %s4952_s10  }
 0x2b8 PF: > { %p4848_p13 = scmp.ge.s32.totalorder %s4947_s18, 2  ;;  %s3998_s11 = sand.u32 1, %s4935_s15  }
 0x2b9   : > { %s3999_s13 = scalar_lea.sflag [#allocation3], %s3998_s11 }
 0x2ba   : > { %p4845_p0 = pnand %p4848_p13, %p5020_p6 }
 0x2bc   : > { %p4846_p1 = pneg %p4845_p0 }
 0x2be   : > { %4930 = dma.done.wait (%p4846_p1), %s3999_s13, 8192  }
 0x2bf   : > { %4932 = vsyncadd (%p4846_p1), %s3999_s13, 4294959104  ;;  %p14_p2 = scmp.ge.s32.totalorder %s5003_s21, 4   ;;  %s8785_s15 = smov %s4939_s16 }
 0x2c0   : > { %s8786_s16 = smov %s4943_s17  ;;  %s8787_s17 = smov %s5014_s24 }
 0x2c1   : > { %s8788_s18 = smov %s5003_s21  ;;  %16 = sbr.rel (!%p14_p2) target bundleno = 3 (0x3), region = 74 }
 0x2c6   :  { %4004 = vsyncpa [#allocation3], 1 }
 0x2c7   :  { %4006 = vsyncpa [#allocation3 + $0x1], 1 }

</bundles_post_ra>
